<compile_context>
chip_gen: v7x
topology: tpu7x:2x2x1
jax: 0.10.0
libtpu: 0.0.40
codegen_flags: <defaults>
</compile_context>

<pallas_src>
import jax
import jax.numpy as jnp
from jax import lax
from jax.experimental import pallas as pl
from jax.experimental.pallas import tpu as pltpu

LANE = 128  # TPU lane width: every channel dim is zero-padded to this


def _round_up(x, m):
    return ((x + m - 1) // m) * m


def _pick_row_tile(h, w, cin_pad, cslab_pad):
    """Largest divisor of H that keeps the halo tile comfortably in VMEM and
    gives a few thousand output pixels per grid step."""
    wp = _round_up(w + 2, 8)
    per_row = wp * (2 * cin_pad + 2 * cslab_pad) + (w + 2) * 4 * cslab_pad
    budget = 8 * 1024 * 1024
    target = max(1, min(h, budget // max(per_row, 1), 4096 // max(w, 1)))
    tr = 1
    for t in range(1, h + 1):
        if h % t == 0 and t <= target:
            tr = t
    return tr


# ----------------------------------------------------------------------------
# Fused kernel: conv#1 (5-branch block-diagonal) -> VMEM slab -> conv#2
# ----------------------------------------------------------------------------
def _fused_two_conv_kernel(x_hbm, w1_ref, b1_ref, w2_ref, b2_ref, o_ref,
                           xbuf, slab_ref, sem):
    _, tr, w, cout = o_ref.shape          # output row tile (1, TR, W, Cout_pad)
    rows1 = tr + 2                        # slab rows needed (1 halo row each side)
    wp = xbuf.shape[1]                    # padded input width  (>= W + 2)
    cin = xbuf.shape[2]
    wps = slab_ref.shape[1]               # padded slab width   (>= W + 2)
    cslab = slab_ref.shape[2]

    b = pl.program_id(0)
    r = pl.program_id(1)

    # ---- DMA the (TR+4)-row halo tile of the channel-concat input --------
    cp = pltpu.make_async_copy(x_hbm.at[b, pl.ds(r * tr, tr + 4)], xbuf,
                               sem.at[0])
    cp.start()
    cp.wait()
    # TODO(synk): double-buffer this DMA (prefetch tile r+1) to overlap with compute.

    # ---- conv #1: five block-diagonal 3x3 convs + bias(+BN) + ReLU --------
    acc1 = jnp.zeros((rows1, w, cslab), jnp.float32)
    for dy in range(3):
        lhs = xbuf[dy:dy + rows1, :, :].reshape(rows1 * wp, cin)
        for dx in range(3):
            part = jnp.dot(lhs, w1_ref[3 * dy + dx],
                           preferred_element_type=jnp.float32)
            part = part.reshape(rows1, wp, cslab)
            acc1 = acc1 + part[:, dx:dx + w, :]
    h1 = jnp.maximum(acc1 + b1_ref[...], 0.0).astype(slab_ref.dtype)

    # ---- stage the concat slab (zero W borders) in VMEM -------------------
    slab_ref[:, 1:w + 1, :] = h1
    slab_ref[:, 0:1, :] = jnp.zeros((rows1, 1, cslab), slab_ref.dtype)
    slab_ref[:, w + 1:wps, :] = jnp.zeros((rows1, wps - w - 1, cslab),
                                          slab_ref.dtype)

    # conv#2 zero-pads the *slab*, not the input: slab rows outside the image
    # must be exactly zero (not ReLU(bias) of zero-padded input rows).
    @pl.when(r == 0)
    def _():
        slab_ref[0:1, :, :] = jnp.zeros((1, wps, cslab), slab_ref.dtype)

    @pl.when(r == pl.num_programs(1) - 1)
    def _():
        slab_ref[tr + 1:tr + 2, :, :] = jnp.zeros((1, wps, cslab),
                                                  slab_ref.dtype)

    # ---- conv #2: final 3x3 conv over the slab + bias(+BN) + ReLU ---------
    acc2 = jnp.zeros((tr, w, cout), jnp.float32)
    for dy in range(3):
        lhs = slab_ref[dy:dy + tr, :, :].reshape(tr * wps, cslab)
        for dx in range(3):
            part = jnp.dot(lhs, w2_ref[3 * dy + dx],
                           preferred_element_type=jnp.float32)
            part = part.reshape(tr, wps, cout)
            acc2 = acc2 + part[:, dx:dx + w, :]
    out = jnp.maximum(acc2 + b2_ref[...], 0.0)
    o_ref[...] = out.reshape(1, tr, w, cout).astype(o_ref.dtype)


def _fused_two_convs(xcat_pad, w1, b1, w2, b2, *, n, h, w, tr):
    cin = xcat_pad.shape[-1]
    wp = xcat_pad.shape[2]
    cslab = w1.shape[-1]
    cout = w2.shape[-1]
    wps = _round_up(w + 2, 8)
    return pl.pallas_call(
        _fused_two_conv_kernel,
        out_shape=jax.ShapeDtypeStruct((n, h, w, cout), jnp.float32),
        grid_spec=pltpu.PrefetchScalarGridSpec(
            num_scalar_prefetch=0,
            grid=(n, h // tr),
            in_specs=[
                pl.BlockSpec(memory_space=pl.ANY),                       # concat input (HBM)
                pl.BlockSpec((9, cin, cslab), lambda b, r: (0, 0, 0)),   # conv1 weight (resident)
                pl.BlockSpec((1, cslab), lambda b, r: (0, 0)),           # conv1 bias
                pl.BlockSpec((9, cslab, cout), lambda b, r: (0, 0, 0)),  # conv2 weight (resident)
                pl.BlockSpec((1, cout), lambda b, r: (0, 0)),            # conv2 bias
            ],
            out_specs=pl.BlockSpec((1, tr, w, cout),
                                   lambda b, r: (b, r, 0, 0)),
            scratch_shapes=[
                pltpu.VMEM((tr + 4, wp, cin), jnp.bfloat16),   # halo input tile
                pltpu.VMEM((tr + 2, wps, cslab), jnp.bfloat16),  # concat slab tile
                pltpu.SemaphoreType.DMA((1,)),
            ]),
        compiler_params=pltpu.CompilerParams(
            dimension_semantics=("parallel", "parallel")),
    )(xcat_pad, w1, b1, w2, b2)


# ----------------------------------------------------------------------------
# Host-side weight folding (block-diagonal conv1, BN folded into both convs)
# ----------------------------------------------------------------------------
def _bn_affine(params, bn, eps=1e-5):
    cout = params["bn_gamma"].shape[0]
    if bn:
        scale = params["bn_gamma"] * lax.rsqrt(params["bn_var"] + eps)
        shift = params["bn_beta"] - params["bn_mean"] * scale
    else:
        scale = jnp.ones((cout,), jnp.float32)
        shift = jnp.zeros((cout,), jnp.float32)
    return scale, shift


def _build_fused_weights(params, bn, out_size, cins):
    scale, shift = _bn_affine(params, bn)
    cin_tot = sum(cins)
    cin_pad = _round_up(cin_tot, LANE)
    cslab_pad = _round_up(5 * out_size, LANE)
    cout_pad = _round_up(out_size, LANE)

    w1 = jnp.zeros((3, 3, cin_pad, cslab_pad), jnp.float32)
    b1 = jnp.zeros((cslab_pad,), jnp.float32)
    coff = 0
    for i, nm in enumerate("12345"):
        wi, bi = params["w" + nm], params["b" + nm]  # (out, ci, 3, 3), (out,)
        ci = wi.shape[1]
        w1 = w1.at[:, :, coff:coff + ci,
                   i * out_size:(i + 1) * out_size].set(
                       jnp.transpose(wi, (2, 3, 1, 0)) * scale)
        b1 = b1.at[i * out_size:(i + 1) * out_size].set(bi * scale + shift)
        coff += ci

    w2 = jnp.zeros((3, 3, cslab_pad, cout_pad), jnp.float32)
    w2 = w2.at[:, :, :5 * out_size, :out_size].set(
        jnp.transpose(params["wf"], (2, 3, 1, 0)) * scale)
    b2 = jnp.zeros((cout_pad,), jnp.float32)
    b2 = b2.at[:out_size].set(params["bf"] * scale + shift)

    return (w1.reshape(9, cin_pad, cslab_pad).astype(jnp.bfloat16),
            b1.reshape(1, cslab_pad),
            w2.reshape(9, cslab_pad, cout_pad).astype(jnp.bfloat16),
            b2.reshape(1, cout_pad))


# ----------------------------------------------------------------------------
# Glue ops (plain JAX)
# ----------------------------------------------------------------------------
def _to_nhwc(x):
    return jnp.transpose(x, (0, 2, 3, 1))


def maxpool(x_nhwc, k):
    # nn.MaxPool2d(k, k, ceil_mode=True); spatial dims divide evenly here, so
    # ceil_mode has no effect.
    n, h, w, c = x_nhwc.shape
    return x_nhwc.reshape(n, h // k, k, w // k, k, c).max(axis=(2, 4))


def bilinear_up(x_nhwc, f):
    # nn.Upsample(scale_factor=f, mode='bilinear'), align_corners=False
    # (PyTorch default): src = max((i + 0.5)/f - 0.5, 0).
    n, h, w, c = x_nhwc.shape

    def idx(sz):
        src = jnp.maximum(
            (jnp.arange(f * sz, dtype=jnp.float32) + 0.5) / f - 0.5, 0.0)
        i0 = jnp.floor(src).astype(jnp.int32)
        frac = src - i0.astype(jnp.float32)
        i1 = jnp.minimum(i0 + 1, sz - 1)
        return i0, i1, frac

    r0, r1, rf = idx(h)
    c0, c1, cf = idx(w)
    xr = (jnp.take(x_nhwc, r0, axis=1) * (1.0 - rf)[None, :, None, None]
          + jnp.take(x_nhwc, r1, axis=1) * rf[None, :, None, None])
    xc = (jnp.take(xr, c0, axis=2) * (1.0 - cf)[None, None, :, None]
          + jnp.take(xr, c1, axis=2) * cf[None, None, :, None])
    return xc


# ----------------------------------------------------------------------------
# unetUp3 forward (Pallas path)
# ----------------------------------------------------------------------------
def unet_up3_forward(params, inputs1, inputs2, inputs3, inputs4, inputs5, bn):
    x1 = maxpool(_to_nhwc(inputs1), 4)        # downsample1: MaxPool2d(4)
    x2 = maxpool(_to_nhwc(inputs2), 2)        # downsample2: MaxPool2d(2)
    x3 = _to_nhwc(inputs3)
    x4 = bilinear_up(_to_nhwc(inputs4), 2)    # upsample4: x2 bilinear
    x5 = bilinear_up(_to_nhwc(inputs5), 4)    # upsample5: x4 bilinear
    xs = [x1, x2, x3, x4, x5]

    n, h, w, _ = x3.shape
    cins = [x.shape[-1] for x in xs]
    out_size = params["w1"].shape[0]

    w1, b1, w2, b2 = _build_fused_weights(params, bn, out_size, cins)
    cin_pad = w1.shape[1]
    cslab_pad = w1.shape[2]

    # Channel-concat in bf16, one pad pass: +2 halo rows (H), +1/+align cols
    # (W, conv#1 spatial padding), channels zero-padded to a lane multiple.
    wp = _round_up(w + 2, 8)
    xcat = jnp.concatenate([x.astype(jnp.bfloat16) for x in xs], axis=-1)
    xcat = jnp.pad(xcat, ((0, 0), (2, 2), (1, wp - w - 1),
                          (0, cin_pad - sum(cins))))

    tr = _pick_row_tile(h, w, cin_pad, cslab_pad)
    out = _fused_two_convs(xcat, w1, b1, w2, b2, n=n, h=h, w=w, tr=tr)
    return jnp.transpose(out[..., :out_size], (0, 3, 1, 2))   # back to NCHW


# ----------------------------------------------------------------------------
# Pure-JAX f32 reference (for correctness check)
# ----------------------------------------------------------------------------
def _ref_conv_bn_relu(x_nhwc, w_oihw, b, scale, shift):
    w_hwio = jnp.transpose(w_oihw, (2, 3, 1, 0)).astype(jnp.float32)
    y = lax.conv_general_dilated(
        x_nhwc.astype(jnp.float32), w_hwio, (1, 1), ((1, 1), (1, 1)),
        dimension_numbers=("NHWC", "HWIO", "NHWC"))
    y = (y + b) * scale + shift
    return jnp.maximum(y, 0.0)


def ref_forward(params, inputs1, inputs2, inputs3, inputs4, inputs5, bn):
    scale, shift = _bn_affine(params, bn)
    x1 = maxpool(_to_nhwc(inputs1), 4)
    x2 = maxpool(_to_nhwc(inputs2), 2)
    x3 = _to_nhwc(inputs3)
    x4 = bilinear_up(_to_nhwc(inputs4), 2)
    x5 = bilinear_up(_to_nhwc(inputs5), 4)
    h1 = _ref_conv_bn_relu(x1, params["w1"], params["b1"], scale, shift)
    h2 = _ref_conv_bn_relu(x2, params["w2"], params["b2"], scale, shift)
    h3 = _ref_conv_bn_relu(x3, params["w3"], params["b3"], scale, shift)
    h4 = _ref_conv_bn_relu(x4, params["w4"], params["b4"], scale, shift)
    h5 = _ref_conv_bn_relu(x5, params["w5"], params["b5"], scale, shift)
    hcat = jnp.concatenate([h1, h2, h3, h4, h5], axis=-1)
    out = _ref_conv_bn_relu(hcat, params["wf"], params["bf"], scale, shift)
    return jnp.transpose(out, (0, 3, 1, 2))


# ----------------------------------------------------------------------------
# Deterministic parameter construction
# ----------------------------------------------------------------------------
def make_params(filters, out_size, key):
    keys = jax.random.split(key, 20)
    # conv1..conv5 input channels per unetUp3 (conv4 takes out_size channels),
    # final conv takes filters[0]*5 channels.
    cins = [filters[0], filters[1], filters[2], out_size, filters[4],
            filters[0] * 5]
    names = ["1", "2", "3", "4", "5", "f"]
    params = {}
    for i, (cin, nm) in enumerate(zip(cins, names)):
        params["w" + nm] = 0.1 * jax.random.normal(
            keys[2 * i], (out_size, cin, 3, 3), jnp.float32)
        params["b" + nm] = 0.1 * jax.random.normal(
            keys[2 * i + 1], (out_size,), jnp.float32)
    params["bn_gamma"] = 1.0 + 0.1 * jax.random.normal(keys[12], (out_size,), jnp.float32)
    params["bn_beta"] = 0.1 * jax.random.normal(keys[13], (out_size,), jnp.float32)
    params["bn_mean"] = 0.1 * jax.random.normal(keys[14], (out_size,), jnp.float32)
    params["bn_var"] = 0.5 + jnp.abs(jax.random.normal(keys[15], (out_size,), jnp.float32)) * 0.5
    return params


if __name__ == "__main__":
    # filters[0] must equal out_size so that the concat of five out_size-wide
    # maps matches the final conv's filters[0]*5 input channels (as the
    # PyTorch module requires).  filters[3] is unused by unetUp3.
    filters = [4, 6, 8, 10, 12]
    out_size = 4
    batch = 2
    base = 8  # spatial size where all five branches meet

    key = jax.random.PRNGKey(0)
    kp, k1, k2, k3, k4, k5 = jax.random.split(key, 6)
    params = make_params(filters, out_size, kp)

    inputs1 = jax.random.normal(k1, (batch, filters[0], base * 4, base * 4), jnp.float32)
    inputs2 = jax.random.normal(k2, (batch, filters[1], base * 2, base * 2), jnp.float32)
    inputs3 = jax.random.normal(k3, (batch, filters[2], base, base), jnp.float32)
    inputs4 = jax.random.normal(k4, (batch, out_size, base // 2, base // 2), jnp.float32)
    inputs5 = jax.random.normal(k5, (batch, filters[4], base // 4, base // 4), jnp.float32)

    fwd = jax.jit(unet_up3_forward, static_argnames=("bn",))
    out_bn = fwd(params, inputs1, inputs2, inputs3, inputs4, inputs5, bn=True)
    out_nobn = fwd(params, inputs1, inputs2, inputs3, inputs4, inputs5, bn=False)
    jax.block_until_ready((out_bn, out_nobn))

    assert out_bn.shape == (batch, out_size, base, base)
    assert out_nobn.shape == (batch, out_size, base, base)

    # Correctness vs a pure-JAX f32 reference: absolute and relative checks
    # (tolerances cover the bf16 MXU operands / bf16 slab intermediate).
    ref_bn = ref_forward(params, inputs1, inputs2, inputs3, inputs4, inputs5, True)
    ref_nobn = ref_forward(params, inputs1, inputs2, inputs3, inputs4, inputs5, False)

    def _check(a, b):
        max_abs = float(jnp.max(jnp.abs(a - b)))
        rel = float(jnp.linalg.norm((a - b).ravel())
                    / (jnp.linalg.norm(b.ravel()) + 1e-9))
        assert max_abs < 0.2, f"max abs err {max_abs}"
        assert rel < 0.05, f"rel err {rel}"

    _check(out_bn, ref_bn)
    _check(out_nobn, ref_nobn)

    print("KERNEL_OK")
</pallas_src>

<mosaic_0001>
module attributes {stable_mosaic.version = 11 : i64} {
  func.func @_fused_two_conv_kernel(%arg0: i32, %arg1: i32, %arg2: memref<2x12x16x128xbf16, #tpu.memory_space<any>>, %arg3: memref<9x128x128xbf16, #tpu.memory_space<vmem>>, %arg4: memref<1x128xf32, #tpu.memory_space<vmem>>, %arg5: memref<9x128x128xbf16, #tpu.memory_space<vmem>>, %arg6: memref<1x128xf32, #tpu.memory_space<vmem>>, %arg7: memref<1x8x8x128xf32, #tpu.memory_space<vmem>>, %arg8: memref<12x16x128xbf16, #tpu.memory_space<vmem>>, %arg9: memref<10x16x128xbf16, #tpu.memory_space<vmem>>, %arg10: memref<1x!tpu.dma_semaphore, #tpu.memory_space<semaphore_mem>>) attributes {dimension_semantics = [#tpu.dimension_semantics<parallel>, #tpu.dimension_semantics<parallel>], iteration_bounds = array<i64: 2, 1>, scalar_prefetch = 0 : i64, scratch_operands = 3 : i64, tpu.core_type = #tpu.core_type<tc>, window_params = [{}, {pipeline_mode = #tpu.pipeline_mode<synchronous>, transform_indices = @transform_1, window_bounds = array<i64: 9, 128, 128>}, {pipeline_mode = #tpu.pipeline_mode<synchronous>, transform_indices = @transform_2, window_bounds = array<i64: 1, 128>}, {pipeline_mode = #tpu.pipeline_mode<synchronous>, transform_indices = @transform_3, window_bounds = array<i64: 9, 128, 128>}, {pipeline_mode = #tpu.pipeline_mode<synchronous>, transform_indices = @transform_4, window_bounds = array<i64: 1, 128>}, {transform_indices = @transform_5, window_bounds = array<i64: 1, 8, 8, 128>}]} {
    %c8_i32 = arith.constant 8 : i32
    %0 = arith.muli %arg1, %c8_i32 : i32
    %c0_i32 = arith.constant 0 : i32
    %c0_i32_0 = arith.constant 0 : i32
    %c0_i32_1 = arith.constant 0 : i32
    %1 = tpu.memref_slice %arg2[%arg0, %0, %c0_i32_0, %c0_i32_1] : memref<2x12x16x128xbf16, #tpu.memory_space<any>> -> memref<1x12x16x128xbf16, #tpu.memory_space<any>>
    %2 = tpu.memref_squeeze %1 : memref<1x12x16x128xbf16, #tpu.memory_space<any>> -> memref<12x16x128xbf16, #tpu.memory_space<any>>
    %3 = tpu.memref_slice %arg10[%c0_i32] : memref<1x!tpu.dma_semaphore, #tpu.memory_space<semaphore_mem>> -> memref<1x!tpu.dma_semaphore, #tpu.memory_space<semaphore_mem>>
    %4 = tpu.memref_squeeze %3 : memref<1x!tpu.dma_semaphore, #tpu.memory_space<semaphore_mem>> -> memref<!tpu.dma_semaphore, #tpu.memory_space<semaphore_mem>>
    tpu.enqueue_dma source(%2 : memref<12x16x128xbf16, #tpu.memory_space<any>>) target(%arg8 : memref<12x16x128xbf16, #tpu.memory_space<vmem>>) target_semaphore(%4 : memref<!tpu.dma_semaphore, #tpu.memory_space<semaphore_mem>>)
    %c0_i32_2 = arith.constant 0 : i32
    %c0_i32_3 = arith.constant 0 : i32
    %c0_i32_4 = arith.constant 0 : i32
    %5 = tpu.memref_slice %arg2[%arg0, %0, %c0_i32_3, %c0_i32_4] : memref<2x12x16x128xbf16, #tpu.memory_space<any>> -> memref<1x12x16x128xbf16, #tpu.memory_space<any>>
    %6 = tpu.memref_squeeze %5 : memref<1x12x16x128xbf16, #tpu.memory_space<any>> -> memref<12x16x128xbf16, #tpu.memory_space<any>>
    %7 = tpu.memref_slice %arg10[%c0_i32_2] : memref<1x!tpu.dma_semaphore, #tpu.memory_space<semaphore_mem>> -> memref<1x!tpu.dma_semaphore, #tpu.memory_space<semaphore_mem>>
    %8 = tpu.memref_squeeze %7 : memref<1x!tpu.dma_semaphore, #tpu.memory_space<semaphore_mem>> -> memref<!tpu.dma_semaphore, #tpu.memory_space<semaphore_mem>>
    tpu.wait_dma2 semaphore(%8 : memref<!tpu.dma_semaphore, #tpu.memory_space<semaphore_mem>>) src(%6 : memref<12x16x128xbf16, #tpu.memory_space<any>>) dst(%arg8 : memref<12x16x128xbf16, #tpu.memory_space<vmem>>)
    %cst = arith.constant 0.000000e+00 : f32
    %9 = vector.broadcast %cst : f32 to vector<10x8x128xf32>
    %c0 = arith.constant 0 : index
    %c0_5 = arith.constant 0 : index
    %c0_6 = arith.constant 0 : index
    %10 = vector.load %arg8[%c0, %c0_5, %c0_6] : memref<12x16x128xbf16, #tpu.memory_space<vmem>>, vector<10x16x128xbf16>
    %11 = vector.shape_cast %10 : vector<10x16x128xbf16> to vector<160x128xbf16>
    %c0_7 = arith.constant 0 : index
    %c0_8 = arith.constant 0 : index
    %c0_9 = arith.constant 0 : index
    %12 = vector.load %arg3[%c0_7, %c0_8, %c0_9] : memref<9x128x128xbf16, #tpu.memory_space<vmem>>, vector<1x128x128xbf16>
    %13 = vector.shape_cast %12 : vector<1x128x128xbf16> to vector<128x128xbf16>
    %cst_10 = arith.constant dense<0.000000e+00> : vector<160x128xf32>
    %14 = tpu.matmul %11, %13, %cst_10 {dimension_numbers = #tpu.dot_dimension_numbers<[1], [0], [0], [1], [0, 0, 1, 1], [], []>} : vector<160x128xbf16>, vector<128x128xbf16>, vector<160x128xf32> -> vector<160x128xf32>
    %15 = vector.shape_cast %14 : vector<160x128xf32> to vector<10x16x128xf32>
    %16 = vector.extract_strided_slice %15 {offsets = [0, 0, 0], sizes = [10, 8, 128], strides = [1, 1, 1]} : vector<10x16x128xf32> to vector<10x8x128xf32>
    %17 = arith.addf %9, %16 : vector<10x8x128xf32>
    %c1 = arith.constant 1 : index
    %c0_11 = arith.constant 0 : index
    %c0_12 = arith.constant 0 : index
    %18 = vector.load %arg3[%c1, %c0_11, %c0_12] : memref<9x128x128xbf16, #tpu.memory_space<vmem>>, vector<1x128x128xbf16>
    %19 = vector.shape_cast %18 : vector<1x128x128xbf16> to vector<128x128xbf16>
    %cst_13 = arith.constant dense<0.000000e+00> : vector<160x128xf32>
    %20 = tpu.matmul %11, %19, %cst_13 {dimension_numbers = #tpu.dot_dimension_numbers<[1], [0], [0], [1], [0, 0, 1, 1], [], []>} : vector<160x128xbf16>, vector<128x128xbf16>, vector<160x128xf32> -> vector<160x128xf32>
    %21 = vector.shape_cast %20 : vector<160x128xf32> to vector<10x16x128xf32>
    %22 = vector.extract_strided_slice %21 {offsets = [0, 1, 0], sizes = [10, 8, 128], strides = [1, 1, 1]} : vector<10x16x128xf32> to vector<10x8x128xf32>
    %23 = arith.addf %17, %22 : vector<10x8x128xf32>
    %c2 = arith.constant 2 : index
    %c0_14 = arith.constant 0 : index
    %c0_15 = arith.constant 0 : index
    %24 = vector.load %arg3[%c2, %c0_14, %c0_15] : memref<9x128x128xbf16, #tpu.memory_space<vmem>>, vector<1x128x128xbf16>
    %25 = vector.shape_cast %24 : vector<1x128x128xbf16> to vector<128x128xbf16>
    %cst_16 = arith.constant dense<0.000000e+00> : vector<160x128xf32>
    %26 = tpu.matmul %11, %25, %cst_16 {dimension_numbers = #tpu.dot_dimension_numbers<[1], [0], [0], [1], [0, 0, 1, 1], [], []>} : vector<160x128xbf16>, vector<128x128xbf16>, vector<160x128xf32> -> vector<160x128xf32>
    %27 = vector.shape_cast %26 : vector<160x128xf32> to vector<10x16x128xf32>
    %28 = vector.extract_strided_slice %27 {offsets = [0, 2, 0], sizes = [10, 8, 128], strides = [1, 1, 1]} : vector<10x16x128xf32> to vector<10x8x128xf32>
    %29 = arith.addf %23, %28 : vector<10x8x128xf32>
    %c1_17 = arith.constant 1 : index
    %c0_18 = arith.constant 0 : index
    %c0_19 = arith.constant 0 : index
    %30 = vector.load %arg8[%c1_17, %c0_18, %c0_19] : memref<12x16x128xbf16, #tpu.memory_space<vmem>>, vector<10x16x128xbf16>
    %31 = vector.shape_cast %30 : vector<10x16x128xbf16> to vector<160x128xbf16>
    %c3 = arith.constant 3 : index
    %c0_20 = arith.constant 0 : index
    %c0_21 = arith.constant 0 : index
    %32 = vector.load %arg3[%c3, %c0_20, %c0_21] : memref<9x128x128xbf16, #tpu.memory_space<vmem>>, vector<1x128x128xbf16>
    %33 = vector.shape_cast %32 : vector<1x128x128xbf16> to vector<128x128xbf16>
    %cst_22 = arith.constant dense<0.000000e+00> : vector<160x128xf32>
    %34 = tpu.matmul %31, %33, %cst_22 {dimension_numbers = #tpu.dot_dimension_numbers<[1], [0], [0], [1], [0, 0, 1, 1], [], []>} : vector<160x128xbf16>, vector<128x128xbf16>, vector<160x128xf32> -> vector<160x128xf32>
    %35 = vector.shape_cast %34 : vector<160x128xf32> to vector<10x16x128xf32>
    %36 = vector.extract_strided_slice %35 {offsets = [0, 0, 0], sizes = [10, 8, 128], strides = [1, 1, 1]} : vector<10x16x128xf32> to vector<10x8x128xf32>
    %37 = arith.addf %29, %36 : vector<10x8x128xf32>
    %c4 = arith.constant 4 : index
    %c0_23 = arith.constant 0 : index
    %c0_24 = arith.constant 0 : index
    %38 = vector.load %arg3[%c4, %c0_23, %c0_24] : memref<9x128x128xbf16, #tpu.memory_space<vmem>>, vector<1x128x128xbf16>
    %39 = vector.shape_cast %38 : vector<1x128x128xbf16> to vector<128x128xbf16>
    %cst_25 = arith.constant dense<0.000000e+00> : vector<160x128xf32>
    %40 = tpu.matmul %31, %39, %cst_25 {dimension_numbers = #tpu.dot_dimension_numbers<[1], [0], [0], [1], [0, 0, 1, 1], [], []>} : vector<160x128xbf16>, vector<128x128xbf16>, vector<160x128xf32> -> vector<160x128xf32>
    %41 = vector.shape_cast %40 : vector<160x128xf32> to vector<10x16x128xf32>
    %42 = vector.extract_strided_slice %41 {offsets = [0, 1, 0], sizes = [10, 8, 128], strides = [1, 1, 1]} : vector<10x16x128xf32> to vector<10x8x128xf32>
    %43 = arith.addf %37, %42 : vector<10x8x128xf32>
    %c5 = arith.constant 5 : index
    %c0_26 = arith.constant 0 : index
    %c0_27 = arith.constant 0 : index
    %44 = vector.load %arg3[%c5, %c0_26, %c0_27] : memref<9x128x128xbf16, #tpu.memory_space<vmem>>, vector<1x128x128xbf16>
    %45 = vector.shape_cast %44 : vector<1x128x128xbf16> to vector<128x128xbf16>
    %cst_28 = arith.constant dense<0.000000e+00> : vector<160x128xf32>
    %46 = tpu.matmul %31, %45, %cst_28 {dimension_numbers = #tpu.dot_dimension_numbers<[1], [0], [0], [1], [0, 0, 1, 1], [], []>} : vector<160x128xbf16>, vector<128x128xbf16>, vector<160x128xf32> -> vector<160x128xf32>
    %47 = vector.shape_cast %46 : vector<160x128xf32> to vector<10x16x128xf32>
    %48 = vector.extract_strided_slice %47 {offsets = [0, 2, 0], sizes = [10, 8, 128], strides = [1, 1, 1]} : vector<10x16x128xf32> to vector<10x8x128xf32>
    %49 = arith.addf %43, %48 : vector<10x8x128xf32>
    %c2_29 = arith.constant 2 : index
    %c0_30 = arith.constant 0 : index
    %c0_31 = arith.constant 0 : index
    %50 = vector.load %arg8[%c2_29, %c0_30, %c0_31] : memref<12x16x128xbf16, #tpu.memory_space<vmem>>, vector<10x16x128xbf16>
    %51 = vector.shape_cast %50 : vector<10x16x128xbf16> to vector<160x128xbf16>
    %c6 = arith.constant 6 : index
    %c0_32 = arith.constant 0 : index
    %c0_33 = arith.constant 0 : index
    %52 = vector.load %arg3[%c6, %c0_32, %c0_33] : memref<9x128x128xbf16, #tpu.memory_space<vmem>>, vector<1x128x128xbf16>
    %53 = vector.shape_cast %52 : vector<1x128x128xbf16> to vector<128x128xbf16>
    %cst_34 = arith.constant dense<0.000000e+00> : vector<160x128xf32>
    %54 = tpu.matmul %51, %53, %cst_34 {dimension_numbers = #tpu.dot_dimension_numbers<[1], [0], [0], [1], [0, 0, 1, 1], [], []>} : vector<160x128xbf16>, vector<128x128xbf16>, vector<160x128xf32> -> vector<160x128xf32>
    %55 = vector.shape_cast %54 : vector<160x128xf32> to vector<10x16x128xf32>
    %56 = vector.extract_strided_slice %55 {offsets = [0, 0, 0], sizes = [10, 8, 128], strides = [1, 1, 1]} : vector<10x16x128xf32> to vector<10x8x128xf32>
    %57 = arith.addf %49, %56 : vector<10x8x128xf32>
    %c7 = arith.constant 7 : index
    %c0_35 = arith.constant 0 : index
    %c0_36 = arith.constant 0 : index
    %58 = vector.load %arg3[%c7, %c0_35, %c0_36] : memref<9x128x128xbf16, #tpu.memory_space<vmem>>, vector<1x128x128xbf16>
    %59 = vector.shape_cast %58 : vector<1x128x128xbf16> to vector<128x128xbf16>
    %cst_37 = arith.constant dense<0.000000e+00> : vector<160x128xf32>
    %60 = tpu.matmul %51, %59, %cst_37 {dimension_numbers = #tpu.dot_dimension_numbers<[1], [0], [0], [1], [0, 0, 1, 1], [], []>} : vector<160x128xbf16>, vector<128x128xbf16>, vector<160x128xf32> -> vector<160x128xf32>
    %61 = vector.shape_cast %60 : vector<160x128xf32> to vector<10x16x128xf32>
    %62 = vector.extract_strided_slice %61 {offsets = [0, 1, 0], sizes = [10, 8, 128], strides = [1, 1, 1]} : vector<10x16x128xf32> to vector<10x8x128xf32>
    %63 = arith.addf %57, %62 : vector<10x8x128xf32>
    %c8 = arith.constant 8 : index
    %c0_38 = arith.constant 0 : index
    %c0_39 = arith.constant 0 : index
    %64 = vector.load %arg3[%c8, %c0_38, %c0_39] : memref<9x128x128xbf16, #tpu.memory_space<vmem>>, vector<1x128x128xbf16>
    %65 = vector.shape_cast %64 : vector<1x128x128xbf16> to vector<128x128xbf16>
    %cst_40 = arith.constant dense<0.000000e+00> : vector<160x128xf32>
    %66 = tpu.matmul %51, %65, %cst_40 {dimension_numbers = #tpu.dot_dimension_numbers<[1], [0], [0], [1], [0, 0, 1, 1], [], []>} : vector<160x128xbf16>, vector<128x128xbf16>, vector<160x128xf32> -> vector<160x128xf32>
    %67 = vector.shape_cast %66 : vector<160x128xf32> to vector<10x16x128xf32>
    %68 = vector.extract_strided_slice %67 {offsets = [0, 2, 0], sizes = [10, 8, 128], strides = [1, 1, 1]} : vector<10x16x128xf32> to vector<10x8x128xf32>
    %69 = arith.addf %63, %68 : vector<10x8x128xf32>
    %c0_41 = arith.constant 0 : index
    %c0_42 = arith.constant 0 : index
    %70 = vector.load %arg4[%c0_41, %c0_42] : memref<1x128xf32, #tpu.memory_space<vmem>>, vector<1x128xf32>
    %71 = vector.shape_cast %70 : vector<1x128xf32> to vector<1x1x128xf32>
    %72 = vector.broadcast %71 : vector<1x1x128xf32> to vector<10x8x128xf32>
    %73 = arith.addf %69, %72 : vector<10x8x128xf32>
    %cst_43 = arith.constant 0.000000e+00 : f32
    %74 = vector.broadcast %cst_43 : f32 to vector<10x8x128xf32>
    %75 = arith.maximumf %73, %74 : vector<10x8x128xf32>
    %76 = arith.truncf %75 : vector<10x8x128xf32> to vector<10x8x128xbf16>
    %c0_44 = arith.constant 0 : index
    %c1_45 = arith.constant 1 : index
    %c0_46 = arith.constant 0 : index
    %77 = vector.load %arg9[%c0_44, %c1_45, %c0_46] : memref<10x16x128xbf16, #tpu.memory_space<vmem>>, vector<10x8x128xbf16>
    tpu.vector_store %arg9[%c0_44, %c1_45, %c0_46], %76 {strides = array<i32>} : memref<10x16x128xbf16, #tpu.memory_space<vmem>>, vector<10x8x128xbf16>,
    %cst_47 = arith.constant 0.000000e+00 : bf16
    %78 = vector.broadcast %cst_47 : bf16 to vector<10x1x128xbf16>
    %c0_48 = arith.constant 0 : index
    %c0_49 = arith.constant 0 : index
    %c0_50 = arith.constant 0 : index
    %79 = vector.load %arg9[%c0_48, %c0_49, %c0_50] : memref<10x16x128xbf16, #tpu.memory_space<vmem>>, vector<10x1x128xbf16>
    tpu.vector_store %arg9[%c0_48, %c0_49, %c0_50], %78 {strides = array<i32>} : memref<10x16x128xbf16, #tpu.memory_space<vmem>>, vector<10x1x128xbf16>,
    %cst_51 = arith.constant 0.000000e+00 : bf16
    %80 = vector.broadcast %cst_51 : bf16 to vector<10x7x128xbf16>
    %c0_52 = arith.constant 0 : index
    %c9 = arith.constant 9 : index
    %c0_53 = arith.constant 0 : index
    %81 = vector.load %arg9[%c0_52, %c9, %c0_53] : memref<10x16x128xbf16, #tpu.memory_space<vmem>>, vector<10x7x128xbf16>
    tpu.vector_store %arg9[%c0_52, %c9, %c0_53], %80 {strides = array<i32>} : memref<10x16x128xbf16, #tpu.memory_space<vmem>>, vector<10x7x128xbf16>,
    %c0_i32_54 = arith.constant 0 : i32
    %82 = arith.cmpi eq, %arg1, %c0_i32_54 : i32
    %83 = arith.extui %82 : i1 to i32
    %c0_i32_55 = arith.constant 0 : i32
    %84 = arith.cmpi ne, %83, %c0_i32_55 : i32
    scf.if %84 {
      %cst_111 = arith.constant 0.000000e+00 : bf16
      %157 = vector.broadcast %cst_111 : bf16 to vector<1x16x128xbf16>
      %c0_112 = arith.constant 0 : index
      %c0_113 = arith.constant 0 : index
      %c0_114 = arith.constant 0 : index
      %158 = vector.load %arg9[%c0_112, %c0_113, %c0_114] : memref<10x16x128xbf16, #tpu.memory_space<vmem>>, vector<1x16x128xbf16>
      tpu.vector_store %arg9[%c0_112, %c0_113, %c0_114], %157 {strides = array<i32>} : memref<10x16x128xbf16, #tpu.memory_space<vmem>>, vector<1x16x128xbf16>,
    } else {
    }
    %c0_i32_56 = arith.constant 0 : i32
    %85 = arith.cmpi eq, %arg1, %c0_i32_56 : i32
    %86 = arith.extui %85 : i1 to i32
    %c0_i32_57 = arith.constant 0 : i32
    %87 = arith.cmpi ne, %86, %c0_i32_57 : i32
    scf.if %87 {
      %cst_111 = arith.constant 0.000000e+00 : bf16
      %157 = vector.broadcast %cst_111 : bf16 to vector<1x16x128xbf16>
      %c9_112 = arith.constant 9 : index
      %c0_113 = arith.constant 0 : index
      %c0_114 = arith.constant 0 : index
      %158 = vector.load %arg9[%c9_112, %c0_113, %c0_114] : memref<10x16x128xbf16, #tpu.memory_space<vmem>>, vector<1x16x128xbf16>
      tpu.vector_store %arg9[%c9_112, %c0_113, %c0_114], %157 {strides = array<i32>} : memref<10x16x128xbf16, #tpu.memory_space<vmem>>, vector<1x16x128xbf16>,
    } else {
    }
    %cst_58 = arith.constant 0.000000e+00 : f32
    %88 = vector.broadcast %cst_58 : f32 to vector<8x8x128xf32>
    %c0_59 = arith.constant 0 : index
    %c0_60 = arith.constant 0 : index
    %c0_61 = arith.constant 0 : index
    %89 = vector.load %arg9[%c0_59, %c0_60, %c0_61] : memref<10x16x128xbf16, #tpu.memory_space<vmem>>, vector<8x16x128xbf16>
    %90 = vector.shape_cast %89 : vector<8x16x128xbf16> to vector<128x128xbf16>
    %c0_62 = arith.constant 0 : index
    %c0_63 = arith.constant 0 : index
    %c0_64 = arith.constant 0 : index
    %91 = vector.load %arg5[%c0_62, %c0_63, %c0_64] : memref<9x128x128xbf16, #tpu.memory_space<vmem>>, vector<1x128x128xbf16>
    %92 = vector.shape_cast %91 : vector<1x128x128xbf16> to vector<128x128xbf16>
    %cst_65 = arith.constant dense<0.000000e+00> : vector<128x128xf32>
    %93 = tpu.matmul %90, %92, %cst_65 {dimension_numbers = #tpu.dot_dimension_numbers<[1], [0], [0], [1], [0, 0, 1, 1], [], []>} : vector<128x128xbf16>, vector<128x128xbf16>, vector<128x128xf32> -> vector<128x128xf32>
    %94 = vector.shape_cast %93 : vector<128x128xf32> to vector<8x16x128xf32>
    %95 = vector.extract_strided_slice %94 {offsets = [0, 0, 0], sizes = [8, 8, 128], strides = [1, 1, 1]} : vector<8x16x128xf32> to vector<8x8x128xf32>
    %96 = arith.addf %88, %95 : vector<8x8x128xf32>
    %c1_66 = arith.constant 1 : index
    %c0_67 = arith.constant 0 : index
    %c0_68 = arith.constant 0 : index
    %97 = vector.load %arg5[%c1_66, %c0_67, %c0_68] : memref<9x128x128xbf16, #tpu.memory_space<vmem>>, vector<1x128x128xbf16>
    %98 = vector.shape_cast %97 : vector<1x128x128xbf16> to vector<128x128xbf16>
    %cst_69 = arith.constant dense<0.000000e+00> : vector<128x128xf32>
    %99 = tpu.matmul %90, %98, %cst_69 {dimension_numbers = #tpu.dot_dimension_numbers<[1], [0], [0], [1], [0, 0, 1, 1], [], []>} : vector<128x128xbf16>, vector<128x128xbf16>, vector<128x128xf32> -> vector<128x128xf32>
    %100 = vector.shape_cast %99 : vector<128x128xf32> to vector<8x16x128xf32>
    %101 = vector.extract_strided_slice %100 {offsets = [0, 1, 0], sizes = [8, 8, 128], strides = [1, 1, 1]} : vector<8x16x128xf32> to vector<8x8x128xf32>
    %102 = arith.addf %96, %101 : vector<8x8x128xf32>
    %c2_70 = arith.constant 2 : index
    %c0_71 = arith.constant 0 : index
    %c0_72 = arith.constant 0 : index
    %103 = vector.load %arg5[%c2_70, %c0_71, %c0_72] : memref<9x128x128xbf16, #tpu.memory_space<vmem>>, vector<1x128x128xbf16>
    %104 = vector.shape_cast %103 : vector<1x128x128xbf16> to vector<128x128xbf16>
    %cst_73 = arith.constant dense<0.000000e+00> : vector<128x128xf32>
    %105 = tpu.matmul %90, %104, %cst_73 {dimension_numbers = #tpu.dot_dimension_numbers<[1], [0], [0], [1], [0, 0, 1, 1], [], []>} : vector<128x128xbf16>, vector<128x128xbf16>, vector<128x128xf32> -> vector<128x128xf32>
    %106 = vector.shape_cast %105 : vector<128x128xf32> to vector<8x16x128xf32>
    %107 = vector.extract_strided_slice %106 {offsets = [0, 2, 0], sizes = [8, 8, 128], strides = [1, 1, 1]} : vector<8x16x128xf32> to vector<8x8x128xf32>
    %108 = arith.addf %102, %107 : vector<8x8x128xf32>
    %c1_74 = arith.constant 1 : index
    %c0_75 = arith.constant 0 : index
    %c0_76 = arith.constant 0 : index
    %109 = vector.load %arg9[%c1_74, %c0_75, %c0_76] : memref<10x16x128xbf16, #tpu.memory_space<vmem>>, vector<8x16x128xbf16>
    %110 = vector.shape_cast %109 : vector<8x16x128xbf16> to vector<128x128xbf16>
    %c3_77 = arith.constant 3 : index
    %c0_78 = arith.constant 0 : index
    %c0_79 = arith.constant 0 : index
    %111 = vector.load %arg5[%c3_77, %c0_78, %c0_79] : memref<9x128x128xbf16, #tpu.memory_space<vmem>>, vector<1x128x128xbf16>
    %112 = vector.shape_cast %111 : vector<1x128x128xbf16> to vector<128x128xbf16>
    %cst_80 = arith.constant dense<0.000000e+00> : vector<128x128xf32>
    %113 = tpu.matmul %110, %112, %cst_80 {dimension_numbers = #tpu.dot_dimension_numbers<[1], [0], [0], [1], [0, 0, 1, 1], [], []>} : vector<128x128xbf16>, vector<128x128xbf16>, vector<128x128xf32> -> vector<128x128xf32>
    %114 = vector.shape_cast %113 : vector<128x128xf32> to vector<8x16x128xf32>
    %115 = vector.extract_strided_slice %114 {offsets = [0, 0, 0], sizes = [8, 8, 128], strides = [1, 1, 1]} : vector<8x16x128xf32> to vector<8x8x128xf32>
    %116 = arith.addf %108, %115 : vector<8x8x128xf32>
    %c4_81 = arith.constant 4 : index
    %c0_82 = arith.constant 0 : index
    %c0_83 = arith.constant 0 : index
    %117 = vector.load %arg5[%c4_81, %c0_82, %c0_83] : memref<9x128x128xbf16, #tpu.memory_space<vmem>>, vector<1x128x128xbf16>
    %118 = vector.shape_cast %117 : vector<1x128x128xbf16> to vector<128x128xbf16>
    %cst_84 = arith.constant dense<0.000000e+00> : vector<128x128xf32>
    %119 = tpu.matmul %110, %118, %cst_84 {dimension_numbers = #tpu.dot_dimension_numbers<[1], [0], [0], [1], [0, 0, 1, 1], [], []>} : vector<128x128xbf16>, vector<128x128xbf16>, vector<128x128xf32> -> vector<128x128xf32>
    %120 = vector.shape_cast %119 : vector<128x128xf32> to vector<8x16x128xf32>
    %121 = vector.extract_strided_slice %120 {offsets = [0, 1, 0], sizes = [8, 8, 128], strides = [1, 1, 1]} : vector<8x16x128xf32> to vector<8x8x128xf32>
    %122 = arith.addf %116, %121 : vector<8x8x128xf32>
    %c5_85 = arith.constant 5 : index
    %c0_86 = arith.constant 0 : index
    %c0_87 = arith.constant 0 : index
    %123 = vector.load %arg5[%c5_85, %c0_86, %c0_87] : memref<9x128x128xbf16, #tpu.memory_space<vmem>>, vector<1x128x128xbf16>
    %124 = vector.shape_cast %123 : vector<1x128x128xbf16> to vector<128x128xbf16>
    %cst_88 = arith.constant dense<0.000000e+00> : vector<128x128xf32>
    %125 = tpu.matmul %110, %124, %cst_88 {dimension_numbers = #tpu.dot_dimension_numbers<[1], [0], [0], [1], [0, 0, 1, 1], [], []>} : vector<128x128xbf16>, vector<128x128xbf16>, vector<128x128xf32> -> vector<128x128xf32>
    %126 = vector.shape_cast %125 : vector<128x128xf32> to vector<8x16x128xf32>
    %127 = vector.extract_strided_slice %126 {offsets = [0, 2, 0], sizes = [8, 8, 128], strides = [1, 1, 1]} : vector<8x16x128xf32> to vector<8x8x128xf32>
    %128 = arith.addf %122, %127 : vector<8x8x128xf32>
    %c2_89 = arith.constant 2 : index
    %c0_90 = arith.constant 0 : index
    %c0_91 = arith.constant 0 : index
    %129 = vector.load %arg9[%c2_89, %c0_90, %c0_91] : memref<10x16x128xbf16, #tpu.memory_space<vmem>>, vector<8x16x128xbf16>
    %130 = vector.shape_cast %129 : vector<8x16x128xbf16> to vector<128x128xbf16>
    %c6_92 = arith.constant 6 : index
    %c0_93 = arith.constant 0 : index
    %c0_94 = arith.constant 0 : index
    %131 = vector.load %arg5[%c6_92, %c0_93, %c0_94] : memref<9x128x128xbf16, #tpu.memory_space<vmem>>, vector<1x128x128xbf16>
    %132 = vector.shape_cast %131 : vector<1x128x128xbf16> to vector<128x128xbf16>
    %cst_95 = arith.constant dense<0.000000e+00> : vector<128x128xf32>
    %133 = tpu.matmul %130, %132, %cst_95 {dimension_numbers = #tpu.dot_dimension_numbers<[1], [0], [0], [1], [0, 0, 1, 1], [], []>} : vector<128x128xbf16>, vector<128x128xbf16>, vector<128x128xf32> -> vector<128x128xf32>
    %134 = vector.shape_cast %133 : vector<128x128xf32> to vector<8x16x128xf32>
    %135 = vector.extract_strided_slice %134 {offsets = [0, 0, 0], sizes = [8, 8, 128], strides = [1, 1, 1]} : vector<8x16x128xf32> to vector<8x8x128xf32>
    %136 = arith.addf %128, %135 : vector<8x8x128xf32>
    %c7_96 = arith.constant 7 : index
    %c0_97 = arith.constant 0 : index
    %c0_98 = arith.constant 0 : index
    %137 = vector.load %arg5[%c7_96, %c0_97, %c0_98] : memref<9x128x128xbf16, #tpu.memory_space<vmem>>, vector<1x128x128xbf16>
    %138 = vector.shape_cast %137 : vector<1x128x128xbf16> to vector<128x128xbf16>
    %cst_99 = arith.constant dense<0.000000e+00> : vector<128x128xf32>
    %139 = tpu.matmul %130, %138, %cst_99 {dimension_numbers = #tpu.dot_dimension_numbers<[1], [0], [0], [1], [0, 0, 1, 1], [], []>} : vector<128x128xbf16>, vector<128x128xbf16>, vector<128x128xf32> -> vector<128x128xf32>
    %140 = vector.shape_cast %139 : vector<128x128xf32> to vector<8x16x128xf32>
    %141 = vector.extract_strided_slice %140 {offsets = [0, 1, 0], sizes = [8, 8, 128], strides = [1, 1, 1]} : vector<8x16x128xf32> to vector<8x8x128xf32>
    %142 = arith.addf %136, %141 : vector<8x8x128xf32>
    %c8_100 = arith.constant 8 : index
    %c0_101 = arith.constant 0 : index
    %c0_102 = arith.constant 0 : index
    %143 = vector.load %arg5[%c8_100, %c0_101, %c0_102] : memref<9x128x128xbf16, #tpu.memory_space<vmem>>, vector<1x128x128xbf16>
    %144 = vector.shape_cast %143 : vector<1x128x128xbf16> to vector<128x128xbf16>
    %cst_103 = arith.constant dense<0.000000e+00> : vector<128x128xf32>
    %145 = tpu.matmul %130, %144, %cst_103 {dimension_numbers = #tpu.dot_dimension_numbers<[1], [0], [0], [1], [0, 0, 1, 1], [], []>} : vector<128x128xbf16>, vector<128x128xbf16>, vector<128x128xf32> -> vector<128x128xf32>
    %146 = vector.shape_cast %145 : vector<128x128xf32> to vector<8x16x128xf32>
    %147 = vector.extract_strided_slice %146 {offsets = [0, 2, 0], sizes = [8, 8, 128], strides = [1, 1, 1]} : vector<8x16x128xf32> to vector<8x8x128xf32>
    %148 = arith.addf %142, %147 : vector<8x8x128xf32>
    %c0_104 = arith.constant 0 : index
    %c0_105 = arith.constant 0 : index
    %149 = vector.load %arg6[%c0_104, %c0_105] : memref<1x128xf32, #tpu.memory_space<vmem>>, vector<1x128xf32>
    %150 = vector.shape_cast %149 : vector<1x128xf32> to vector<1x1x128xf32>
    %151 = vector.broadcast %150 : vector<1x1x128xf32> to vector<8x8x128xf32>
    %152 = arith.addf %148, %151 : vector<8x8x128xf32>
    %cst_106 = arith.constant 0.000000e+00 : f32
    %153 = vector.broadcast %cst_106 : f32 to vector<8x8x128xf32>
    %154 = arith.maximumf %152, %153 : vector<8x8x128xf32>
    %155 = vector.shape_cast %154 : vector<8x8x128xf32> to vector<1x8x8x128xf32>
    %c0_107 = arith.constant 0 : index
    %c0_108 = arith.constant 0 : index
    %c0_109 = arith.constant 0 : index
    %c0_110 = arith.constant 0 : index
    %156 = vector.load %arg7[%c0_107, %c0_108, %c0_109, %c0_110] : memref<1x8x8x128xf32, #tpu.memory_space<vmem>>, vector<1x8x8x128xf32>
    tpu.vector_store %arg7[%c0_107, %c0_108, %c0_109, %c0_110], %155 {strides = array<i32>} : memref<1x8x8x128xf32, #tpu.memory_space<vmem>>, vector<1x8x8x128xf32>,
    return
  }
  func.func @transform_1(%arg0: i32, %arg1: i32) -> (i32, i32, i32) {
    %c0_i32 = arith.constant 0 : i32
    %c0_i32_0 = arith.constant 0 : i32
    %c0_i32_1 = arith.constant 0 : i32
    %c0_i32_2 = arith.constant 0 : i32
    return %c0_i32, %c0_i32_0, %c0_i32_1 : i32, i32, i32
  }
  func.func @transform_2(%arg0: i32, %arg1: i32) -> (i32, i32) {
    %c0_i32 = arith.constant 0 : i32
    %c0_i32_0 = arith.constant 0 : i32
    %c0_i32_1 = arith.constant 0 : i32
    return %c0_i32, %c0_i32_0 : i32, i32
  }
  func.func @transform_3(%arg0: i32, %arg1: i32) -> (i32, i32, i32) {
    %c0_i32 = arith.constant 0 : i32
    %c0_i32_0 = arith.constant 0 : i32
    %c0_i32_1 = arith.constant 0 : i32
    %c0_i32_2 = arith.constant 0 : i32
    return %c0_i32, %c0_i32_0, %c0_i32_1 : i32, i32, i32
  }
  func.func @transform_4(%arg0: i32, %arg1: i32) -> (i32, i32) {
    %c0_i32 = arith.constant 0 : i32
    %c0_i32_0 = arith.constant 0 : i32
    %c0_i32_1 = arith.constant 0 : i32
    return %c0_i32, %c0_i32_0 : i32, i32
  }
  func.func @transform_5(%arg0: i32, %arg1: i32) -> (i32, i32, i32, i32) {
    %c0_i32 = arith.constant 0 : i32
    %c0_i32_0 = arith.constant 0 : i32
    %c0_i32_1 = arith.constant 0 : i32
    return %arg0, %arg1, %c0_i32, %c0_i32_0 : i32, i32, i32, i32
  }
}

</mosaic_0001>

<bundles_post_ra>
// kernel: unet_up3_forward.1
= control target key start
LH: loop header
LB: loop body
LE: loop exit
PB: predicated region body
PF: predicated region fallthrough
CT: control target
= control target key end

     0   :  { %s6052_s18 = smov 0   ;;  %s6054_s19 = smov 0   ;;  %s7224_s0 = inlined_call_operand.vmem [shape: bf16[2,12,16,128], index: 0, kind: input, shape index: {}]   ;;  %s7225_s1 = inlined_call_operand.vmem [shape: bf16[9,128,128], index: 1, kind: input, shape index: {}]   ;;  %s7226_s2 = inlined_call_operand.vmem [shape: f32[1,128], index: 2, kind: input, shape index: {}]   ;;  %s7227_s3 = inlined_call_operand.vmem [shape: bf16[9,128,128], index: 3, kind: input, shape index: {}]   ;;  %s7228_s4 = inlined_call_operand.vmem [shape: f32[1,128], index: 4, kind: input, shape index: {}]   ;;  %s7229_s5 = inlined_call_operand.vmem [shape: f32[2,8,8,128], index: 5, kind: output, shape index: {}]  }
   0x1   :  { %s6056_s20 = smov 0  }
   0x2 LB: > { %s27_s21 = sadd.s32 1, %s6015_s19  ;;  %p4497_p0 = scmp.ge.s32.totalorder %s6019_s20, 1  ;;  %s6019_s20 = sphi %s6056_s20, %s15_s20   ;;  %s6015_s19 = sphi %s6054_s19, %s7237_s19   ;;  %s6011_s18 = sphi %s6052_s18, %s7236_s18  }
   0x3   : > { %p29_p1 = scmp.ge.s32.totalorder %s27_s21, 2  ;;  %p167_p2 = scmp.lt.s32.totalorder %s6019_s20, 3 }
   0x5   : > { %s7239_s21 = smov (%p29_p1, %s27_s21), 0  ;;  %p168_p3 = pnand %p4497_p0, %p167_p2 }
   0x6   : > { %p193_p4 = scmp.lt.s32.totalorder (!%p168_p3), %s6011_s18, 1  ;;  %s4907_s22 = smul.u32 (!%p168_p3), 96, %s6011_s18 }
   0x7   : > { %171 = sbr.rel (%p168_p3) target bundleno = 849 (0x351), region = 36 }
   0x8   : > { %s208_s25 = scalar_lea.vmem (!%p168_p3), %s7224_s0, %s4907_s22 }
   0x9   : > { %v6073_v0 = vld [vmem:[%s208_s25] sm:$0xff] (!%p168_p3)  ;;  %v6075_v1 = vld [vmem:[%s208_s25 + $0x8] sm:$0xff] (!%p168_p3)  ;;  %v6077_v2 = vld [vmem:[%s208_s25 + $0x10] sm:$0xff] (!%p168_p3) }
   0xa   : > { %v6084_v3 = vld [vmem:[%s208_s25 + $0x18] sm:$0xff] (!%p168_p3)  ;;  %v6086_v4 = vld [vmem:[%s208_s25 + $0x20] sm:$0xff] (!%p168_p3)  ;;  %v6088_v5 = vld [vmem:[%s208_s25 + $0x28] sm:$0xff] (!%p168_p3) }
   0xb   : > { %v6090_v6 = vld [vmem:[%s208_s25 + $0x30] sm:$0xff] (!%p168_p3)  ;;  %v6092_v7 = vld [vmem:[%s208_s25 + $0x38] sm:$0xff] (!%p168_p3)  ;;  %v6094_v8 = vld [vmem:[%s208_s25 + $0x40] sm:$0xff] (!%p168_p3) }
   0xc   : > { %v6096_v9 = vld [vmem:[%s208_s25 + $0x48] sm:$0xff] (!%p168_p3)  ;;  %v6098_v10 = vld [vmem:[%s208_s25 + $0x50] sm:$0xff] (!%p168_p3)  ;;  %v6100_v11 = vld [vmem:[%s208_s25 + $0x58] sm:$0xff] (!%p168_p3) }
   0xe   : > { %s7241_s18 = smov (!%p193_p4, %s6011_s18), 1 }
   0xf   : > { %s4906_s26 = sshll.u32 %s7241_s18, 6 }
  0x10   : > { %s6082_s29 = scalar_lea.vmem %s7229_s5, %s4906_s26 }
  0x11   : > { %272 = vsyncadd [#allocation4], 1536 }
  0x12   : > { %6007 = dma.done.wait [#allocation4], 1536 }
  0x13   : > { %6008 = vsyncadd [#allocation4], 4294965760  ;;  %5230 = vmatprep.mubr.bf16.mxu0 %v6073_v0  ;;  %5266 = vmatprep.mubr.bf16.mxu1 %v6073_v0  ;;  %v5851_v12 = vld [vmem:[%s7225_s1] sm:$0xff]   ;;  %v5853_v14 = vld [vmem:[%s7225_s1 + $0x8] sm:$0xff]   ;;  %vm663_vm0 = vcmask 1046528   ;;  %vm912_vm1 = vcmask 1045504  }
  0x14   : > { %v5852_v13 = vld [vmem:[%s7225_s1 + $0x40] sm:$0xff]   ;;  %5214 = vmatprep.subr.bf16.mxu0 %v5851_v12  ;;  %v5854_v15 = vld [vmem:[%s7225_s1 + $0x48] sm:$0xff]   ;;  %v5855_v16 = vld [vmem:[%s7225_s1 + $0x10] sm:$0xff]   ;;  %vm2450_vm2 = vcmask 1044480   ;;  %vm2451_vm3 = vsmask.f32 4354 }
  0x15   : > { %5250 = vmatprep.subr.bf16.mxu1 %v5852_v13  ;;  %5215 = vmatpush3.bf16.msra.mxu0 %v5851_v12  ;;  %v5856_v17 = vld [vmem:[%s7225_s1 + $0x50] sm:$0xff]   ;;  %v5857_v18 = vld [vmem:[%s7225_s1 + $0x18] sm:$0xff]   ;;  %v5859_v20 = vld [vmem:[%s7225_s1 + $0x20] sm:$0xff]   ;;  %vm2483_vm5 = vcmask 1040384   ;;  %vm2484_vm6 = vsmask.f32 256 }
  0x16   : > { %5251 = vmatpush3.bf16.msra.mxu1 %v5852_v13  ;;  %5216 = vmatprep.subr.bf16.mxu0 %v5853_v14  ;;  %v5858_v19 = vld [vmem:[%s7225_s1 + $0x58] sm:$0xff]   ;;  %v5860_v21 = vld [vmem:[%s7225_s1 + $0x60] sm:$0xff]   ;;  %v5861_v22 = vld [vmem:[%s7225_s1 + $0x28] sm:$0xff]   ;;  %vm2516_vm7 = vcmask 1047556   ;;  %vm2517_vm8 = vsmask.f32 7954 }
  0x17   : > { %5252 = vmatprep.subr.bf16.mxu1 %v5854_v15  ;;  %v5862_v23 = vld [vmem:[%s7225_s1 + $0x68] sm:$0xff]   ;;  %v5863_v24 = vld [vmem:[%s7225_s1 + $0x30] sm:$0xff]   ;;  %v5865_v26 = vld [vmem:[%s7225_s1 + $0x38] sm:$0xff]  }
  0x18   : > { %v5864_v25 = vld [vmem:[%s7225_s1 + $0x70] sm:$0xff]   ;;  %v5866_v27 = vld [vmem:[%s7225_s1 + $0x78] sm:$0xff]   ;;  %v5867_v28 = vld [vmem:[%s7225_s1 + $0x80] sm:$0xff]  }
  0x19   : > { %5217 = vmatpush3.bf16.msra.mxu0 %v5853_v14  ;;  %v5869_v29 = vld [vmem:[%s7225_s1 + $0xc0] sm:$0xff]   ;;  %v5868_v30 = vld [vmem:[%s7225_s1 + $0x88] sm:$0xff]   ;;  %v5870_v32 = vld [vmem:[%s7225_s1 + $0x90] sm:$0xff]  }
  0x1a   : > { %5253 = vmatpush3.bf16.msra.mxu1 %v5854_v15  ;;  %5218 = vmatprep.subr.bf16.mxu0 %v5855_v16  ;;  %v5871_v31 = vld [vmem:[%s7225_s1 + $0xc8] sm:$0xff]   ;;  %v5873_v33 = vld [vmem:[%s7225_s1 + $0xd0] sm:$0xff]   ;;  %v5872_v34 = vld [vmem:[%s7225_s1 + $0x98] sm:$0xff]  }
  0x1b   : > { %5254 = vmatprep.subr.bf16.mxu1 %v5856_v17  ;;  %v5875_v35 = vld [vmem:[%s7225_s1 + $0xd8] sm:$0xff]   ;;  %v5874_v36 = vld [vmem:[%s7225_s1 + $0xa0] sm:$0xff]   ;;  %v5877_v38 = vld [vmem:[%s7225_s1 + $0xa8] sm:$0xff]  }
  0x1c   : > { %v5876_v37 = vld [vmem:[%s7225_s1 + $0xe0] sm:$0xff]   ;;  %v5878_v39 = vld [vmem:[%s7225_s1 + $0xe8] sm:$0xff]   ;;  %v5879_v40 = vld [vmem:[%s7225_s1 + $0xb0] sm:$0xff]  }
  0x1d   : > { %5219 = vmatpush3.bf16.msra.mxu0 %v5855_v16  ;;  %v5880_v41 = vld [vmem:[%s7225_s1 + $0xf0] sm:$0xff]   ;;  %v5881_v42 = vld [vmem:[%s7225_s1 + $0xb8] sm:$0xff]   ;;  %v5883_v44 = vld [vmem:[%s7225_s1 + $0x100] sm:$0xff]  }
  0x1e   : > { %5255 = vmatpush3.bf16.msra.mxu1 %v5856_v17  ;;  %5220 = vmatprep.subr.bf16.mxu0 %v5857_v18  ;;  %v5882_v43 = vld [vmem:[%s7225_s1 + $0xf8] sm:$0xff]   ;;  %v5885_v45 = vld [vmem:[%s7225_s1 + $0x140] sm:$0xff]   ;;  %v5884_v46 = vld [vmem:[%s7225_s1 + $0x108] sm:$0xff]  }
  0x1f   : > { %5256 = vmatprep.subr.bf16.mxu1 %v5858_v19  ;;  %v5887_v47 = vld [vmem:[%s7225_s1 + $0x148] sm:$0xff]   ;;  %v5886_v48 = vld [vmem:[%s7225_s1 + $0x110] sm:$0xff]   ;;  %v5888_v50 = vld [vmem:[%s7225_s1 + $0x118] sm:$0xff]  }
  0x20   : > { %v5889_v49 = vld [vmem:[%s7225_s1 + $0x150] sm:$0xff]   ;;  %v5891_v51 = vld [vmem:[%s7225_s1 + $0x158] sm:$0xff]   ;;  %v5890_v52 = vld [vmem:[%s7225_s1 + $0x120] sm:$0xff]  }
  0x21   : > { %5221 = vmatpush3.bf16.msra.mxu0 %v5857_v18  ;;  %v5892_v53 = vld [vmem:[%s7225_s1 + $0x160] sm:$0xff]   ;;  %v5893_v54 = vld [vmem:[%s7225_s1 + $0x128] sm:$0xff]   ;;  %v5895_v56 = vld [vmem:[%s7225_s1 + $0x130] sm:$0xff]  }
  0x22   : > { %5257 = vmatpush3.bf16.msra.mxu1 %v5858_v19  ;;  %5222 = vmatprep.subr.bf16.mxu0 %v5859_v20  ;;  %v5894_v55 = vld [vmem:[%s7225_s1 + $0x168] sm:$0xff]   ;;  %v5896_v57 = vld [vmem:[%s7225_s1 + $0x170] sm:$0xff]   ;;  %v5897_v58 = vld [vmem:[%s7225_s1 + $0x138] sm:$0xff]  }
  0x23   : > { %5258 = vmatprep.subr.bf16.mxu1 %v5860_v21  ;;  %v5898_v59 = vld [vmem:[%s7225_s1 + $0x178] sm:$0xff]   ;;  %v5899_v60 = vld [vmem:[%s7225_s1 + $0x180] sm:$0xff]   ;;  %v5900_v62 = vld [vmem:[%s7225_s1 + $0x188] sm:$0xff]  }
  0x24   : > { %v5901_v61 = vld [vmem:[%s7225_s1 + $0x1c0] sm:$0xff]   ;;  %v5903_v63 = vld [vmem:[%s7225_s1 + $0x1c8] sm:$0xff]   ;;  %v5904_v12 = vld [vmem:[%s7225_s1 + $0x198] sm:$0xff]  }
  0x25   : > { %5223 = vmatpush3.bf16.msra.mxu0 %v5859_v20  ;;  %v5907_v13 = vld [vmem:[%s7225_s1 + $0x1d8] sm:$0xff]   ;;  %v5906_v14 = vld [vmem:[%s7225_s1 + $0x1a0] sm:$0xff]   ;;  %v5909_v16 = vld [vmem:[%s7225_s1 + $0x1a8] sm:$0xff]  }
  0x26   : > { %5259 = vmatpush3.bf16.msra.mxu1 %v5860_v21  ;;  %5224 = vmatprep.subr.bf16.mxu0 %v5861_v22  ;;  %v5908_v15 = vld [vmem:[%s7225_s1 + $0x1e0] sm:$0xff]   ;;  %v5910_v17 = vld [vmem:[%s7225_s1 + $0x1e8] sm:$0xff]   ;;  %v5911_v18 = vld [vmem:[%s7225_s1 + $0x1b0] sm:$0xff]  }
  0x27   : > { %5260 = vmatprep.subr.bf16.mxu1 %v5862_v23  ;;  %v5912_v19 = vld [vmem:[%s7225_s1 + $0x1f0] sm:$0xff]   ;;  %v5913_v20 = vld [vmem:[%s7225_s1 + $0x1b8] sm:$0xff]   ;;  %vm6646_vm4 = vmand %vm2450_vm2, %vm2451_vm3 }
  0x28   : > { %v5914_v21 = vld [vmem:[%s7225_s1 + $0x1f8] sm:$0xff]   ;;  %vm6661_vm9 = vmand %vm2483_vm5, %vm2484_vm6 }
  0x29   : > { %5225 = vmatpush3.bf16.msra.mxu0 %v5861_v22  ;;  %v5915_v22 = vld [vmem:[%s7225_s1 + $0x200] sm:$0xff]   ;;  %vm6666_vm10 = vmand %vm2516_vm7, %vm2517_vm8 }
  0x2a   : > { %5261 = vmatpush3.bf16.msra.mxu1 %v5862_v23  ;;  %5226 = vmatprep.subr.bf16.mxu0 %v5863_v24  ;;  %v5916_v23 = vld [vmem:[%s7225_s1 + $0x208] sm:$0xff]  }
  0x2b   : > { %5262 = vmatprep.subr.bf16.mxu1 %v5864_v25 }
  0x2d   : > { %5227 = vmatpush3.bf16.msra.mxu0 %v5863_v24  ;;  %v5917_v24 = vld [vmem:[%s7225_s1 + $0x210] sm:$0xff]  }
  0x2e   : > { %5263 = vmatpush3.bf16.msra.mxu1 %v5864_v25  ;;  %5228 = vmatprep.subr.bf16.mxu0 %v5865_v26  ;;  %v5918_v25 = vld [vmem:[%s7225_s1 + $0x218] sm:$0xff]  }
  0x2f   : > { %5264 = vmatprep.subr.bf16.mxu1 %v5866_v27 }
  0x31   : > { %5229 = vmatpush3.bf16.msra.mxu0 %v5865_v26  ;;  %v5919_v26 = vld [vmem:[%s7225_s1 + $0x220] sm:$0xff]  }
  0x32   : > { %5265 = vmatpush3.bf16.msra.mxu1 %v5866_v27  ;;  %5286 = vmatprep.subr.bf16.mxu0 %v5867_v28  ;;  %v5920_v27 = vld [vmem:[%s7225_s1 + $0x228] sm:$0xff]  }
  0x33   : > { %5322 = vmatprep.subr.bf16.mxu1 %v5869_v29 }
  0x34   : > { %5231 = vmatmul.mubr.bf16.vlgmr.msra.gmra.mrb[0].mxu0 %v6075_v1 }
  0x35   : > { %5267 = vmatmul.mubr.bf16.vlgmr.msra.gmra.mrb[0].mxu1 %v6075_v1  ;;  %5287 = vmatpush3.bf16.msra.mxu0 %v5867_v28  ;;  %v5921_v28 = vld [vmem:[%s7225_s1 + $0x230] sm:$0xff]  }
  0x36   : > { %5288 = vmatprep.subr.bf16.mxu0 %v5868_v30  ;;  %5234 = vmatprep.mubr.bf16.mxu0 %v6077_v2 }
  0x37   : > { %5270 = vmatprep.mubr.bf16.mxu1 %v6077_v2  ;;  %5323 = vmatpush3.bf16.msra.mxu1 %v5869_v29  ;;  %v5922_v29 = vld [vmem:[%s7225_s1 + $0x238] sm:$0xff]  }
  0x38   : > { %5324 = vmatprep.subr.bf16.mxu1 %v5871_v31 }
  0x39   : > { %5289 = vmatpush3.bf16.msra.mxu0 %v5868_v30 }
  0x3a   : > { %5290 = vmatprep.subr.bf16.mxu0 %v5870_v32 }
  0x3b   : > { %5325 = vmatpush3.bf16.msra.mxu1 %v5871_v31 }
  0x3c   : > { %5235 = vmatmul.mubr.bf16.gmra.mrb[4].mxu0 %v6084_v3  ;;  %5326 = vmatprep.subr.bf16.mxu1 %v5873_v33 }
  0x3d   : > { %5271 = vmatmul.mubr.bf16.gmra.mrb[4].mxu1 %v6084_v3  ;;  %5291 = vmatpush3.bf16.msra.mxu0 %v5870_v32 }
  0x3e   : > { %5238 = vmatprep.mubr.bf16.mxu0 %v6086_v4  ;;  %5274 = vmatprep.mubr.bf16.mxu1 %v6086_v4 }
  0x3f   : > { %5292 = vmatprep.subr.bf16.mxu0 %v5872_v34  ;;  %5327 = vmatpush3.bf16.msra.mxu1 %v5873_v33 }
  0x40   : > { %5328 = vmatprep.subr.bf16.mxu1 %v5875_v35 }
  0x41   : > { %5293 = vmatpush3.bf16.msra.mxu0 %v5872_v34 }
  0x42   : > { %5294 = vmatprep.subr.bf16.mxu0 %v5874_v36 }
  0x43   : > { %5329 = vmatpush3.bf16.msra.mxu1 %v5875_v35 }
  0x44   : > { %5239 = vmatmul.mubr.bf16.gmra.mrb[8].mxu0 %v6088_v5  ;;  %5330 = vmatprep.subr.bf16.mxu1 %v5876_v37 }
  0x45   : > { %5275 = vmatmul.mubr.bf16.gmra.mrb[8].mxu1 %v6088_v5  ;;  %5295 = vmatpush3.bf16.msra.mxu0 %v5874_v36 }
  0x46   : > { %5242 = vmatprep.mubr.bf16.mxu0 %v6090_v6  ;;  %5278 = vmatprep.mubr.bf16.mxu1 %v6090_v6 }
  0x47   : > { %5296 = vmatprep.subr.bf16.mxu0 %v5877_v38  ;;  %5331 = vmatpush3.bf16.msra.mxu1 %v5876_v37 }
  0x48   : > { %5332 = vmatprep.subr.bf16.mxu1 %v5878_v39 }
  0x49   : > { %5297 = vmatpush3.bf16.msra.mxu0 %v5877_v38 }
  0x4a   : > { %5298 = vmatprep.subr.bf16.mxu0 %v5879_v40 }
  0x4b   : > { %5333 = vmatpush3.bf16.msra.mxu1 %v5878_v39 }
  0x4c   : > { %5243 = vmatmul.mubr.bf16.gmra.mrb[12].mxu0 %v6092_v7  ;;  %5334 = vmatprep.subr.bf16.mxu1 %v5880_v41 }
  0x4d   : > { %5279 = vmatmul.mubr.bf16.gmra.mrb[12].mxu1 %v6092_v7  ;;  %5246 = vmatprep.mubr.bf16.mxu0 %v6094_v8 }
  0x4e   : > { %5282 = vmatprep.mubr.bf16.mxu1 %v6094_v8  ;;  %5299 = vmatpush3.bf16.msra.mxu0 %v5879_v40 }
  0x4f   : > { %5335 = vmatpush3.bf16.msra.mxu1 %v5880_v41  ;;  %5300 = vmatprep.subr.bf16.mxu0 %v5881_v42 }
  0x50   : > { %5336 = vmatprep.subr.bf16.mxu1 %v5882_v43 }
  0x52   : > { %5301 = vmatpush3.bf16.msra.mxu0 %v5881_v42 }
  0x53   : > { %5337 = vmatpush3.bf16.msra.mxu1 %v5882_v43  ;;  %5358 = vmatprep.subr.bf16.mxu0 %v5883_v44 }
  0x54   : > { %5247 = vmatmul.mubr.bf16.gmra.mrb[16].mxu0 %v6096_v9  ;;  %5394 = vmatprep.subr.bf16.mxu1 %v5885_v45 }
  0x55   : > { %5283 = vmatmul.mubr.bf16.gmra.mrb[16].mxu1 %v6096_v9  ;;  %5302 = vmatprep.mubr.bf16.mxu0 %v6073_v0  ;;  %v5902_v0 = vld [vmem:[%s7225_s1 + $0x190] sm:$0xff]  }
  0x56   : > { %5338 = vmatprep.mubr.bf16.mxu1 %v6075_v1 }
  0x5c   : > { %5303 = vmatmul.mubr.bf16.vlgmr.msra.gmra.mrb[20].mxu0 %v6075_v1 }
  0x5d   : > { %5339 = vmatmul.mubr.bf16.vlgmr.msra.gmra.mrb[20].mxu1 %v6077_v2  ;;  %5359 = vmatpush3.bf16.msra.mxu0 %v5883_v44 }
  0x5e   : > { %5360 = vmatprep.subr.bf16.mxu0 %v5884_v46  ;;  %5306 = vmatprep.mubr.bf16.mxu0 %v6077_v2 }
  0x5f   : > { %5342 = vmatprep.mubr.bf16.mxu1 %v6084_v3  ;;  %5395 = vmatpush3.bf16.msra.mxu1 %v5885_v45 }
  0x60   : > { %5396 = vmatprep.subr.bf16.mxu1 %v5887_v47 }
  0x61   : > { %5361 = vmatpush3.bf16.msra.mxu0 %v5884_v46 }
  0x62   : > { %5362 = vmatprep.subr.bf16.mxu0 %v5886_v48 }
  0x63   : > { %5397 = vmatpush3.bf16.msra.mxu1 %v5887_v47 }
  0x64   : > { %5307 = vmatmul.mubr.bf16.gmra.mrb[24].mxu0 %v6084_v3  ;;  %5398 = vmatprep.subr.bf16.mxu1 %v5889_v49 }
  0x65   : > { %5343 = vmatmul.mubr.bf16.gmra.mrb[24].mxu1 %v6086_v4  ;;  %5363 = vmatpush3.bf16.msra.mxu0 %v5886_v48 }
  0x66   : > { %5310 = vmatprep.mubr.bf16.mxu0 %v6086_v4  ;;  %5346 = vmatprep.mubr.bf16.mxu1 %v6088_v5 }
  0x67   : > { %5364 = vmatprep.subr.bf16.mxu0 %v5888_v50  ;;  %5399 = vmatpush3.bf16.msra.mxu1 %v5889_v49 }
  0x68   : > { %5400 = vmatprep.subr.bf16.mxu1 %v5891_v51 }
  0x69   : > { %5365 = vmatpush3.bf16.msra.mxu0 %v5888_v50 }
  0x6a   : > { %5366 = vmatprep.subr.bf16.mxu0 %v5890_v52 }
  0x6b   : > { %5401 = vmatpush3.bf16.msra.mxu1 %v5891_v51 }
  0x6c   : > { %5311 = vmatmul.mubr.bf16.gmra.mrb[28].mxu0 %v6088_v5  ;;  %5402 = vmatprep.subr.bf16.mxu1 %v5892_v53 }
  0x6d   : > { %5347 = vmatmul.mubr.bf16.gmra.mrb[28].mxu1 %v6090_v6  ;;  %5367 = vmatpush3.bf16.msra.mxu0 %v5890_v52 }
  0x6e   : > { %5314 = vmatprep.mubr.bf16.mxu0 %v6090_v6  ;;  %5350 = vmatprep.mubr.bf16.mxu1 %v6092_v7 }
  0x6f   : > { %5368 = vmatprep.subr.bf16.mxu0 %v5893_v54  ;;  %5403 = vmatpush3.bf16.msra.mxu1 %v5892_v53 }
  0x70   : > { %5404 = vmatprep.subr.bf16.mxu1 %v5894_v55 }
  0x71   : > { %5369 = vmatpush3.bf16.msra.mxu0 %v5893_v54 }
  0x72   : > { %5370 = vmatprep.subr.bf16.mxu0 %v5895_v56 }
  0x73   : > { %5405 = vmatpush3.bf16.msra.mxu1 %v5894_v55 }
  0x74   : > { %5315 = vmatmul.mubr.bf16.gmra.mrb[32].mxu0 %v6092_v7  ;;  %5406 = vmatprep.subr.bf16.mxu1 %v5896_v57 }
  0x75   : > { %5351 = vmatmul.mubr.bf16.gmra.mrb[32].mxu1 %v6094_v8  ;;  %5318 = vmatprep.mubr.bf16.mxu0 %v6094_v8 }
  0x76   : > { %5354 = vmatprep.mubr.bf16.mxu1 %v6096_v9  ;;  %5371 = vmatpush3.bf16.msra.mxu0 %v5895_v56 }
  0x77   : > { %5407 = vmatpush3.bf16.msra.mxu1 %v5896_v57  ;;  %5372 = vmatprep.subr.bf16.mxu0 %v5897_v58 }
  0x78   : > { %5408 = vmatprep.subr.bf16.mxu1 %v5898_v59 }
  0x7a   : > { %5373 = vmatpush3.bf16.msra.mxu0 %v5897_v58 }
  0x7b   : > { %5409 = vmatpush3.bf16.msra.mxu1 %v5898_v59  ;;  %5430 = vmatprep.subr.bf16.mxu0 %v5899_v60 }
  0x7c   : > { %5319 = vmatmul.mubr.bf16.gmra.mrb[36].mxu0 %v6096_v9  ;;  %5466 = vmatprep.subr.bf16.mxu1 %v5901_v61 }
  0x7d   : > { %5355 = vmatmul.mubr.bf16.gmra.mrb[36].mxu1 %v6098_v10  ;;  %5374 = vmatprep.mubr.bf16.mxu0 %v6075_v1 }
  0x7e   : > { %5410 = vmatprep.mubr.bf16.mxu1 %v6075_v1  ;;  %v5905_v1 = vld [vmem:[%s7225_s1 + $0x1d0] sm:$0xff]  }
  0x84   : > { %5375 = vmatmul.mubr.bf16.vlgmr.msra.gmra.mrb[40].mxu0 %v6077_v2 }
  0x85   : > { %5411 = vmatmul.mubr.bf16.vlgmr.msra.gmra.mrb[40].mxu1 %v6077_v2  ;;  %5431 = vmatpush3.bf16.msra.mxu0 %v5899_v60 }
  0x86   : > { %5432 = vmatprep.subr.bf16.mxu0 %v5900_v62  ;;  %5378 = vmatprep.mubr.bf16.mxu0 %v6084_v3 }
  0x87   : > { %5414 = vmatprep.mubr.bf16.mxu1 %v6084_v3  ;;  %5467 = vmatpush3.bf16.msra.mxu1 %v5901_v61 }
  0x88   : > { %5468 = vmatprep.subr.bf16.mxu1 %v5903_v63 }
  0x89   : > { %5433 = vmatpush3.bf16.msra.mxu0 %v5900_v62 }
  0x8a   : > { %5434 = vmatprep.subr.bf16.mxu0 %v5902_v0 }
  0x8b   : > { %5469 = vmatpush3.bf16.msra.mxu1 %v5903_v63 }
  0x8c   : > { %5379 = vmatmul.mubr.bf16.gmra.mrb[44].mxu0 %v6086_v4  ;;  %5470 = vmatprep.subr.bf16.mxu1 %v5905_v1 }
  0x8d   : > { %5415 = vmatmul.mubr.bf16.gmra.mrb[44].mxu1 %v6086_v4  ;;  %5435 = vmatpush3.bf16.msra.mxu0 %v5902_v0 }
  0x8e   : > { %5382 = vmatprep.mubr.bf16.mxu0 %v6088_v5  ;;  %5418 = vmatprep.mubr.bf16.mxu1 %v6088_v5 }
  0x8f   : > { %5436 = vmatprep.subr.bf16.mxu0 %v5904_v12  ;;  %5471 = vmatpush3.bf16.msra.mxu1 %v5905_v1 }
  0x90   : > { %5472 = vmatprep.subr.bf16.mxu1 %v5907_v13 }
  0x91   : > { %5437 = vmatpush3.bf16.msra.mxu0 %v5904_v12 }
  0x92   : > { %5438 = vmatprep.subr.bf16.mxu0 %v5906_v14 }
  0x93   : > { %5473 = vmatpush3.bf16.msra.mxu1 %v5907_v13 }
  0x94   : > { %5383 = vmatmul.mubr.bf16.gmra.mrb[48].mxu0 %v6090_v6  ;;  %5474 = vmatprep.subr.bf16.mxu1 %v5908_v15 }
  0x95   : > { %5419 = vmatmul.mubr.bf16.gmra.mrb[48].mxu1 %v6090_v6  ;;  %5439 = vmatpush3.bf16.msra.mxu0 %v5906_v14 }
  0x96   : > { %5386 = vmatprep.mubr.bf16.mxu0 %v6092_v7  ;;  %5422 = vmatprep.mubr.bf16.mxu1 %v6092_v7 }
  0x97   : > { %5440 = vmatprep.subr.bf16.mxu0 %v5909_v16  ;;  %5475 = vmatpush3.bf16.msra.mxu1 %v5908_v15 }
  0x98   : > { %5476 = vmatprep.subr.bf16.mxu1 %v5910_v17 }
  0x99   : > { %5441 = vmatpush3.bf16.msra.mxu0 %v5909_v16 }
  0x9a   : > { %5442 = vmatprep.subr.bf16.mxu0 %v5911_v18 }
  0x9b   : > { %5477 = vmatpush3.bf16.msra.mxu1 %v5910_v17 }
  0x9c   : > { %5387 = vmatmul.mubr.bf16.gmra.mrb[52].mxu0 %v6094_v8  ;;  %5478 = vmatprep.subr.bf16.mxu1 %v5912_v19 }
  0x9d   : > { %5423 = vmatmul.mubr.bf16.gmra.mrb[52].mxu1 %v6094_v8  ;;  %5390 = vmatprep.mubr.bf16.mxu0 %v6096_v9 }
  0x9e   : > { %5426 = vmatprep.mubr.bf16.mxu1 %v6096_v9  ;;  %5443 = vmatpush3.bf16.msra.mxu0 %v5911_v18 }
  0x9f   : > { %5479 = vmatpush3.bf16.msra.mxu1 %v5912_v19  ;;  %5444 = vmatprep.subr.bf16.mxu0 %v5913_v20 }
  0xa0   : > { %5480 = vmatprep.subr.bf16.mxu1 %v5914_v21 }
  0xa2   : > { %5445 = vmatpush3.bf16.msra.mxu0 %v5913_v20 }
  0xa3   : > { %5481 = vmatpush3.bf16.msra.mxu1 %v5914_v21  ;;  %5502 = vmatprep.subr.bf16.mxu0 %v5915_v22 }
  0xa4   : > { %5391 = vmatmul.mubr.bf16.gmra.mrb[56].mxu0 %v6098_v10 }
  0xa5   : > { %5427 = vmatmul.mubr.bf16.gmra.mrb[56].mxu1 %v6098_v10  ;;  %5446 = vmatprep.mubr.bf16.mxu0 %v6077_v2 }
  0xa6   : > { %5482 = vmatprep.mubr.bf16.mxu1 %v6077_v2 }
  0xac   : > { %5447 = vmatmul.mubr.bf16.vlgmr.msra.gmra.mrb[60].mxu0 %v6084_v3 }
  0xad   : > { %5483 = vmatmul.mubr.bf16.vlgmr.msra.gmra.mrb[60].mxu1 %v6084_v3  ;;  %5503 = vmatpush3.bf16.msra.mxu0 %v5915_v22 }
  0xae   : > { %5504 = vmatprep.subr.bf16.mxu0 %v5916_v23  ;;  %5450 = vmatprep.mubr.bf16.mxu0 %v6086_v4 }
  0xaf   : > { %5486 = vmatprep.mubr.bf16.mxu1 %v6086_v4 }
  0xb1   : > { %5505 = vmatpush3.bf16.msra.mxu0 %v5916_v23 }
  0xb2   : > { %5506 = vmatprep.subr.bf16.mxu0 %v5917_v24 }
  0xb4   : > { %5451 = vmatmul.mubr.bf16.gmra.mrb[64].mxu0 %v6088_v5 }
  0xb5   : > { %5487 = vmatmul.mubr.bf16.gmra.mrb[64].mxu1 %v6088_v5  ;;  %5507 = vmatpush3.bf16.msra.mxu0 %v5917_v24 }
  0xb6   : > { %5454 = vmatprep.mubr.bf16.mxu0 %v6090_v6  ;;  %5490 = vmatprep.mubr.bf16.mxu1 %v6090_v6 }
  0xb7   : > { %5508 = vmatprep.subr.bf16.mxu0 %v5918_v25 }
  0xb9   : > { %5509 = vmatpush3.bf16.msra.mxu0 %v5918_v25 }
  0xba   : > { %5510 = vmatprep.subr.bf16.mxu0 %v5919_v26 }
  0xbc   : > { %5455 = vmatmul.mubr.bf16.gmra.mrb[68].mxu0 %v6092_v7 }
  0xbd   : > { %5491 = vmatmul.mubr.bf16.gmra.mrb[68].mxu1 %v6092_v7  ;;  %5511 = vmatpush3.bf16.msra.mxu0 %v5919_v26 }
  0xbe   : > { %5458 = vmatprep.mubr.bf16.mxu0 %v6094_v8  ;;  %5494 = vmatprep.mubr.bf16.mxu1 %v6094_v8 }
  0xbf   : > { %5512 = vmatprep.subr.bf16.mxu0 %v5920_v27 }
  0xc1   : > { %5513 = vmatpush3.bf16.msra.mxu0 %v5920_v27 }
  0xc2   : > { %5514 = vmatprep.subr.bf16.mxu0 %v5921_v28 }
  0xc4   : > { %5459 = vmatmul.mubr.bf16.gmra.mrb[72].mxu0 %v6096_v9 }
  0xc5   : > { %5495 = vmatmul.mubr.bf16.gmra.mrb[72].mxu1 %v6096_v9  ;;  %5462 = vmatprep.mubr.bf16.mxu0 %v6098_v10 }
  0xc6   : > { %5498 = vmatprep.mubr.bf16.mxu1 %v6098_v10  ;;  %5515 = vmatpush3.bf16.msra.mxu0 %v5921_v28 }
  0xc7   : > { %5516 = vmatprep.subr.bf16.mxu0 %v5922_v29 }
  0xca   : > { %5517 = vmatpush3.bf16.msra.mxu0 %v5922_v29 }
  0xcc   : > { %5463 = vmatmul.mubr.bf16.gmra.mrb[76].mxu0 %v6100_v11 }
  0xcd   : > { %5499 = vmatmul.mubr.bf16.gmra.mrb[76].mxu1 %v6100_v11  ;;  %5518 = vmatprep.mubr.bf16.mxu0 %v6077_v2 }
  0xd4   : > { %5519 = vmatmul.mubr.bf16.vlgmr.msra.gmra.mrb[80].mxu0 %v6084_v3 }
  0xd5   : > { %5522 = vmatprep.mubr.bf16.mxu0 %v6086_v4 }
  0xdc   : > { %5523 = vmatmul.mubr.bf16.gmra.mrb[84].mxu0 %v6088_v5 }
  0xdd   : > { %5526 = vmatprep.mubr.bf16.mxu0 %v6090_v6 }
  0xe4   : > { %5527 = vmatmul.mubr.bf16.gmra.mrb[88].mxu0 %v6092_v7 }
  0xe5   : > { %5530 = vmatprep.mubr.bf16.mxu0 %v6094_v8 }
  0xec   : > { %5531 = vmatmul.mubr.bf16.gmra.mrb[92].mxu0 %v6096_v9 }
  0xed   : > { %5534 = vmatprep.mubr.bf16.mxu0 %v6098_v10 }
  0xf4   : > { %5535 = vmatmul.mubr.bf16.gmra.mrb[96].mxu0 %v6100_v11 }
 0x107   : > { %v5232_v30 = vpop.f32.mrb[0].mxu0 }
 0x108   : > { %v5268_v2 = vpop.f32.mrb[0].mxu1  ;;  %v386_v31 = vpop.f32.mrb[1].mxu0 }
 0x109   : > { %v667_v3 = vrot.slane %v5268_v2, 1  ;;  %v564_v32 = vpop.f32.mrb[1].mxu1  ;;  %v5233_v4 = vpop.f32.mrb[2].mxu0 }
 0x10a   : > { %v664_v33 = vrot.slane %v564_v32, 1  ;;  %v5269_v5 = vpop.f32.mrb[2].mxu1  ;;  %v389_v6 = vpop.f32.mrb[3].mxu0 }
 0x10b   : > { %v668_v34 = vrot.slane %v5269_v5, 1  ;;  %v567_v7 = vpop.f32.mrb[3].mxu1 }
 0x10c   : > { %v665_v35 = vrot.slane %v567_v7, 1 }
 0x10d   : > { %v669_v8 = vsel %vm663_vm0, %v667_v3, %v668_v34 }
 0x10e   : > { %v666_v9 = vsel %vm663_vm0, %v664_v33, %v665_v35  ;;  %v6410_v10 = vadd.f32 %v5232_v30, %v669_v8  ;;  %v5923_v33 = vld [vmem:[%s7227_s3] sm:$0xff]  }
 0x10f   : > { %v5236_v11 = vpop.f32.mrb[4].mxu0  ;;  %v6412_v36 = vadd.f32 %v666_v9, %v386_v31  ;;  %5538 = vmatprep.subr.bf16.mxu1 %v5923_v33  ;;  %v5925_v9 = vld [vmem:[%s7227_s3 + $0x80] sm:$0xff]  }
 0x110   : > { %v5272_v37 = vpop.f32.mrb[4].mxu1  ;;  %v400_v38 = vpop.f32.mrb[5].mxu0  ;;  %5539 = vmatpush3.bf16.msra.mxu1 %v5923_v33  ;;  %5602 = vmatprep.subr.bf16.mxu0 %v5925_v9 }
 0x111   : > { %v673_v39 = vrot.slane %v5272_v37, 1  ;;  %v580_v40 = vpop.f32.mrb[5].mxu1  ;;  %v5237_v41 = vpop.f32.mrb[6].mxu0  ;;  %5603 = vmatpush3.bf16.msra.mxu0 %v5925_v9 }
 0x112   : > { %v670_v42 = vrot.slane %v580_v40, 1  ;;  %v5273_v43 = vpop.f32.mrb[6].mxu1  ;;  %v403_v44 = vpop.f32.mrb[7].mxu0 }
 0x113   : > { %v674_v45 = vrot.slane %v5273_v43, 1  ;;  %v583_v46 = vpop.f32.mrb[7].mxu1  ;;  %v5924_v43 = vld [vmem:[%s7227_s3 + $0x8] sm:$0xff]  }
 0x114   : > { %v671_v47 = vrot.slane %v583_v46, 1  ;;  %v5927_v44 = vld [vmem:[%s7227_s3 + $0x88] sm:$0xff]   ;;  %5540 = vmatprep.subr.bf16.mxu1 %v5924_v43 }
 0x115   : > { %v675_v48 = vsel %vm663_vm0, %v673_v39, %v674_v45  ;;  %5604 = vmatprep.subr.bf16.mxu0 %v5927_v44  ;;  %5541 = vmatpush3.bf16.msra.mxu1 %v5924_v43  ;;  %v5935_v43 = vld [vmem:[%s7227_s3 + $0x30] sm:$0xff]  }
 0x116   : > { %v672_v49 = vsel %vm663_vm0, %v670_v42, %v671_v47  ;;  %v6416_v50 = vadd.f32 %v5236_v11, %v675_v48  ;;  %5605 = vmatpush3.bf16.msra.mxu0 %v5927_v44  ;;  %v5936_v44 = vld [vmem:[%s7227_s3 + $0xb0] sm:$0xff]  }
 0x117   : > { %v5240_v51 = vpop.f32.mrb[8].mxu0  ;;  %v6418_v52 = vadd.f32 %v672_v49, %v400_v38 }
 0x118   : > { %v5276_v53 = vpop.f32.mrb[8].mxu1  ;;  %v414_v54 = vpop.f32.mrb[9].mxu0 }
 0x119   : > { %v679_v55 = vrot.slane %v5276_v53, 1  ;;  %v596_v56 = vpop.f32.mrb[9].mxu1  ;;  %v5241_v57 = vpop.f32.mrb[10].mxu0 }
 0x11a   : > { %v676_v58 = vrot.slane %v596_v56, 1  ;;  %v5277_v59 = vpop.f32.mrb[10].mxu1  ;;  %v417_v60 = vpop.f32.mrb[11].mxu0  ;;  %v5926_v57 = vld [vmem:[%s7227_s3 + $0x10] sm:$0xff]  }
 0x11b   : > { %v680_v61 = vrot.slane %v5277_v59, 1  ;;  %v599_v62 = vpop.f32.mrb[11].mxu1  ;;  %5542 = vmatprep.subr.bf16.mxu1 %v5926_v57 }
 0x11c   : > { %v677_v63 = vrot.slane %v599_v62, 1  ;;  %5543 = vmatpush3.bf16.msra.mxu1 %v5926_v57 }
 0x11d   : > { %v681_v0 = vsel %vm663_vm0, %v679_v55, %v680_v61 }
 0x11e   : > { %v678_v1 = vsel %vm663_vm0, %v676_v58, %v677_v63  ;;  %v6422_v12 = vadd.f32 %v5240_v51, %v681_v0  ;;  %v5929_v58 = vld [vmem:[%s7227_s3 + $0x90] sm:$0xff]  }
 0x11f   : > { %v5244_v13 = vpop.f32.mrb[12].mxu0  ;;  %v6424_v14 = vadd.f32 %v678_v1, %v414_v54  ;;  %5606 = vmatprep.subr.bf16.mxu0 %v5929_v58 }
 0x120   : > { %v5280_v15 = vpop.f32.mrb[12].mxu1  ;;  %v428_v16 = vpop.f32.mrb[13].mxu0  ;;  %5607 = vmatpush3.bf16.msra.mxu0 %v5929_v58 }
 0x121   : > { %v685_v17 = vrot.slane %v5280_v15, 1  ;;  %v612_v18 = vpop.f32.mrb[13].mxu1  ;;  %v5245_v19 = vpop.f32.mrb[14].mxu0  ;;  %v5928_v15 = vld [vmem:[%s7227_s3 + $0x18] sm:$0xff]  }
 0x122   : > { %v682_v20 = vrot.slane %v612_v18, 1  ;;  %v5281_v21 = vpop.f32.mrb[14].mxu1  ;;  %v431_v22 = vpop.f32.mrb[15].mxu0  ;;  %5544 = vmatprep.subr.bf16.mxu1 %v5928_v15 }
 0x123   : > { %v686_v23 = vrot.slane %v5281_v21, 1  ;;  %v615_v24 = vpop.f32.mrb[15].mxu1  ;;  %5545 = vmatpush3.bf16.msra.mxu1 %v5928_v15 }
 0x124   : > { %v683_v25 = vrot.slane %v615_v24, 1 }
 0x125   : > { %v687_v26 = vsel %vm663_vm0, %v685_v17, %v686_v23 }
 0x126   : > { %v684_v27 = vsel %vm663_vm0, %v682_v20, %v683_v25  ;;  %v6428_v28 = vadd.f32 %v5244_v13, %v687_v26  ;;  %v5930_v25 = vld [vmem:[%s7227_s3 + $0x20] sm:$0xff]  }
 0x127   : > { %v5248_v29 = vpop.f32.mrb[16].mxu0  ;;  %v6430_v30 = vadd.f32 %v684_v27, %v428_v16  ;;  %5546 = vmatprep.subr.bf16.mxu1 %v5930_v25 }
 0x128   : > { %v5284_v2 = vpop.f32.mrb[16].mxu1  ;;  %v442_v31 = vpop.f32.mrb[17].mxu0  ;;  %5547 = vmatpush3.bf16.msra.mxu1 %v5930_v25 }
 0x129   : > { %v691_v3 = vrot.slane %v5284_v2, 1  ;;  %v628_v32 = vpop.f32.mrb[17].mxu1  ;;  %v5249_v4 = vpop.f32.mrb[18].mxu0 }
 0x12a   : > { %v688_v5 = vrot.slane %v628_v32, 1  ;;  %v5285_v6 = vpop.f32.mrb[18].mxu1  ;;  %v445_v34 = vpop.f32.mrb[19].mxu0 }
 0x12b   : > { %v692_v7 = vrot.slane %v5285_v6, 1  ;;  %v631_v35 = vpop.f32.mrb[19].mxu1  ;;  %v5933_v6 = vld [vmem:[%s7227_s3 + $0x28] sm:$0xff]  }
 0x12c   : > { %v689_v8 = vrot.slane %v631_v35, 1  ;;  %5548 = vmatprep.subr.bf16.mxu1 %v5933_v6 }
 0x12d   : > { %v693_v11 = vsel %vm663_vm0, %v691_v3, %v692_v7  ;;  %5549 = vmatpush3.bf16.msra.mxu1 %v5933_v6 }
 0x12e   : > { %v690_v37 = vsel %vm663_vm0, %v688_v5, %v689_v8  ;;  %v6440_v38 = vadd.f32 %v5248_v29, %v693_v11  ;;  %v5932_v29 = vld [vmem:[%s7227_s3 + $0xa0] sm:$0xff]   ;;  %5550 = vmatprep.subr.bf16.mxu1 %v5935_v43 }
 0x12f   : > { %v5304_v39 = vpop.f32.mrb[20].mxu0  ;;  %v6442_v40 = vadd.f32 %v690_v37, %v442_v31 }
 0x130   : > { %v813_v41 = vpop.f32.mrb[21].mxu0  ;;  %v5340_v42 = vpop.f32.mrb[20].mxu1  ;;  %v916_v47 = vrot.slane %v5304_v39, 2 }
 0x131   : > { %v5305_v45 = vpop.f32.mrb[22].mxu0  ;;  %v1073_v46 = vpop.f32.mrb[21].mxu1  ;;  %v913_v53 = vrot.slane %v813_v41, 2  ;;  %5551 = vmatpush3.bf16.msra.mxu1 %v5935_v43 }
 0x132   : > { %v917_v48 = vrot.slane %v5305_v45, 2  ;;  %v816_v49 = vpop.f32.mrb[23].mxu0  ;;  %v5341_v51 = vpop.f32.mrb[22].mxu1 }
 0x133   : > { %v914_v54 = vrot.slane %v816_v49, 2  ;;  %v1076_v55 = vpop.f32.mrb[23].mxu1 }
 0x134   : > { %v918_v56 = vsel %vm912_vm1, %v916_v47, %v917_v48 }
 0x135   : > { %v954_v59 = vadd.f32 %v918_v56, %v6410_v10  ;;  %v915_v60 = vsel %vm912_vm1, %v913_v53, %v914_v54  ;;  %v5931_v10 = vld [vmem:[%s7227_s3 + $0x98] sm:$0xff]  }
 0x136   : > { %v953_v61 = vadd.f32 %v915_v60, %v6412_v36  ;;  %5608 = vmatprep.subr.bf16.mxu0 %v5931_v10  ;;  %v5937_v60 = vld [vmem:[%s7227_s3 + $0x38] sm:$0xff]  }
 0x137   : > { %v6460_v62 = vadd.f32 %v5340_v42, %v954_v59  ;;  %v5308_v63 = vpop.f32.mrb[24].mxu0  ;;  %5609 = vmatpush3.bf16.msra.mxu0 %v5931_v10  ;;  %5552 = vmatprep.subr.bf16.mxu1 %v5937_v60 }
 0x138   : > { %v6462_v0 = vadd.f32 %v1073_v46, %v953_v61  ;;  %v829_v1 = vpop.f32.mrb[25].mxu0  ;;  %v5344_v13 = vpop.f32.mrb[24].mxu1  ;;  %v922_v17 = vrot.slane %v5308_v63, 2  ;;  %5610 = vmatprep.subr.bf16.mxu0 %v5932_v29  ;;  %v5938_v61 = vld [vmem:[%s7227_s3 + $0xb8] sm:$0xff]   ;;  %5553 = vmatpush3.bf16.msra.mxu1 %v5937_v60 }
 0x139   : > { %v5309_v36 = vpop.f32.mrb[26].mxu0  ;;  %v1087_v16 = vpop.f32.mrb[25].mxu1  ;;  %v919_v21 = vrot.slane %v829_v1, 2 }
 0x13a   : > { %v923_v18 = vrot.slane %v5309_v36, 2  ;;  %v832_v19 = vpop.f32.mrb[27].mxu0  ;;  %v5345_v20 = vpop.f32.mrb[26].mxu1 }
 0x13b   : > { %v920_v22 = vrot.slane %v832_v19, 2  ;;  %v1090_v23 = vpop.f32.mrb[27].mxu1  ;;  %5611 = vmatpush3.bf16.msra.mxu0 %v5932_v29  ;;  %v6021_v19 = vmov 0  }
 0x13c   : > { %v924_v24 = vsel %vm912_vm1, %v922_v17, %v923_v18  ;;  %5554 = vmatprep.mubr.bf16.mxu1 %v6021_v19  ;;  %5618 = vmatprep.mubr.bf16.mxu0 %v6021_v19 }
 0x13d   : > { %v956_v26 = vadd.f32 %v924_v24, %v6416_v50  ;;  %v921_v27 = vsel %vm912_vm1, %v919_v21, %v920_v22  ;;  %v6528_v21 = vld [vmem:[%s7227_s3 + $0x100] sm:$0xff]  }
 0x13e   : > { %v955_v2 = vadd.f32 %v921_v27, %v6418_v52  ;;  %v5934_v52 = vld [vmem:[%s7227_s3 + $0xa8] sm:$0xff]  }
 0x13f   : > { %v6480_v31 = vadd.f32 %v5344_v13, %v956_v26  ;;  %v5312_v3 = vpop.f32.mrb[28].mxu0  ;;  %5612 = vmatprep.subr.bf16.mxu0 %v5934_v52 }
 0x140   : > { %v6482_v32 = vadd.f32 %v1087_v16, %v955_v2  ;;  %v845_v4 = vpop.f32.mrb[29].mxu0  ;;  %v5348_v33 = vpop.f32.mrb[28].mxu1  ;;  %v928_v34 = vrot.slane %v5312_v3, 2  ;;  %5613 = vmatpush3.bf16.msra.mxu0 %v5934_v52 }
 0x141   : > { %v5313_v50 = vpop.f32.mrb[30].mxu0  ;;  %v1101_v5 = vpop.f32.mrb[29].mxu1  ;;  %v925_v9 = vrot.slane %v845_v4, 2  ;;  %5614 = vmatprep.subr.bf16.mxu0 %v5936_v44 }
 0x142   : > { %v929_v7 = vrot.slane %v5313_v50, 2  ;;  %v848_v35 = vpop.f32.mrb[31].mxu0  ;;  %v5349_v8 = vpop.f32.mrb[30].mxu1 }
 0x143   : > { %v926_v11 = vrot.slane %v848_v35, 2  ;;  %v1104_v37 = vpop.f32.mrb[31].mxu1 }
 0x144   : > { %v930_v39 = vsel %vm912_vm1, %v928_v34, %v929_v7  ;;  %5615 = vmatpush3.bf16.msra.mxu0 %v5936_v44 }
 0x145   : > { %v958_v41 = vadd.f32 %v930_v39, %v6422_v12  ;;  %v927_v42 = vsel %vm912_vm1, %v925_v9, %v926_v11  ;;  %5616 = vmatprep.subr.bf16.mxu0 %v5938_v61 }
 0x146   : > { %v957_v45 = vadd.f32 %v927_v42, %v6424_v14 }
 0x147   : > { %v6500_v46 = vadd.f32 %v5348_v33, %v958_v41  ;;  %v5316_v47 = vpop.f32.mrb[32].mxu0 }
 0x148   : > { %v6502_v48 = vadd.f32 %v1101_v5, %v957_v45  ;;  %v861_v12 = vpop.f32.mrb[33].mxu0  ;;  %v5352_v49 = vpop.f32.mrb[32].mxu1  ;;  %v934_v54 = vrot.slane %v5316_v47, 2  ;;  %5617 = vmatpush3.bf16.msra.mxu0 %v5938_v61 }
 0x149   : > { %v5317_v51 = vpop.f32.mrb[34].mxu0  ;;  %v1115_v53 = vpop.f32.mrb[33].mxu1  ;;  %v931_v58 = vrot.slane %v861_v12, 2  ;;  %5666 = vmatprep.subr.bf16.mxu0 %v6528_v21 }
 0x14a   : > { %v935_v55 = vrot.slane %v5317_v51, 2  ;;  %v864_v56 = vpop.f32.mrb[35].mxu0  ;;  %v5353_v57 = vpop.f32.mrb[34].mxu1 }
 0x14b   : > { %v932_v59 = vrot.slane %v864_v56, 2  ;;  %v1118_v14 = vpop.f32.mrb[35].mxu1 }
 0x14c   : > { %v936_v63 = vsel %vm912_vm1, %v934_v54, %v935_v55 }
 0x14d   : > { %v960_v1 = vadd.f32 %v936_v63, %v6428_v28  ;;  %v933_v13 = vsel %vm912_vm1, %v931_v58, %v932_v59 }
 0x14e   : > { %v959_v15 = vadd.f32 %v933_v13, %v6430_v30  ;;  %v6523_v30 = vld [vmem:[%s7227_s3 + $0x40] sm:$0xff]  }
 0x14f   : > { %v6514_v10 = vadd.f32 %v5352_v49, %v960_v1  ;;  %v5320_v36 = vpop.f32.mrb[36].mxu0  ;;  %5570 = vmatprep.subr.bf16.mxu1 %v6523_v30 }
 0x150   : > { %v6516_v16 = vadd.f32 %v1115_v53, %v959_v15  ;;  %v877_v17 = vpop.f32.mrb[37].mxu0  ;;  %v5356_v18 = vpop.f32.mrb[36].mxu1  ;;  %v940_v22 = vrot.slane %v5320_v36, 2 }
 0x151   : > { %v5321_v28 = vpop.f32.mrb[38].mxu0  ;;  %v1129_v20 = vpop.f32.mrb[37].mxu1  ;;  %v937_v26 = vrot.slane %v877_v17, 2 }
 0x152   : > { %v941_v23 = vrot.slane %v5321_v28, 2  ;;  %v880_v24 = vpop.f32.mrb[39].mxu0  ;;  %v5357_v25 = vpop.f32.mrb[38].mxu1 }
 0x153   : > { %v938_v27 = vrot.slane %v880_v24, 2  ;;  %v1132_v29 = vpop.f32.mrb[39].mxu1 }
 0x154   : > { %v942_v2 = vsel %vm912_vm1, %v940_v22, %v941_v23 }
 0x155   : > { %v962_v3 = vadd.f32 %v942_v2, %v6440_v38  ;;  %v939_v4 = vsel %vm912_vm1, %v937_v26, %v938_v27 }
 0x156   : > { %v961_v33 = vadd.f32 %v939_v4, %v6442_v40 }
 0x157   : > { %v6536_v50 = vadd.f32 %v5356_v18, %v962_v3  ;;  %v5376_v5 = vpop.f32.mrb[40].mxu0 }
 0x158   : > { %v6538_v6 = vadd.f32 %v1129_v20, %v961_v33  ;;  %v1251_v52 = vpop.f32.mrb[41].mxu0  ;;  %v5412_v34 = vpop.f32.mrb[40].mxu1  ;;  %v1353_v9 = vrot.slane %v5376_v5, 1 }
 0x159   : > { %v5377_v7 = vpop.f32.mrb[42].mxu0  ;;  %v1601_v35 = vrot.slane %v5412_v34, 2  ;;  %v1499_v8 = vpop.f32.mrb[41].mxu1  ;;  %v1350_v38 = vrot.slane %v1251_v52, 1 }
 0x15a   : > { %v1354_v11 = vrot.slane %v5377_v7, 1  ;;  %v1254_v37 = vpop.f32.mrb[43].mxu0  ;;  %v1598_v39 = vrot.slane %v1499_v8, 2  ;;  %v5413_v41 = vpop.f32.mrb[42].mxu1 }
 0x15b   : > { %v1351_v42 = vrot.slane %v1254_v37, 1  ;;  %v1602_v43 = vrot.slane %v5413_v41, 2  ;;  %v1502_v44 = vpop.f32.mrb[43].mxu1 }
 0x15c   : > { %v1355_v40 = vsel %vm663_vm0, %v1353_v9, %v1354_v11  ;;  %v1599_v45 = vrot.slane %v1502_v44, 2 }
 0x15d   : > { %v1352_v47 = vsel %vm663_vm0, %v1350_v38, %v1351_v42  ;;  %v1391_v12 = vadd.f32 %v1355_v40, %v6460_v62  ;;  %v1603_v49 = vsel %vm912_vm1, %v1601_v35, %v1602_v43 }
 0x15e   : > { %v1390_v51 = vadd.f32 %v1352_v47, %v6462_v0  ;;  %v1600_v53 = vsel %vm912_vm1, %v1598_v39, %v1599_v45 }
 0x15f   : > { %v5380_v54 = vpop.f32.mrb[44].mxu0  ;;  %v6546_v55 = vadd.f32 %v1603_v49, %v1391_v12 }
 0x160   : > { %v1267_v56 = vpop.f32.mrb[45].mxu0  ;;  %v5416_v57 = vpop.f32.mrb[44].mxu1  ;;  %v6548_v58 = vadd.f32 %v1600_v53, %v1390_v51  ;;  %v1359_v61 = vrot.slane %v5380_v54, 1 }
 0x161   : > { %v5381_v59 = vpop.f32.mrb[46].mxu0  ;;  %v1607_v14 = vrot.slane %v5416_v57, 2  ;;  %v1515_v60 = vpop.f32.mrb[45].mxu1  ;;  %v1356_v15 = vrot.slane %v1267_v56, 1 }
 0x162   : > { %v1360_v63 = vrot.slane %v5381_v59, 1  ;;  %v1270_v1 = vpop.f32.mrb[47].mxu0  ;;  %v1604_v62 = vrot.slane %v1515_v60, 2  ;;  %v5417_v13 = vpop.f32.mrb[46].mxu1 }
 0x163   : > { %v1357_v36 = vrot.slane %v1270_v1, 1  ;;  %v1608_v0 = vrot.slane %v5417_v13, 2  ;;  %v1518_v17 = vpop.f32.mrb[47].mxu1 }
 0x164   : > { %v1361_v18 = vsel %vm663_vm0, %v1359_v61, %v1360_v63  ;;  %v1605_v28 = vrot.slane %v1518_v17, 2 }
 0x165   : > { %v1358_v20 = vsel %vm663_vm0, %v1356_v15, %v1357_v36  ;;  %v1393_v22 = vadd.f32 %v1361_v18, %v6480_v31  ;;  %v1609_v23 = vsel %vm912_vm1, %v1607_v14, %v1608_v0 }
 0x166   : > { %v1392_v24 = vadd.f32 %v1358_v20, %v6482_v32  ;;  %v1606_v25 = vsel %vm912_vm1, %v1604_v62, %v1605_v28 }
 0x167   : > { %v5384_v26 = vpop.f32.mrb[48].mxu0  ;;  %v6556_v27 = vadd.f32 %v1609_v23, %v1393_v22 }
 0x168   : > { %v1283_v29 = vpop.f32.mrb[49].mxu0  ;;  %v5420_v2 = vpop.f32.mrb[48].mxu1  ;;  %v6558_v3 = vadd.f32 %v1606_v25, %v1392_v24  ;;  %v1365_v52 = vrot.slane %v5384_v26, 1 }
 0x169   : > { %v5385_v4 = vpop.f32.mrb[50].mxu0  ;;  %v1613_v33 = vrot.slane %v5420_v2, 2  ;;  %v1531_v5 = vpop.f32.mrb[49].mxu1  ;;  %v1362_v8 = vrot.slane %v1283_v29, 1 }
 0x16a   : > { %v1366_v34 = vrot.slane %v5385_v4, 1  ;;  %v1286_v7 = vpop.f32.mrb[51].mxu0  ;;  %v1610_v31 = vrot.slane %v1531_v5, 2  ;;  %v5421_v35 = vpop.f32.mrb[50].mxu1 }
 0x16b   : > { %v1363_v9 = vrot.slane %v1286_v7, 1  ;;  %v1614_v32 = vrot.slane %v5421_v35, 2  ;;  %v1534_v11 = vpop.f32.mrb[51].mxu1 }
 0x16c   : > { %v1367_v37 = vsel %vm663_vm0, %v1365_v52, %v1366_v34  ;;  %v1611_v39 = vrot.slane %v1534_v11, 2 }
 0x16d   : > { %v1364_v41 = vsel %vm663_vm0, %v1362_v8, %v1363_v9  ;;  %v1395_v38 = vadd.f32 %v1367_v37, %v6500_v46  ;;  %v1615_v42 = vsel %vm912_vm1, %v1613_v33, %v1614_v32 }
 0x16e   : > { %v1394_v43 = vadd.f32 %v1364_v41, %v6502_v48  ;;  %v1612_v44 = vsel %vm912_vm1, %v1610_v31, %v1611_v39 }
 0x16f   : > { %v5388_v40 = vpop.f32.mrb[52].mxu0  ;;  %v6566_v45 = vadd.f32 %v1615_v42, %v1395_v38 }
 0x170   : > { %v1299_v47 = vpop.f32.mrb[53].mxu0  ;;  %v5424_v12 = vpop.f32.mrb[52].mxu1  ;;  %v6568_v49 = vadd.f32 %v1612_v44, %v1394_v43  ;;  %v1371_v56 = vrot.slane %v5388_v40, 1 }
 0x171   : > { %v5389_v51 = vpop.f32.mrb[54].mxu0  ;;  %v1619_v53 = vrot.slane %v5424_v12, 2  ;;  %v1547_v54 = vpop.f32.mrb[53].mxu1  ;;  %v1368_v60 = vrot.slane %v1299_v47, 1 }
 0x172   : > { %v1372_v57 = vrot.slane %v5389_v51, 1  ;;  %v1302_v59 = vpop.f32.mrb[55].mxu0  ;;  %v1616_v46 = vrot.slane %v1547_v54, 2  ;;  %v5425_v14 = vpop.f32.mrb[54].mxu1 }
 0x173   : > { %v1369_v61 = vrot.slane %v1302_v59, 1  ;;  %v1620_v48 = vrot.slane %v5425_v14, 2  ;;  %v1550_v63 = vpop.f32.mrb[55].mxu1 }
 0x174   : > { %v1373_v1 = vsel %vm663_vm0, %v1371_v56, %v1372_v57  ;;  %v1617_v62 = vrot.slane %v1550_v63, 2 }
 0x175   : > { %v1370_v13 = vsel %vm663_vm0, %v1368_v60, %v1369_v61  ;;  %v1397_v15 = vadd.f32 %v1373_v1, %v6514_v10  ;;  %v1621_v36 = vsel %vm912_vm1, %v1619_v53, %v1620_v48 }
 0x176   : > { %v1396_v0 = vadd.f32 %v1370_v13, %v6516_v16  ;;  %v1618_v17 = vsel %vm912_vm1, %v1616_v46, %v1617_v62 }
 0x177   : > { %v5392_v18 = vpop.f32.mrb[56].mxu0  ;;  %v6576_v28 = vadd.f32 %v1621_v36, %v1397_v15 }
 0x178   : > { %v1315_v20 = vpop.f32.mrb[57].mxu0  ;;  %v5428_v22 = vpop.f32.mrb[56].mxu1  ;;  %v6578_v23 = vadd.f32 %v1618_v17, %v1396_v0  ;;  %v1377_v29 = vrot.slane %v5392_v18, 1 }
 0x179   : > { %v5393_v24 = vpop.f32.mrb[58].mxu0  ;;  %v1625_v25 = vrot.slane %v5428_v22, 2  ;;  %v1563_v26 = vpop.f32.mrb[57].mxu1  ;;  %v1374_v5 = vrot.slane %v1315_v20, 1 }
 0x17a   : > { %v1378_v2 = vrot.slane %v5393_v24, 1  ;;  %v1318_v4 = vpop.f32.mrb[59].mxu0  ;;  %v1622_v10 = vrot.slane %v1563_v26, 2  ;;  %v5429_v33 = vpop.f32.mrb[58].mxu1 }
 0x17b   : > { %v1375_v52 = vrot.slane %v1318_v4, 1  ;;  %v1626_v16 = vrot.slane %v5429_v33, 2  ;;  %v1566_v34 = vpop.f32.mrb[59].mxu1 }
 0x17c   : > { %v1379_v7 = vsel %vm663_vm0, %v1377_v29, %v1378_v2  ;;  %v1623_v31 = vrot.slane %v1566_v34, 2 }
 0x17d   : > { %v1376_v35 = vsel %vm663_vm0, %v1374_v5, %v1375_v52  ;;  %v1399_v8 = vadd.f32 %v1379_v7, %v6536_v50  ;;  %v1627_v9 = vsel %vm912_vm1, %v1625_v25, %v1626_v16 }
 0x17e   : > { %v1398_v32 = vadd.f32 %v1376_v35, %v6538_v6  ;;  %v1624_v11 = vsel %vm912_vm1, %v1622_v10, %v1623_v31 }
 0x17f   : > { %v5448_v37 = vpop.f32.mrb[60].mxu0  ;;  %v6586_v39 = vadd.f32 %v1627_v9, %v1399_v8 }
 0x180   : > { %v1828_v41 = vadd.f32 %v5448_v37, %v6546_v55  ;;  %v5484_v38 = vpop.f32.mrb[60].mxu1  ;;  %v1758_v42 = vpop.f32.mrb[61].mxu0  ;;  %v6589_v43 = vadd.f32 %v1624_v11, %v1398_v32 }
 0x181   : > { %v2038_v44 = vrot.slane %v5484_v38, 1  ;;  %v1827_v40 = vadd.f32 %v1758_v42, %v6548_v58  ;;  %v1936_v47 = vpop.f32.mrb[61].mxu1  ;;  %v5449_v50 = vpop.f32.mrb[62].mxu0 }
 0x182   : > { %v2035_v12 = vrot.slane %v1936_v47, 1  ;;  %v5485_v51 = vpop.f32.mrb[62].mxu1  ;;  %v1761_v53 = vpop.f32.mrb[63].mxu0 }
 0x183   : > { %v2039_v6 = vrot.slane %v5485_v51, 1  ;;  %v1939_v54 = vpop.f32.mrb[63].mxu1 }
 0x184   : > { %v2036_v56 = vrot.slane %v1939_v54, 1 }
 0x185   : > { %v2040_v57 = vsel %vm663_vm0, %v2038_v44, %v2039_v6 }
 0x186   : > { %v6593_v59 = vadd.f32 %v2040_v57, %v1828_v41  ;;  %v2037_v55 = vsel %vm663_vm0, %v2035_v12, %v2036_v56 }
 0x187   : > { %v6596_v46 = vadd.f32 %v2037_v55, %v1827_v40  ;;  %v5452_v14 = vpop.f32.mrb[64].mxu0 }
 0x188   : > { %v1830_v60 = vadd.f32 %v5452_v14, %v6556_v27  ;;  %v5488_v58 = vpop.f32.mrb[64].mxu1  ;;  %v1772_v61 = vpop.f32.mrb[65].mxu0 }
 0x189   : > { %v2044_v48 = vrot.slane %v5488_v58, 1  ;;  %v1829_v63 = vadd.f32 %v1772_v61, %v6558_v3  ;;  %v1952_v1 = vpop.f32.mrb[65].mxu1  ;;  %v5453_v62 = vpop.f32.mrb[66].mxu0 }
 0x18a   : > { %v2041_v13 = vrot.slane %v1952_v1, 1  ;;  %v5489_v15 = vpop.f32.mrb[66].mxu1  ;;  %v1775_v36 = vpop.f32.mrb[67].mxu0 }
 0x18b   : > { %v2045_v0 = vrot.slane %v5489_v15, 1  ;;  %v1955_v17 = vpop.f32.mrb[67].mxu1 }
 0x18c   : > { %v2042_v18 = vrot.slane %v1955_v17, 1 }
 0x18d   : > { %v2046_v20 = vsel %vm663_vm0, %v2044_v48, %v2045_v0 }
 0x18e   : > { %v6601_v22 = vadd.f32 %v2046_v20, %v1830_v60  ;;  %v2043_v24 = vsel %vm663_vm0, %v2041_v13, %v2042_v18 }
 0x18f   : > { %v6604_v27 = vadd.f32 %v2043_v24, %v1829_v63  ;;  %v5456_v25 = vpop.f32.mrb[68].mxu0 }
 0x190   : > { %v1832_v26 = vadd.f32 %v5456_v25, %v6566_v45  ;;  %v5492_v3 = vpop.f32.mrb[68].mxu1  ;;  %v1786_v29 = vpop.f32.mrb[69].mxu0 }
 0x191   : > { %v2050_v2 = vrot.slane %v5492_v3, 1  ;;  %v1831_v4 = vadd.f32 %v1786_v29, %v6568_v49  ;;  %v1968_v10 = vpop.f32.mrb[69].mxu1  ;;  %v5457_v33 = vpop.f32.mrb[70].mxu0 }
 0x192   : > { %v2047_v5 = vrot.slane %v1968_v10, 1  ;;  %v5493_v52 = vpop.f32.mrb[70].mxu1  ;;  %v1789_v16 = vpop.f32.mrb[71].mxu0  ;;  %v6634_v10 = vld [vmem:[%s7226_s2] ss:$0 sm:$0xff] }
 0x193   : > { %v2051_v34 = vrot.slane %v5493_v52, 1  ;;  %v1971_v7 = vpop.f32.mrb[71].mxu1 }
 0x194   : > { %v2048_v31 = vrot.slane %v1971_v7, 1 }
 0x195   : > { %v2052_v35 = vsel %vm663_vm0, %v2050_v2, %v2051_v34 }
 0x196   : > { %v6609_v8 = vadd.f32 %v2052_v35, %v1832_v26  ;;  %v2049_v9 = vsel %vm663_vm0, %v2047_v5, %v2048_v31 }
 0x197   : > { %v6612_v45 = vadd.f32 %v2049_v9, %v1831_v4  ;;  %v5460_v32 = vpop.f32.mrb[72].mxu0 }
 0x198   : > { %v1834_v11 = vadd.f32 %v5460_v32, %v6576_v28  ;;  %v5496_v49 = vpop.f32.mrb[72].mxu1  ;;  %v1800_v37 = vpop.f32.mrb[73].mxu0 }
 0x199   : > { %v2056_v41 = vrot.slane %v5496_v49, 1  ;;  %v1833_v38 = vadd.f32 %v1800_v37, %v6578_v23  ;;  %v1984_v42 = vpop.f32.mrb[73].mxu1  ;;  %v5461_v44 = vpop.f32.mrb[74].mxu0 }
 0x19a   : > { %v2053_v40 = vrot.slane %v1984_v42, 1  ;;  %v5497_v47 = vpop.f32.mrb[74].mxu1  ;;  %v1803_v50 = vpop.f32.mrb[75].mxu0 }
 0x19b   : > { %v2057_v12 = vrot.slane %v5497_v47, 1  ;;  %v1987_v51 = vpop.f32.mrb[75].mxu1 }
 0x19c   : > { %v2054_v53 = vrot.slane %v1987_v51, 1 }
 0x19d   : > { %v2058_v6 = vsel %vm663_vm0, %v2056_v41, %v2057_v12 }
 0x19e   : > { %v6617_v54 = vadd.f32 %v2058_v6, %v1834_v11  ;;  %v2055_v56 = vsel %vm663_vm0, %v2053_v40, %v2054_v53 }
 0x19f   : > { %v6620_v28 = vadd.f32 %v2055_v56, %v1833_v38  ;;  %v5464_v57 = vpop.f32.mrb[76].mxu0 }
 0x1a0   : > { %v1836_v55 = vadd.f32 %v5464_v57, %v6586_v39  ;;  %v5500_v23 = vpop.f32.mrb[76].mxu1  ;;  %v1814_v14 = vpop.f32.mrb[77].mxu0 }
 0x1a1   : > { %v2062_v60 = vrot.slane %v5500_v23, 1  ;;  %v1835_v58 = vadd.f32 %v1814_v14, %v6589_v43  ;;  %v2000_v61 = vpop.f32.mrb[77].mxu1  ;;  %v5465_v48 = vpop.f32.mrb[78].mxu0 }
 0x1a2   : > { %v2059_v63 = vrot.slane %v2000_v61, 1  ;;  %v5501_v1 = vpop.f32.mrb[78].mxu1  ;;  %v1817_v62 = vpop.f32.mrb[79].mxu0  ;;  %v2453_v61 = vld [vmem:[#allocation3] sm:$0x1f] }
 0x1a3   : > { %v2063_v13 = vrot.slane %v5501_v1, 1  ;;  %v2003_v15 = vpop.f32.mrb[79].mxu1 }
 0x1a4   : > { %v2060_v36 = vrot.slane %v2003_v15, 1 }
 0x1a5   : > { %v2064_v0 = vsel %vm663_vm0, %v2062_v60, %v2063_v13 }
 0x1a6   : > { %v6625_v17 = vadd.f32 %v2064_v0, %v1836_v55  ;;  %v2061_v18 = vsel %vm663_vm0, %v2059_v63, %v2060_v36  ;;  %v2456_v55 = vld [vmem:[#allocation3 + $0x8] sm:$0x1f] }
 0x1a7   : > { %v6628_v39 = vadd.f32 %v2061_v18, %v1835_v58  ;;  %v5520_v20 = vpop.f32.mrb[80].mxu0 }
 0x1a8   : > { %v2184_v24 = vpop.f32.mrb[81].mxu0  ;;  %v2286_v43 = vrot.slane %v5520_v20, 2 }
 0x1a9   : > { %v5521_v25 = vpop.f32.mrb[82].mxu0  ;;  %v2283_v29 = vrot.slane %v2184_v24, 2 }
 0x1aa   : > { %v2287_v26 = vrot.slane %v5521_v25, 2  ;;  %v2187_v3 = vpop.f32.mrb[83].mxu0 }
 0x1ab   : > { %v2284_v2 = vrot.slane %v2187_v3, 2 }
 0x1ac   : > { %v2288_v4 = vsel %vm912_vm1, %v2286_v43, %v2287_v26 }
 0x1ad   : > { %v2324_v33 = vadd.f32 %v2288_v4, %v6593_v59  ;;  %v2285_v5 = vsel %vm912_vm1, %v2283_v29, %v2284_v2 }
 0x1ae   : > { %v2323_v52 = vadd.f32 %v2285_v5, %v6596_v46 }
 0x1af   : > { %v2341_v16 = vadd.f32 %v6634_v10, %v2324_v33  ;;  %v5524_v34 = vpop.f32.mrb[84].mxu0 }
 0x1b0   : > { %v2340_v7 = vadd.f32 %v6634_v10, %v2323_v52  ;;  %v2200_v31 = vpop.f32.mrb[85].mxu0  ;;  %v2292_v11 = vrot.slane %v5524_v34, 2  ;;  %v5956_v34 = vld [vmem:[%s7227_s3 + $0x180] sm:$0xff]  }
 0x1b1   : > { %v2351_v35 = vmax.f32 %v2341_v16, 0.0  ;;  %v5525_v9 = vpop.f32.mrb[86].mxu0  ;;  %v2289_v38 = vrot.slane %v2200_v31, 2 }
 0x1b2   : > { %v2350_v32 = vmax.f32 %v2340_v7, 0.0  ;;  %v2293_v49 = vrot.slane %v5525_v9, 2  ;;  %v2203_v37 = vpop.f32.mrb[87].mxu0  ;;  %v2462_v7 = vld [vmem:[#allocation3 + $0x18] sm:$0x1f] }
 0x1b3   : > { %v2361_v41 = vpack.c.bf16 %v2351_v35, %v2351_v35  ;;  %v2290_v42 = vrot.slane %v2203_v37, 2 }
 0x1b4   : > { %v2360_v59 = vpack.c.bf16 %v2350_v32, %v2350_v32  ;;  %v2294_v44 = vsel %vm912_vm1, %v2292_v11, %v2293_v49  ;;  %v2459_v11 = vld [vmem:[#allocation3 + $0x10] sm:$0x1f]  ;;  %v5957_v32 = vld [vmem:[%s7227_s3 + $0xc8] sm:$0xff]  }
 0x1b5   : > { %v2378_v46 = vshrl.u32 %v2361_v41, 16  ;;  %v2326_v40 = vadd.f32 %v2294_v44, %v6601_v22  ;;  %v2291_v47 = vsel %vm912_vm1, %v2289_v38, %v2290_v42  ;;  %v2381_v53 = vshll.u32 %v2361_v41, 16 }
 0x1b6   : > { %v2371_v50 = vshrl.u32 %v2360_v59, 16  ;;  %v2325_v12 = vadd.f32 %v2291_v47, %v6604_v27  ;;  %v2374_v14 = vshll.u32 %v2360_v59, 16 }
 0x1b7   : > { %v2380_v51 = vrot.slane %v2378_v46, 7  ;;  %v2343_v6 = vadd.f32 %v6634_v10, %v2326_v40  ;;  %v5528_v56 = vpop.f32.mrb[88].mxu0 }
 0x1b8   : > { %v2373_v23 = vrot.slane %v2371_v50, 7  ;;  %v2342_v60 = vadd.f32 %v6634_v10, %v2325_v12  ;;  %v2216_v22 = vpop.f32.mrb[89].mxu0  ;;  %v2298_v62 = vrot.slane %v5528_v56, 2 }
 0x1b9   : > { %v2383_v58 = vor.u32 %v2381_v53, %v2380_v51  ;;  %v2353_v48 = vmax.f32 %v2343_v6, 0.0  ;;  %v5529_v63 = vpop.f32.mrb[90].mxu0  ;;  %v2295_v18 = vrot.slane %v2216_v22, 2 }
 0x1ba   : > { %v2376_v27 = vor.u32 %v2374_v14, %v2373_v23  ;;  %v2352_v1 = vmax.f32 %v2342_v60, 0.0  ;;  %v2299_v13 = vrot.slane %v5529_v63, 2  ;;  %v2219_v15 = vpop.f32.mrb[91].mxu0 }
 0x1bb   : > { %v2457_v36 = vsel %vm6646_vm4, %v2383_v58, %v2456_v55  ;;  %v2363_v0 = vpack.c.bf16 %v2353_v48, %v2353_v48  ;;  %v2296_v20 = vrot.slane %v2219_v15, 2 }
 0x1bc   : > { %2458 = vst [vmem:[#allocation3 + $0x8] sm:$0x1f] %v2457_v36  ;;  %v2454_v24 = vsel %vm6646_vm4, %v2376_v27, %v2453_v61  ;;  %v2362_v25 = vpack.c.bf16 %v2352_v1, %v2352_v1  ;;  %v2300_v43 = vsel %vm912_vm1, %v2298_v62, %v2299_v13  ;;  %v2468_v36 = vld [vmem:[#allocation3 + $0x28] sm:$0x1f] }
 0x1bd   : > { %2455 = vst [vmem:[#allocation3] sm:$0x1f] %v2454_v24  ;;  %v2392_v26 = vshrl.u32 %v2363_v0, 16  ;;  %v2328_v3 = vadd.f32 %v2300_v43, %v6609_v8  ;;  %v2297_v29 = vsel %vm912_vm1, %v2295_v18, %v2296_v20  ;;  %v2395_v5 = vshll.u32 %v2363_v0, 16  ;;  %v2465_v43 = vld [vmem:[#allocation3 + $0x20] sm:$0x1f] }
 0x1be   : > { %v2385_v2 = vshrl.u32 %v2362_v25, 16  ;;  %v2327_v4 = vadd.f32 %v2297_v29, %v6612_v45  ;;  %v2388_v8 = vshll.u32 %v2362_v25, 16 }
 0x1bf   : > { %v2394_v33 = vrot.slane %v2392_v26, 7  ;;  %v2345_v52 = vadd.f32 %v6634_v10, %v2328_v3  ;;  %v5532_v16 = vpop.f32.mrb[92].mxu0 }
 0x1c0   : > { %v2387_v31 = vrot.slane %v2385_v2, 7  ;;  %v2344_v35 = vadd.f32 %v6634_v10, %v2327_v4  ;;  %v2232_v9 = vpop.f32.mrb[93].mxu0  ;;  %v2304_v42 = vrot.slane %v5532_v16, 2 }
 0x1c1   : > { %v2397_v45 = vor.u32 %v2395_v5, %v2394_v33  ;;  %v2355_v49 = vmax.f32 %v2345_v52, 0.0  ;;  %v5533_v37 = vpop.f32.mrb[94].mxu0  ;;  %v2301_v12 = vrot.slane %v2232_v9, 2  ;;  %v5942_v5 = vld [vmem:[%s7227_s3 + $0x108] sm:$0xff]  }
 0x1c2   : > { %v2390_v41 = vor.u32 %v2388_v8, %v2387_v31  ;;  %v2354_v38 = vmax.f32 %v2344_v35, 0.0  ;;  %v2305_v59 = vrot.slane %v5533_v37, 2  ;;  %v2235_v44 = vpop.f32.mrb[95].mxu0 }
 0x1c3   : > { %v2489_v46 = vld [vmem:[#allocation3 + $0x8] sm:$0x1]  ;;  %v2522_v40 = vld [vmem:[#allocation3 + $0x8] sm:$0xf0]  ;;  %v2463_v47 = vsel %vm6646_vm4, %v2397_v45, %v2462_v7  ;;  %v2365_v50 = vpack.c.bf16 %v2355_v49, %v2355_v49  ;;  %v2302_v51 = vrot.slane %v2235_v44, 2 }
 0x1c4   : > { %v2490_v53 = vsel %vm6661_vm9, 0, %v2489_v46  ;;  %v2523_v6 = vsel %vm6666_vm10, 0, %v2522_v40  ;;  %v2486_v56 = vld [vmem:[#allocation3] sm:$0x1]  ;;  %v2519_v55 = vld [vmem:[#allocation3] sm:$0xf0]  ;;  %v2460_v23 = vsel %vm6646_vm4, %v2390_v41, %v2459_v11  ;;  %v2364_v14 = vpack.c.bf16 %v2354_v38, %v2354_v38 }
 0x1c5   : > { %2464 = vst [vmem:[#allocation3 + $0x18] sm:$0x1f] %v2463_v47  ;;  %2491 = vst [vmem:[#allocation3 + $0x8] sm:$0x1] %v2490_v53  ;;  %v2487_v60 = vsel %vm6661_vm9, 0, %v2486_v56  ;;  %v2520_v22 = vsel %vm6666_vm10, 0, %v2519_v55  ;;  %v2306_v48 = vsel %vm912_vm1, %v2304_v42, %v2305_v59  ;;  %v2303_v63 = vsel %vm912_vm1, %v2301_v12, %v2302_v51 }
 0x1c6   : > { %2524 = vst [vmem:[#allocation3 + $0x8] sm:$0xf0] %v2523_v6  ;;  %2461 = vst [vmem:[#allocation3 + $0x10] sm:$0x1f] %v2460_v23  ;;  %v2406_v58 = vshrl.u32 %v2365_v50, 16  ;;  %v2399_v61 = vshrl.u32 %v2364_v14, 16  ;;  %v2330_v62 = vadd.f32 %v2306_v48, %v6617_v54  ;;  %v2329_v13 = vadd.f32 %v2303_v63, %v6620_v28 }
 0x1c7   : > { %2488 = vst [vmem:[#allocation3] sm:$0x1] %v2487_v60  ;;  %2521 = vst [vmem:[#allocation3] sm:$0xf0] %v2520_v22  ;;  %v2409_v1 = vshll.u32 %v2365_v50, 16  ;;  %v5536_v15 = vpop.f32.mrb[96].mxu0 }
 0x1c8   : > { %v2408_v27 = vrot.slane %v2406_v58, 7  ;;  %2553 = vst [vmem:[#allocation3] sm:$0xff] %v6021_v19  ;;  %v2401_v0 = vrot.slane %v2399_v61, 7  ;;  %v2402_v18 = vshll.u32 %v2364_v14, 16  ;;  %v2310_v20 = vrot.slane %v5536_v15, 2  ;;  %v2248_v24 = vpop.f32.mrb[97].mxu0 }
 0x1c9   : > { %v2347_v26 = vadd.f32 %v6634_v10, %v2330_v62  ;;  %v2346_v3 = vadd.f32 %v6634_v10, %v2329_v13  ;;  %v5537_v29 = vpop.f32.mrb[98].mxu0  ;;  %v2307_v4 = vrot.slane %v2248_v24, 2  ;;  %v5941_v28 = vld [vmem:[%s7227_s3 + $0x48] sm:$0xff]   ;;  %v5944_v6 = vld [vmem:[%s7227_s3 + $0x110] sm:$0xff]   ;;  %v2474_v23 = vld [vmem:[#allocation3 + $0x38] sm:$0x1f] }
 0x1ca   : > { %v2411_v25 = vor.u32 %v2409_v1, %v2408_v27  ;;  %v2404_v2 = vor.u32 %v2402_v18, %v2401_v0  ;;  %v2311_v54 = vrot.slane %v5537_v29, 2  ;;  %v2251_v33 = vpop.f32.mrb[99].mxu0  ;;  %v2471_v14 = vld [vmem:[#allocation3 + $0x30] sm:$0x1f]  ;;  %v5946_v24 = vld [vmem:[%s7227_s3 + $0x118] sm:$0xff]  }
 0x1cb   : > { %v2357_v31 = vmax.f32 %v2347_v26, 0.0  ;;  %v2356_v8 = vmax.f32 %v2346_v3, 0.0  ;;  %v2308_v40 = vrot.slane %v2251_v33, 2  ;;  %v5948_v33 = vld [vmem:[%s7227_s3 + $0x120] sm:$0xff]  }
 0x1cc   : > { %v2495_v52 = vld [vmem:[#allocation3 + $0x18] sm:$0x1]  ;;  %v2528_v16 = vld [vmem:[#allocation3 + $0x18] sm:$0xf0]  ;;  %v2469_v7 = vsel %vm6646_vm4, %v2411_v25, %v2468_v36  ;;  %v2466_v49 = vsel %vm6646_vm4, %v2404_v2, %v2465_v43  ;;  %v2312_v37 = vsel %vm912_vm1, %v2310_v20, %v2311_v54  ;;  %v5947_v54 = vld [vmem:[%s7227_s3 + $0x60] sm:$0xff]  }
 0x1cd   : > { %v2496_v35 = vsel %vm6661_vm9, 0, %v2495_v52  ;;  %v2529_v9 = vsel %vm6666_vm10, 0, %v2528_v16  ;;  %v2492_v45 = vld [vmem:[#allocation3 + $0x10] sm:$0x1]  ;;  %v2525_v11 = vld [vmem:[#allocation3 + $0x10] sm:$0xf0]  ;;  %v2367_v42 = vpack.c.bf16 %v2357_v31, %v2357_v31  ;;  %v2366_v59 = vpack.c.bf16 %v2356_v8, %v2356_v8 }
 0x1ce   : > { %2470 = vst [vmem:[#allocation3 + $0x28] sm:$0x1f] %v2469_v7  ;;  %2497 = vst [vmem:[#allocation3 + $0x18] sm:$0x1] %v2496_v35  ;;  %v2493_v41 = vsel %vm6661_vm9, 0, %v2492_v45  ;;  %v2526_v38 = vsel %vm6666_vm10, 0, %v2525_v11  ;;  %v2332_v46 = vadd.f32 %v2312_v37, %v6625_v17  ;;  %v2309_v53 = vsel %vm912_vm1, %v2307_v4, %v2308_v40 }
 0x1cf   : > { %2530 = vst [vmem:[#allocation3 + $0x18] sm:$0xf0] %v2529_v9  ;;  %2467 = vst [vmem:[#allocation3 + $0x20] sm:$0x1f] %v2466_v49  ;;  %v6708_v44 = vld [vmem:[#allocation3 + $0x8] sm:$0xff]  ;;  %v2420_v47 = vshrl.u32 %v2367_v42, 16 }
 0x1d0   : > { %2494 = vst [vmem:[#allocation3 + $0x10] sm:$0x1] %v2493_v41  ;;  %2527 = vst [vmem:[#allocation3 + $0x10] sm:$0xf0] %v2526_v38  ;;  %5555 = vmatmul.mubr.bf16.vlgmr.msra.gmra.mrb[80].mxu1 %v6708_v44  ;;  %5619 = vmatmul.mubr.bf16.vlgmr.msra.gmra.mrb[100].mxu0 %v6708_v44  ;;  %v2413_v50 = vshrl.u32 %v2366_v59, 16  ;;  %v2423_v12 = vshll.u32 %v2367_v42, 16  ;;  %v2349_v51 = vadd.f32 %v6634_v10, %v2332_v46 }
 0x1d1   : > { %5571 = vmatpush3.bf16.msra.mxu1 %v6523_v30  ;;  %5667 = vmatpush3.bf16.msra.mxu0 %v6528_v21  ;;  %v5943_v17 = vld [vmem:[%s7227_s3 + $0x50] sm:$0xff]   ;;  %v2422_v56 = vrot.slane %v2420_v47, 7  ;;  %v2416_v30 = vshll.u32 %v2366_v59, 16  ;;  %v2331_v21 = vadd.f32 %v2309_v53, %v6628_v39  ;;  %v5945_v20 = vld [vmem:[%s7227_s3 + $0x58] sm:$0xff]   ;;  %v2480_v4 = vld [vmem:[#allocation3 + $0x48] sm:$0x1f] }
 0x1d2   : > { %5572 = vmatprep.subr.bf16.mxu1 %v5941_v28  ;;  %5668 = vmatprep.subr.bf16.mxu0 %v5942_v5  ;;  %v2415_v55 = vrot.slane %v2413_v50, 7  ;;  %v2359_v60 = vmax.f32 %v2349_v51, 0.0  ;;  %v2477_v31 = vld [vmem:[#allocation3 + $0x40] sm:$0x1f]  ;;  %v5949_v8 = vld [vmem:[%s7227_s3 + $0x68] sm:$0xff]   ;;  %v5951_v50 = vld [vmem:[%s7227_s3 + $0x70] sm:$0xff]  }
 0x1d3   : > { %v2425_v61 = vor.u32 %v2423_v12, %v2422_v56  ;;  %v2348_v63 = vadd.f32 %v6634_v10, %v2331_v21  ;;  %v5950_v35 = vld [vmem:[%s7227_s3 + $0x128] sm:$0xff]   ;;  %v5952_v12 = vld [vmem:[%s7227_s3 + $0x130] sm:$0xff]   ;;  %v5953_v56 = vld [vmem:[%s7227_s3 + $0x78] sm:$0xff]  }
 0x1d4   : > { %v2418_v48 = vor.u32 %v2416_v30, %v2415_v55  ;;  %v2369_v39 = vpack.c.bf16 %v2359_v60, %v2359_v60  ;;  %v5954_v55 = vld [vmem:[%s7227_s3 + $0x138] sm:$0xff]  }
 0x1d5   : > { %v2501_v22 = vld [vmem:[#allocation3 + $0x28] sm:$0x1]  ;;  %v2534_v58 = vld [vmem:[#allocation3 + $0x28] sm:$0xf0]  ;;  %5573 = vmatpush3.bf16.msra.mxu1 %v5941_v28  ;;  %5669 = vmatpush3.bf16.msra.mxu0 %v5942_v5  ;;  %v2475_v36 = vsel %vm6646_vm4, %v2425_v61, %v2474_v23  ;;  %v2358_v43 = vmax.f32 %v2348_v63, 0.0  ;;  %v5959_v61 = vld [vmem:[%s7227_s3 + $0xd0] sm:$0xff]  }
 0x1d6   : > { %v2502_v27 = vsel %vm6661_vm9, 0, %v2501_v22  ;;  %v2535_v1 = vsel %vm6666_vm10, 0, %v2534_v58  ;;  %v2498_v62 = vld [vmem:[#allocation3 + $0x20] sm:$0x1]  ;;  %v2531_v13 = vld [vmem:[#allocation3 + $0x20] sm:$0xf0]  ;;  %5574 = vmatprep.subr.bf16.mxu1 %v5943_v17  ;;  %5670 = vmatprep.subr.bf16.mxu0 %v5944_v6  ;;  %v2472_v0 = vsel %vm6646_vm4, %v2418_v48, %v2471_v14 }
 0x1d7   : > { %2503 = vst [vmem:[#allocation3 + $0x28] sm:$0x1] %v2502_v27  ;;  %2536 = vst [vmem:[#allocation3 + $0x28] sm:$0xf0] %v2535_v1  ;;  %v2499_v15 = vsel %vm6661_vm9, 0, %v2498_v62  ;;  %v2532_v10 = vsel %vm6666_vm10, 0, %v2531_v13  ;;  %v2368_v2 = vpack.c.bf16 %v2358_v43, %v2358_v43 }
 0x1d8   : > { %v6737_v18 = vld [vmem:[#allocation3 + $0x10] sm:$0xff]  ;;  %2500 = vst [vmem:[#allocation3 + $0x20] sm:$0x1] %v2499_v15  ;;  %2533 = vst [vmem:[#allocation3 + $0x20] sm:$0xf0] %v2532_v10  ;;  %v2434_v25 = vshrl.u32 %v2369_v39, 16 }
 0x1d9   : > { %2476 = vst [vmem:[#allocation3 + $0x38] sm:$0x1f] %v2475_v36  ;;  %2473 = vst [vmem:[#allocation3 + $0x30] sm:$0x1f] %v2472_v0  ;;  %5558 = vmatprep.mubr.bf16.mxu1 %v6737_v18  ;;  %5622 = vmatprep.mubr.bf16.mxu0 %v6737_v18  ;;  %v6747_v26 = vld [vmem:[#allocation3 + $0x18] sm:$0xff]  ;;  %v2437_v29 = vshll.u32 %v2369_v39, 16 }
 0x1da   : > { %5559 = vmatmul.mubr.bf16.gmra.mrb[84].mxu1 %v6747_v26  ;;  %5623 = vmatmul.mubr.bf16.gmra.mrb[104].mxu0 %v6747_v26  ;;  %v2436_v3 = vrot.slane %v2434_v25, 7  ;;  %v2427_v5 = vshrl.u32 %v2368_v2, 16  ;;  %v2430_v7 = vshll.u32 %v2368_v2, 16  ;;  %v5955_v22 = vld [vmem:[%s7227_s3 + $0xc0] sm:$0xff]   ;;  %v5958_v58 = vld [vmem:[%s7227_s3 + $0x188] sm:$0xff]   ;;  %v5960_v48 = vld [vmem:[%s7227_s3 + $0x190] sm:$0xff]  }
 0x1db   : > { %5575 = vmatpush3.bf16.msra.mxu1 %v5943_v17  ;;  %5671 = vmatpush3.bf16.msra.mxu0 %v5944_v6  ;;  %v5961_v63 = vld [vmem:[%s7227_s3 + $0xd8] sm:$0xff]   ;;  %v5963_v1 = vld [vmem:[%s7227_s3 + $0xe0] sm:$0xff]   ;;  %v5965_v13 = vld [vmem:[%s7227_s3 + $0xe8] sm:$0xff]  }
 0x1dc   : > { %5576 = vmatprep.subr.bf16.mxu1 %v5945_v20  ;;  %5672 = vmatprep.subr.bf16.mxu0 %v5946_v24  ;;  %v2439_v28 = vor.u32 %v2437_v29, %v2436_v3  ;;  %v2429_v16 = vrot.slane %v2427_v5, 7  ;;  %v5962_v27 = vld [vmem:[%s7227_s3 + $0x198] sm:$0xff]   ;;  %v5964_v62 = vld [vmem:[%s7227_s3 + $0x1a0] sm:$0xff]   ;;  %v5966_v39 = vld [vmem:[%s7227_s3 + $0x1a8] sm:$0xff]  }
 0x1dd   : > { %v5967_v15 = vld [vmem:[%s7227_s3 + $0xf0] sm:$0xff]   ;;  %v5969_v0 = vld [vmem:[%s7227_s3 + $0xf8] sm:$0xff]   ;;  %v5972_v25 = vld [vmem:[%s7227_s3 + $0x200] sm:$0xff]  }
 0x1de   : > { %v2481_v52 = vsel %vm6646_vm4, %v2439_v28, %v2480_v4  ;;  %v2432_v42 = vor.u32 %v2430_v7, %v2429_v16  ;;  %v6777_v40 = vld [vmem:[#allocation3 + $0x28] sm:$0xff]  ;;  %v5968_v10 = vld [vmem:[%s7227_s3 + $0x1b0] sm:$0xff]   ;;  %v5977_v4 = vld [vmem:[%s7227_s3 + $0x158] sm:$0xff]  }
 0x1df   : > { %5577 = vmatpush3.bf16.msra.mxu1 %v5945_v20  ;;  %5673 = vmatpush3.bf16.msra.mxu0 %v5946_v24  ;;  %2482 = vst [vmem:[#allocation3 + $0x48] sm:$0x1f] %v2481_v52  ;;  %v6771_v59 = vld [vmem:[#allocation3 + $0x20] sm:$0xff]  ;;  %v5970_v20 = vld [vmem:[%s7227_s3 + $0x1b8] sm:$0xff]   ;;  %v5973_v43 = vld [vmem:[%s7227_s3 + $0x148] sm:$0xff]  }
 0x1e0   : > { %v2507_v9 = vld [vmem:[#allocation3 + $0x38] sm:$0x1]  ;;  %v2540_v45 = vld [vmem:[#allocation3 + $0x38] sm:$0xf0]  ;;  %v2504_v11 = vld [vmem:[#allocation3 + $0x30] sm:$0x1]  ;;  %5578 = vmatprep.subr.bf16.mxu1 %v5947_v54  ;;  %5674 = vmatprep.subr.bf16.mxu0 %v5948_v33  ;;  %v2478_v47 = vsel %vm6646_vm4, %v2432_v42, %v2477_v31 }
 0x1e1   : > { %v2508_v49 = vsel %vm6661_vm9, 0, %v2507_v9  ;;  %v2541_v37 = vsel %vm6666_vm10, 0, %v2540_v45  ;;  %v2505_v41 = vsel %vm6661_vm9, 0, %v2504_v11  ;;  %v2537_v38 = vld [vmem:[#allocation3 + $0x30] sm:$0xf0]  ;;  %5562 = vmatprep.mubr.bf16.mxu1 %v6771_v59  ;;  %5626 = vmatprep.mubr.bf16.mxu0 %v6771_v59  ;;  %v5971_v24 = vld [vmem:[%s7227_s3 + $0x140] sm:$0xff]  }
 0x1e2   : > { %2509 = vst [vmem:[#allocation3 + $0x38] sm:$0x1] %v2508_v49  ;;  %2542 = vst [vmem:[#allocation3 + $0x38] sm:$0xf0] %v2541_v37  ;;  %v2538_v46 = vsel %vm6666_vm10, 0, %v2537_v38  ;;  %5563 = vmatmul.mubr.bf16.gmra.mrb[88].mxu1 %v6777_v40  ;;  %5627 = vmatmul.mubr.bf16.gmra.mrb[108].mxu0 %v6777_v40  ;;  %v5974_v3 = vld [vmem:[%s7227_s3 + $0x208] sm:$0xff]  }
 0x1e3   : > { %2506 = vst [vmem:[#allocation3 + $0x30] sm:$0x1] %v2505_v41  ;;  %2539 = vst [vmem:[#allocation3 + $0x30] sm:$0xf0] %v2538_v46  ;;  %5579 = vmatpush3.bf16.msra.mxu1 %v5947_v54  ;;  %5675 = vmatpush3.bf16.msra.mxu0 %v5948_v33  ;;  %v5975_v29 = vld [vmem:[%s7227_s3 + $0x150] sm:$0xff]   ;;  %v5978_v54 = vld [vmem:[%s7227_s3 + $0x218] sm:$0xff]  }
 0x1e4   : > { %2479 = vst [vmem:[#allocation3 + $0x40] sm:$0x1f] %v2478_v47  ;;  %5580 = vmatprep.subr.bf16.mxu1 %v5949_v8  ;;  %5676 = vmatprep.subr.bf16.mxu0 %v5950_v35  ;;  %v5976_v2 = vld [vmem:[%s7227_s3 + $0x210] sm:$0xff]   ;;  %v5979_v33 = vld [vmem:[%s7227_s3 + $0x160] sm:$0xff]   ;;  %v5981_v5 = vld [vmem:[%s7227_s3 + $0x168] sm:$0xff]  }
 0x1e5   : > { %v5980_v28 = vld [vmem:[%s7227_s3 + $0x220] sm:$0xff]   ;;  %v5982_v52 = vld [vmem:[%s7227_s3 + $0x228] sm:$0xff]   ;;  %v5983_v16 = vld [vmem:[%s7227_s3 + $0x170] sm:$0xff]  }
 0x1e6   : > { %v2513_v51 = vld [vmem:[#allocation3 + $0x48] sm:$0x1]  ;;  %v2546_v57 = vld [vmem:[#allocation3 + $0x48] sm:$0xf0]  ;;  %v5984_v7 = vld [vmem:[%s7227_s3 + $0x230] sm:$0xff]  }
 0x1e7   : > { %v2514_v53 = vsel %vm6661_vm9, 0, %v2513_v51  ;;  %v2547_v17 = vsel %vm6666_vm10, 0, %v2546_v57  ;;  %5581 = vmatpush3.bf16.msra.mxu1 %v5949_v8  ;;  %5677 = vmatpush3.bf16.msra.mxu0 %v5950_v35  ;;  %v5985_v31 = vld [vmem:[%s7227_s3 + $0x178] sm:$0xff]   ;;  %v5987_v35 = vld [vmem:[%s7227_s3 + $0x1c0] sm:$0xff]   ;;  %v5988_v9 = vld [vmem:[%s7227_s3 + $0x1c8] sm:$0xff]  }
 0x1e8   : > { %2515 = vst [vmem:[#allocation3 + $0x48] sm:$0x1] %v2514_v53  ;;  %2548 = vst [vmem:[#allocation3 + $0x48] sm:$0xf0] %v2547_v17  ;;  %5582 = vmatprep.subr.bf16.mxu1 %v5951_v50  ;;  %5678 = vmatprep.subr.bf16.mxu0 %v5952_v12  ;;  %v5986_v8 = vld [vmem:[%s7227_s3 + $0x238] sm:$0xff]   ;;  %v5991_v11 = vld [vmem:[%s7227_s3 + $0x1e0] sm:$0xff]  }
 0x1e9   : > { %2555 = vst [vmem:[#allocation3 + $0x48] sm:$0xff] %v6021_v19  ;;  %v6804_v23 = vld [vmem:[#allocation3 + $0x38] sm:$0xff]  ;;  %v5992_v49 = vld [vmem:[%s7227_s3 + $0x1e8] sm:$0xff]   ;;  %v5993_v37 = vld [vmem:[%s7227_s3 + $0x1f0] sm:$0xff]  }
 0x1ea   : > { %v6794_v6 = vld [vmem:[#allocation3 + $0x30] sm:$0xff]  ;;  %v5990_v45 = vld [vmem:[%s7227_s3 + $0x1d8] sm:$0xff]  }
 0x1eb   : > { %v2510_v30 = vld [vmem:[#allocation3 + $0x40] sm:$0x1]  ;;  %v2543_v21 = vld [vmem:[#allocation3 + $0x40] sm:$0xf0]  ;;  %5566 = vmatprep.mubr.bf16.mxu1 %v6794_v6  ;;  %5630 = vmatprep.mubr.bf16.mxu0 %v6794_v6  ;;  %v5994_v41 = vld [vmem:[%s7227_s3 + $0x1f8] sm:$0xff]  }
 0x1ec   : > { %v2511_v14 = vsel %vm6661_vm9, 0, %v2510_v30  ;;  %v2544_v60 = vsel %vm6666_vm10, 0, %v2543_v21  ;;  %5567 = vmatmul.mubr.bf16.gmra.mrb[92].mxu1 %v6804_v23  ;;  %5631 = vmatmul.mubr.bf16.gmra.mrb[112].mxu0 %v6804_v23 }
 0x1ed   : > { %2512 = vst [vmem:[#allocation3 + $0x40] sm:$0x1] %v2511_v14  ;;  %2545 = vst [vmem:[#allocation3 + $0x40] sm:$0xf0] %v2544_v60  ;;  %5583 = vmatpush3.bf16.msra.mxu1 %v5951_v50  ;;  %5679 = vmatpush3.bf16.msra.mxu0 %v5952_v12 }
 0x1ee   : > { %5682 = vmatprep.mubr.bf16.mxu0 %v6708_v44  ;;  %5584 = vmatprep.subr.bf16.mxu1 %v5953_v56 }
 0x1ef   : > { %5680 = vmatprep.subr.bf16.mxu0 %v5954_v55  ;;  %5586 = vmatprep.mubr.bf16.mxu1 %v6021_v19 }
 0x1f1   : > { %5585 = vmatpush3.bf16.msra.mxu1 %v5953_v56  ;;  %5681 = vmatpush3.bf16.msra.mxu0 %v5954_v55 }
 0x1f2   : > { %5634 = vmatprep.subr.bf16.mxu1 %v5955_v22  ;;  %5730 = vmatprep.subr.bf16.mxu0 %v5956_v34 }
 0x1f4   : > { %5587 = vmatmul.mubr.bf16.vlgmr.msra.gmra.mrb[96].mxu1 %v6708_v44  ;;  %5683 = vmatmul.mubr.bf16.vlgmr.msra.gmra.mrb[116].mxu0 %v6737_v18  ;;  %v6868_v36 = vld [vmem:[#allocation3 + $0x40] sm:$0xff] }
 0x1f5   : > { %5590 = vmatprep.mubr.bf16.mxu1 %v6737_v18  ;;  %5635 = vmatpush3.bf16.msra.mxu1 %v5955_v22 }
 0x1f6   : > { %5686 = vmatprep.mubr.bf16.mxu0 %v6747_v26  ;;  %5731 = vmatpush3.bf16.msra.mxu0 %v5956_v34 }
 0x1f7   : > { %5636 = vmatprep.subr.bf16.mxu1 %v5957_v32  ;;  %5732 = vmatprep.subr.bf16.mxu0 %v5958_v58 }
 0x1f9   : > { %5637 = vmatpush3.bf16.msra.mxu1 %v5957_v32 }
 0x1fa   : > { %5733 = vmatpush3.bf16.msra.mxu0 %v5958_v58  ;;  %5638 = vmatprep.subr.bf16.mxu1 %v5959_v61 }
 0x1fb   : > { %5734 = vmatprep.subr.bf16.mxu0 %v5960_v48 }
 0x1fc   : > { %5591 = vmatmul.mubr.bf16.gmra.mrb[100].mxu1 %v6747_v26  ;;  %5687 = vmatmul.mubr.bf16.gmra.mrb[120].mxu0 %v6771_v59 }
 0x1fd   : > { %5594 = vmatprep.mubr.bf16.mxu1 %v6771_v59  ;;  %5639 = vmatpush3.bf16.msra.mxu1 %v5959_v61 }
 0x1fe   : > { %5690 = vmatprep.mubr.bf16.mxu0 %v6777_v40  ;;  %5735 = vmatpush3.bf16.msra.mxu0 %v5960_v48 }
 0x1ff   : > { %5640 = vmatprep.subr.bf16.mxu1 %v5961_v63  ;;  %5736 = vmatprep.subr.bf16.mxu0 %v5962_v27 }
 0x201   : > { %5641 = vmatpush3.bf16.msra.mxu1 %v5961_v63 }
 0x202   : > { %5737 = vmatpush3.bf16.msra.mxu0 %v5962_v27  ;;  %5642 = vmatprep.subr.bf16.mxu1 %v5963_v1 }
 0x203   : > { %5738 = vmatprep.subr.bf16.mxu0 %v5964_v62 }
 0x204   : > { %5595 = vmatmul.mubr.bf16.gmra.mrb[104].mxu1 %v6777_v40  ;;  %5691 = vmatmul.mubr.bf16.gmra.mrb[124].mxu0 %v6794_v6 }
 0x205   : > { %5598 = vmatprep.mubr.bf16.mxu1 %v6794_v6  ;;  %5643 = vmatpush3.bf16.msra.mxu1 %v5963_v1 }
 0x206   : > { %5694 = vmatprep.mubr.bf16.mxu0 %v6804_v23  ;;  %5739 = vmatpush3.bf16.msra.mxu0 %v5964_v62 }
 0x207   : > { %5644 = vmatprep.subr.bf16.mxu1 %v5965_v13  ;;  %5740 = vmatprep.subr.bf16.mxu0 %v5966_v39 }
 0x209   : > { %5645 = vmatpush3.bf16.msra.mxu1 %v5965_v13 }
 0x20a   : > { %5741 = vmatpush3.bf16.msra.mxu0 %v5966_v39  ;;  %5646 = vmatprep.subr.bf16.mxu1 %v5967_v15 }
 0x20b   : > { %5742 = vmatprep.subr.bf16.mxu0 %v5968_v10 }
 0x20c   : > { %5599 = vmatmul.mubr.bf16.gmra.mrb[108].mxu1 %v6804_v23  ;;  %5695 = vmatmul.mubr.bf16.gmra.mrb[128].mxu0 %v6868_v36 }
 0x20d   : > { %5647 = vmatpush3.bf16.msra.mxu1 %v5967_v15  ;;  %5650 = vmatprep.mubr.bf16.mxu1 %v6708_v44 }
 0x20e   : > { %5743 = vmatpush3.bf16.msra.mxu0 %v5968_v10  ;;  %5746 = vmatprep.mubr.bf16.mxu0 %v6737_v18 }
 0x20f   : > { %5648 = vmatprep.subr.bf16.mxu1 %v5969_v0  ;;  %5744 = vmatprep.subr.bf16.mxu0 %v5970_v20 }
 0x211   : > { %5649 = vmatpush3.bf16.msra.mxu1 %v5969_v0 }
 0x212   : > { %5745 = vmatpush3.bf16.msra.mxu0 %v5970_v20  ;;  %5698 = vmatprep.subr.bf16.mxu1 %v5971_v24 }
 0x213   : > { %5794 = vmatprep.subr.bf16.mxu0 %v5972_v25 }
 0x214   : > { %5651 = vmatmul.mubr.bf16.vlgmr.msra.gmra.mrb[112].mxu1 %v6737_v18 }
 0x215   : > { %5747 = vmatmul.mubr.bf16.vlgmr.msra.gmra.mrb[132].mxu0 %v6747_v26  ;;  %5654 = vmatprep.mubr.bf16.mxu1 %v6747_v26 }
 0x216   : > { %5699 = vmatpush3.bf16.msra.mxu1 %v5971_v24  ;;  %5750 = vmatprep.mubr.bf16.mxu0 %v6771_v59 }
 0x217   : > { %5795 = vmatpush3.bf16.msra.mxu0 %v5972_v25  ;;  %5700 = vmatprep.subr.bf16.mxu1 %v5973_v43 }
 0x218   : > { %5796 = vmatprep.subr.bf16.mxu0 %v5974_v3 }
 0x21a   : > { %5701 = vmatpush3.bf16.msra.mxu1 %v5973_v43 }
 0x21b   : > { %5797 = vmatpush3.bf16.msra.mxu0 %v5974_v3  ;;  %5702 = vmatprep.subr.bf16.mxu1 %v5975_v29 }
 0x21c   : > { %5655 = vmatmul.mubr.bf16.gmra.mrb[116].mxu1 %v6771_v59  ;;  %5798 = vmatprep.subr.bf16.mxu0 %v5976_v2 }
 0x21d   : > { %5751 = vmatmul.mubr.bf16.gmra.mrb[136].mxu0 %v6777_v40  ;;  %5658 = vmatprep.mubr.bf16.mxu1 %v6777_v40 }
 0x21e   : > { %5703 = vmatpush3.bf16.msra.mxu1 %v5975_v29  ;;  %5754 = vmatprep.mubr.bf16.mxu0 %v6794_v6 }
 0x21f   : > { %5799 = vmatpush3.bf16.msra.mxu0 %v5976_v2  ;;  %5704 = vmatprep.subr.bf16.mxu1 %v5977_v4 }
 0x220   : > { %5800 = vmatprep.subr.bf16.mxu0 %v5978_v54 }
 0x222   : > { %5705 = vmatpush3.bf16.msra.mxu1 %v5977_v4 }
 0x223   : > { %5801 = vmatpush3.bf16.msra.mxu0 %v5978_v54  ;;  %5706 = vmatprep.subr.bf16.mxu1 %v5979_v33 }
 0x224   : > { %5659 = vmatmul.mubr.bf16.gmra.mrb[120].mxu1 %v6794_v6  ;;  %5802 = vmatprep.subr.bf16.mxu0 %v5980_v28 }
 0x225   : > { %5755 = vmatmul.mubr.bf16.gmra.mrb[140].mxu0 %v6804_v23  ;;  %5662 = vmatprep.mubr.bf16.mxu1 %v6804_v23 }
 0x226   : > { %5707 = vmatpush3.bf16.msra.mxu1 %v5979_v33  ;;  %5758 = vmatprep.mubr.bf16.mxu0 %v6868_v36 }
 0x227   : > { %5803 = vmatpush3.bf16.msra.mxu0 %v5980_v28  ;;  %5708 = vmatprep.subr.bf16.mxu1 %v5981_v5 }
 0x228   : > { %5804 = vmatprep.subr.bf16.mxu0 %v5982_v52 }
 0x22a   : > { %5709 = vmatpush3.bf16.msra.mxu1 %v5981_v5 }
 0x22b   : > { %5805 = vmatpush3.bf16.msra.mxu0 %v5982_v52  ;;  %5710 = vmatprep.subr.bf16.mxu1 %v5983_v16 }
 0x22c   : > { %5663 = vmatmul.mubr.bf16.gmra.mrb[124].mxu1 %v6868_v36  ;;  %5806 = vmatprep.subr.bf16.mxu0 %v5984_v7 }
 0x22d   : > { %5759 = vmatmul.mubr.bf16.gmra.mrb[144].mxu0 %v6021_v19  ;;  %5714 = vmatprep.mubr.bf16.mxu1 %v6708_v44  ;;  %v5989_v44 = vld [vmem:[%s7227_s3 + $0x1d0] sm:$0xff]  }
 0x22e   : > { %5711 = vmatpush3.bf16.msra.mxu1 %v5983_v16  ;;  %5810 = vmatprep.mubr.bf16.mxu0 %v6737_v18 }
 0x22f   : > { %5807 = vmatpush3.bf16.msra.mxu0 %v5984_v7  ;;  %5712 = vmatprep.subr.bf16.mxu1 %v5985_v31 }
 0x230   : > { %5808 = vmatprep.subr.bf16.mxu0 %v5986_v8 }
 0x232   : > { %5713 = vmatpush3.bf16.msra.mxu1 %v5985_v31 }
 0x233   : > { %5809 = vmatpush3.bf16.msra.mxu0 %v5986_v8  ;;  %5762 = vmatprep.subr.bf16.mxu1 %v5987_v35 }
 0x235   : > { %5715 = vmatmul.mubr.bf16.vlgmr.msra.gmra.mrb[128].mxu1 %v6737_v18 }
 0x236   : > { %5811 = vmatmul.mubr.bf16.vlgmr.msra.gmra.mrb[148].mxu0 %v6747_v26  ;;  %5718 = vmatprep.mubr.bf16.mxu1 %v6747_v26 }
 0x237   : > { %5763 = vmatpush3.bf16.msra.mxu1 %v5987_v35  ;;  %5814 = vmatprep.mubr.bf16.mxu0 %v6771_v59 }
 0x238   : > { %5764 = vmatprep.subr.bf16.mxu1 %v5988_v9 }
 0x23b   : > { %5765 = vmatpush3.bf16.msra.mxu1 %v5988_v9 }
 0x23c   : > { %5766 = vmatprep.subr.bf16.mxu1 %v5989_v44 }
 0x23d   : > { %5719 = vmatmul.mubr.bf16.gmra.mrb[132].mxu1 %v6771_v59 }
 0x23e   : > { %5815 = vmatmul.mubr.bf16.gmra.mrb[152].mxu0 %v6777_v40  ;;  %5722 = vmatprep.mubr.bf16.mxu1 %v6777_v40 }
 0x23f   : > { %5767 = vmatpush3.bf16.msra.mxu1 %v5989_v44  ;;  %5818 = vmatprep.mubr.bf16.mxu0 %v6794_v6 }
 0x240   : > { %5768 = vmatprep.subr.bf16.mxu1 %v5990_v45 }
 0x243   : > { %5769 = vmatpush3.bf16.msra.mxu1 %v5990_v45 }
 0x244   : > { %5770 = vmatprep.subr.bf16.mxu1 %v5991_v11 }
 0x245   : > { %5723 = vmatmul.mubr.bf16.gmra.mrb[136].mxu1 %v6794_v6 }
 0x246   : > { %5819 = vmatmul.mubr.bf16.gmra.mrb[156].mxu0 %v6804_v23  ;;  %5726 = vmatprep.mubr.bf16.mxu1 %v6804_v23 }
 0x247   : > { %5771 = vmatpush3.bf16.msra.mxu1 %v5991_v11  ;;  %5822 = vmatprep.mubr.bf16.mxu0 %v6868_v36 }
 0x248   : > { %5772 = vmatprep.subr.bf16.mxu1 %v5992_v49 }
 0x24b   : > { %5773 = vmatpush3.bf16.msra.mxu1 %v5992_v49 }
 0x24c   : > { %5774 = vmatprep.subr.bf16.mxu1 %v5993_v37 }
 0x24d   : > { %5727 = vmatmul.mubr.bf16.gmra.mrb[140].mxu1 %v6868_v36 }
 0x24e   : > { %5778 = vmatprep.mubr.bf16.mxu1 %v6737_v18  ;;  %5823 = vmatmul.mubr.bf16.gmra.mrb[160].mxu0 %v6021_v19 }
 0x24f   : > { %5775 = vmatpush3.bf16.msra.mxu1 %v5993_v37 }
 0x250   : > { %5776 = vmatprep.subr.bf16.mxu1 %v5994_v41 }
 0x253   : > { %5777 = vmatpush3.bf16.msra.mxu1 %v5994_v41 }
 0x256   : > { %5779 = vmatmul.mubr.bf16.vlgmr.msra.gmra.mrb[144].mxu1 %v6747_v26 }
 0x257   : > { %5782 = vmatprep.mubr.bf16.mxu1 %v6771_v59 }
 0x25e   : > { %5783 = vmatmul.mubr.bf16.gmra.mrb[148].mxu1 %v6777_v40 }
 0x25f   : > { %5786 = vmatprep.mubr.bf16.mxu1 %v6794_v6 }
 0x266   : > { %5787 = vmatmul.mubr.bf16.gmra.mrb[152].mxu1 %v6804_v23 }
 0x267   : > { %5790 = vmatprep.mubr.bf16.mxu1 %v6868_v36 }
 0x26e   : > { %5791 = vmatmul.mubr.bf16.gmra.mrb[156].mxu1 %v6021_v19 }
 0x2a3   : > { %v6990_v18 = vpop.f32.mrb[80].mxu1  ;;  %v5620_v38 = vpop.f32.mrb[100].mxu0 }
 0x2a4   : > { %v6992_v42 = vpop.f32.mrb[81].mxu1  ;;  %v3042_v46 = vpop.f32.mrb[101].mxu0  ;;  %v3124_v50 = vrot.slane %v5620_v38, 2 }
 0x2a5   : > { %v5557_v47 = vpop.f32.mrb[82].mxu1  ;;  %v5621_v26 = vpop.f32.mrb[102].mxu0  ;;  %v3121_v51 = vrot.slane %v3042_v46, 2 }
 0x2a6   : > { %v3125_v59 = vrot.slane %v5621_v26, 2  ;;  %v2665_v12 = vpop.f32.mrb[83].mxu1  ;;  %v3045_v40 = vpop.f32.mrb[103].mxu0 }
 0x2a7   : > { %v3122_v57 = vrot.slane %v3045_v40, 2 }
 0x2a8   : > { %v6995_v53 = vsel %vm912_vm1, %v3124_v50, %v3125_v59 }
 0x2a9   : > { %v6998_v17 = vsel %vm912_vm1, %v3121_v51, %v3122_v57 }
 0x2ad   : > { %v7000_v19 = vpop.f32.mrb[84].mxu1  ;;  %v5624_v6 = vpop.f32.mrb[104].mxu0 }
 0x2ae   : > { %v7002_v56 = vpop.f32.mrb[85].mxu1  ;;  %v3058_v55 = vpop.f32.mrb[105].mxu0  ;;  %v3130_v23 = vrot.slane %v5624_v6, 2 }
 0x2af   : > { %v5561_v30 = vpop.f32.mrb[86].mxu1  ;;  %v5625_v21 = vpop.f32.mrb[106].mxu0  ;;  %v3127_v34 = vrot.slane %v3058_v55, 2 }
 0x2b0   : > { %v3131_v14 = vrot.slane %v5625_v21, 2  ;;  %v2679_v60 = vpop.f32.mrb[87].mxu1  ;;  %v3061_v22 = vpop.f32.mrb[107].mxu0 }
 0x2b1   : > { %v3128_v32 = vrot.slane %v3061_v22, 2 }
 0x2b2   : > { %v7005_v58 = vsel %vm912_vm1, %v3130_v23, %v3131_v14 }
 0x2b3   : > { %v7008_v61 = vsel %vm912_vm1, %v3127_v34, %v3128_v32 }
 0x2b5   : > { %v7010_v48 = vpop.f32.mrb[88].mxu1  ;;  %v5628_v63 = vpop.f32.mrb[108].mxu0 }
 0x2b6   : > { %v7012_v27 = vpop.f32.mrb[89].mxu1  ;;  %v3074_v1 = vpop.f32.mrb[109].mxu0  ;;  %v3136_v39 = vrot.slane %v5628_v63, 2 }
 0x2b7   : > { %v5565_v62 = vpop.f32.mrb[90].mxu1  ;;  %v5629_v13 = vpop.f32.mrb[110].mxu0  ;;  %v3133_v0 = vrot.slane %v3074_v1, 2 }
 0x2b8   : > { %v3137_v15 = vrot.slane %v5629_v13, 2  ;;  %v2693_v10 = vpop.f32.mrb[91].mxu1  ;;  %v3077_v36 = vpop.f32.mrb[111].mxu0 }
 0x2b9   : > { %v3134_v20 = vrot.slane %v3077_v36, 2 }
 0x2ba   : > { %v7015_v24 = vsel %vm912_vm1, %v3136_v39, %v3137_v15 }
 0x2bb   : > { %v7018_v25 = vsel %vm912_vm1, %v3133_v0, %v3134_v20 }
 0x2bf   : > { %v7020_v43 = vpop.f32.mrb[92].mxu1  ;;  %v5632_v3 = vpop.f32.mrb[112].mxu0 }
 0x2c0   : > { %v7022_v29 = vpop.f32.mrb[93].mxu1  ;;  %v3090_v2 = vpop.f32.mrb[113].mxu0  ;;  %v3142_v33 = vrot.slane %v5632_v3, 2 }
 0x2c1   : > { %v5569_v4 = vpop.f32.mrb[94].mxu1  ;;  %v5633_v54 = vpop.f32.mrb[114].mxu0  ;;  %v3139_v16 = vrot.slane %v3090_v2, 2 }
 0x2c2   : > { %v3143_v28 = vrot.slane %v5633_v54, 2  ;;  %v2707_v5 = vpop.f32.mrb[95].mxu1  ;;  %v3093_v52 = vpop.f32.mrb[115].mxu0 }
 0x2c3   : > { %v3140_v7 = vrot.slane %v3093_v52, 2 }
 0x2c4   : > { %v7025_v31 = vsel %vm912_vm1, %v3142_v33, %v3143_v28 }
 0x2c5   : > { %v7028_v8 = vsel %vm912_vm1, %v3139_v16, %v3140_v7 }
 0x2c7   : > { %v5588_v35 = vpop.f32.mrb[96].mxu1  ;;  %v5684_v9 = vpop.f32.mrb[116].mxu0 }
 0x2c8   : > { %v2824_v44 = vpop.f32.mrb[97].mxu1  ;;  %v3431_v45 = vpop.f32.mrb[117].mxu0  ;;  %v2906_v37 = vrot.slane %v5588_v35, 1  ;;  %v3513_v41 = vrot.slane %v5684_v9, 1 }
 0x2c9   : > { %v5589_v11 = vpop.f32.mrb[98].mxu1  ;;  %v5685_v49 = vpop.f32.mrb[118].mxu0  ;;  %v2903_v50 = vrot.slane %v2824_v44, 1  ;;  %v3510_v59 = vrot.slane %v3431_v45, 1 }
 0x2ca   : > { %v2907_v38 = vrot.slane %v5589_v11, 1  ;;  %v3514_v46 = vrot.slane %v5685_v49, 1  ;;  %v2827_v47 = vpop.f32.mrb[99].mxu1  ;;  %v3434_v26 = vpop.f32.mrb[119].mxu0 }
 0x2cb   : > { %v2904_v12 = vrot.slane %v2827_v47, 1  ;;  %v3511_v40 = vrot.slane %v3434_v26, 1 }
 0x2cc   : > { %v2908_v51 = vsel %vm663_vm0, %v2906_v37, %v2907_v38  ;;  %v7032_v57 = vsel %vm663_vm0, %v3513_v41, %v3514_v46 }
 0x2cd   : > { %v2905_v6 = vsel %vm663_vm0, %v2903_v50, %v2904_v12  ;;  %v2936_v55 = vadd.f32 %v6990_v18, %v2908_v51  ;;  %v7037_v30 = vsel %vm663_vm0, %v3510_v59, %v3511_v40 }
 0x2ce   : > { %v2935_v21 = vadd.f32 %v2905_v6, %v6992_v42 }
 0x2cf   : > { %v5592_v23 = vpop.f32.mrb[100].mxu1  ;;  %v5688_v14 = vpop.f32.mrb[120].mxu0  ;;  %v7041_v60 = vadd.f32 %v6995_v53, %v2936_v55 }
 0x2d0   : > { %v2840_v22 = vpop.f32.mrb[101].mxu1  ;;  %v3447_v34 = vpop.f32.mrb[121].mxu0  ;;  %v7044_v32 = vadd.f32 %v6998_v17, %v2935_v21  ;;  %v2912_v62 = vrot.slane %v5592_v23, 1  ;;  %v3519_v13 = vrot.slane %v5688_v14, 1 }
 0x2d1   : > { %v5593_v63 = vpop.f32.mrb[102].mxu1  ;;  %v5689_v1 = vpop.f32.mrb[122].mxu0  ;;  %v2909_v36 = vrot.slane %v2840_v22, 1  ;;  %v3516_v42 = vrot.slane %v3447_v34, 1 }
 0x2d2   : > { %v2913_v18 = vrot.slane %v5593_v63, 1  ;;  %v3520_v39 = vrot.slane %v5689_v1, 1  ;;  %v2843_v15 = vpop.f32.mrb[103].mxu1  ;;  %v3450_v10 = vpop.f32.mrb[123].mxu0 }
 0x2d3   : > { %v2910_v0 = vrot.slane %v2843_v15, 1  ;;  %v3517_v20 = vrot.slane %v3450_v10, 1 }
 0x2d4   : > { %v2914_v53 = vsel %vm663_vm0, %v2912_v62, %v2913_v18  ;;  %v7048_v3 = vsel %vm663_vm0, %v3519_v13, %v3520_v39 }
 0x2d5   : > { %v2911_v17 = vsel %vm663_vm0, %v2909_v36, %v2910_v0  ;;  %v2938_v2 = vadd.f32 %v7000_v19, %v2914_v53  ;;  %v7053_v4 = vsel %vm663_vm0, %v3516_v42, %v3517_v20 }
 0x2d6   : > { %v2937_v54 = vadd.f32 %v2911_v17, %v7002_v56 }
 0x2d7   : > { %v5596_v33 = vpop.f32.mrb[104].mxu1  ;;  %v5692_v28 = vpop.f32.mrb[124].mxu0  ;;  %v3156_v5 = vadd.f32 %v7005_v58, %v2938_v2 }
 0x2d8   : > { %v2856_v52 = vpop.f32.mrb[105].mxu1  ;;  %v3463_v16 = vpop.f32.mrb[125].mxu0  ;;  %v3155_v7 = vadd.f32 %v7008_v61, %v2937_v54  ;;  %v2918_v44 = vrot.slane %v5596_v33, 1  ;;  %v3525_v45 = vrot.slane %v5692_v28, 1 }
 0x2d9   : > { %v5597_v35 = vpop.f32.mrb[106].mxu1  ;;  %v5693_v9 = vpop.f32.mrb[126].mxu0  ;;  %v2915_v41 = vrot.slane %v2856_v52, 1  ;;  %v3522_v38 = vrot.slane %v3463_v16, 1 }
 0x2da   : > { %v2919_v11 = vrot.slane %v5597_v35, 1  ;;  %v3526_v49 = vrot.slane %v5693_v9, 1  ;;  %v2859_v19 = vpop.f32.mrb[107].mxu1  ;;  %v3466_v37 = vpop.f32.mrb[127].mxu0 }
 0x2db   : > { %v2916_v46 = vrot.slane %v2859_v19, 1  ;;  %v3523_v56 = vrot.slane %v3466_v37, 1 }
 0x2dc   : > { %v2920_v47 = vsel %vm663_vm0, %v2918_v44, %v2919_v11  ;;  %v3527_v58 = vsel %vm663_vm0, %v3525_v45, %v3526_v49 }
 0x2dd   : > { %v2917_v26 = vsel %vm663_vm0, %v2915_v41, %v2916_v46  ;;  %v2940_v61 = vadd.f32 %v7010_v48, %v2920_v47  ;;  %v3524_v50 = vsel %vm663_vm0, %v3522_v38, %v3523_v56 }
 0x2de   : > { %v2939_v59 = vadd.f32 %v2917_v26, %v7012_v27 }
 0x2df   : > { %v5600_v12 = vpop.f32.mrb[108].mxu1  ;;  %v5696_v40 = vpop.f32.mrb[128].mxu0  ;;  %v3158_v51 = vadd.f32 %v7015_v24, %v2940_v61 }
 0x2e0   : > { %v2872_v6 = vpop.f32.mrb[109].mxu1  ;;  %v3479_v55 = vpop.f32.mrb[129].mxu0  ;;  %v3157_v21 = vadd.f32 %v7018_v25, %v2939_v59  ;;  %v2924_v22 = vrot.slane %v5600_v12, 1  ;;  %v3531_v34 = vrot.slane %v5696_v40, 1 }
 0x2e1   : > { %v5601_v23 = vpop.f32.mrb[110].mxu1  ;;  %v5697_v14 = vpop.f32.mrb[130].mxu0  ;;  %v2921_v13 = vrot.slane %v2872_v6, 1  ;;  %v3528_v18 = vrot.slane %v3479_v55, 1 }
 0x2e2   : > { %v2925_v63 = vrot.slane %v5601_v23, 1  ;;  %v3532_v1 = vrot.slane %v5697_v14, 1  ;;  %v2875_v62 = vpop.f32.mrb[111].mxu1  ;;  %v3482_v48 = vpop.f32.mrb[131].mxu0 }
 0x2e3   : > { %v2922_v39 = vrot.slane %v2875_v62, 1  ;;  %v3529_v27 = vrot.slane %v3482_v48, 1 }
 0x2e4   : > { %v2926_v15 = vsel %vm663_vm0, %v2924_v22, %v2925_v63  ;;  %v3533_v24 = vsel %vm663_vm0, %v3531_v34, %v3532_v1 }
 0x2e5   : > { %v2923_v10 = vsel %vm663_vm0, %v2921_v13, %v2922_v39  ;;  %v2942_v25 = vadd.f32 %v7020_v43, %v2926_v15  ;;  %v3530_v36 = vsel %vm663_vm0, %v3528_v18, %v3529_v27 }
 0x2e6   : > { %v2941_v42 = vadd.f32 %v2923_v10, %v7022_v29 }
 0x2e7   : > { %v5652_v0 = vpop.f32.mrb[112].mxu1  ;;  %v3160_v20 = vadd.f32 %v7025_v31, %v2942_v25 }
 0x2e8   : > { %v3325_v53 = vadd.f32 %v5652_v0, %v7041_v60  ;;  %v7074_v17 = vpop.f32.mrb[132].mxu0  ;;  %v3269_v2 = vpop.f32.mrb[113].mxu1  ;;  %v3159_v54 = vadd.f32 %v7028_v8, %v2941_v42 }
 0x2e9   : > { %v3324_v33 = vadd.f32 %v3269_v2, %v7044_v32  ;;  %v7078_v28 = vpop.f32.mrb[133].mxu0  ;;  %v5653_v52 = vpop.f32.mrb[114].mxu1 }
 0x2ea   : > { %v3543_v43 = vadd.f32 %v7032_v57, %v3325_v53  ;;  %v5749_v16 = vpop.f32.mrb[134].mxu0  ;;  %v3272_v35 = vpop.f32.mrb[115].mxu1 }
 0x2eb   : > { %v3542_v29 = vadd.f32 %v7037_v30, %v3324_v33  ;;  %v3879_v9 = vpop.f32.mrb[135].mxu0 }
 0x2ef   : > { %v5656_v31 = vpop.f32.mrb[116].mxu1 }
 0x2f0   : > { %v3327_v44 = vadd.f32 %v5656_v31, %v3156_v5  ;;  %v7082_v60 = vpop.f32.mrb[136].mxu0  ;;  %v3283_v45 = vpop.f32.mrb[117].mxu1 }
 0x2f1   : > { %v3326_v11 = vadd.f32 %v3283_v45, %v3155_v7  ;;  %v7084_v49 = vpop.f32.mrb[137].mxu0  ;;  %v5657_v8 = vpop.f32.mrb[118].mxu1 }
 0x2f2   : > { %v7087_v32 = vadd.f32 %v7048_v3, %v3327_v44  ;;  %v5753_v19 = vpop.f32.mrb[138].mxu0  ;;  %v3286_v37 = vpop.f32.mrb[119].mxu1 }
 0x2f3   : > { %v7090_v57 = vadd.f32 %v7053_v4, %v3326_v11  ;;  %v3893_v41 = vpop.f32.mrb[139].mxu0 }
 0x2f7   : > { %v5660_v30 = vpop.f32.mrb[120].mxu1 }
 0x2f8   : > { %v3329_v38 = vadd.f32 %v5660_v30, %v3158_v51  ;;  %v7092_v46 = vpop.f32.mrb[140].mxu0  ;;  %v3297_v5 = vpop.f32.mrb[121].mxu1 }
 0x2f9   : > { %v3328_v56 = vadd.f32 %v3297_v5, %v3157_v21  ;;  %v7094_v47 = vpop.f32.mrb[141].mxu0  ;;  %v5661_v7 = vpop.f32.mrb[122].mxu1 }
 0x2fa   : > { %v7096_v26 = vadd.f32 %v3527_v58, %v3329_v38  ;;  %v5757_v61 = vpop.f32.mrb[142].mxu0  ;;  %v3300_v3 = vpop.f32.mrb[123].mxu1 }
 0x2fb   : > { %v7098_v59 = vadd.f32 %v3524_v50, %v3328_v56  ;;  %v3907_v12 = vpop.f32.mrb[143].mxu0 }
 0x2ff   : > { %v5664_v40 = vpop.f32.mrb[124].mxu1 }
 0x300   : > { %v3331_v4 = vadd.f32 %v5664_v40, %v3160_v20  ;;  %v3311_v6 = vpop.f32.mrb[125].mxu1  ;;  %v7100_v55 = vpop.f32.mrb[144].mxu0 }
 0x301   : > { %v3330_v51 = vadd.f32 %v3311_v6, %v3159_v54  ;;  %v5665_v23 = vpop.f32.mrb[126].mxu1  ;;  %v7102_v14 = vpop.f32.mrb[145].mxu0 }
 0x302   : > { %v7104_v21 = vadd.f32 %v3533_v24, %v3331_v4  ;;  %v3314_v22 = vpop.f32.mrb[127].mxu1  ;;  %v5761_v34 = vpop.f32.mrb[146].mxu0 }
 0x303   : > { %v7106_v58 = vadd.f32 %v3530_v36, %v3330_v51  ;;  %v3921_v63 = vpop.f32.mrb[147].mxu0 }
 0x308   : > { %v5716_v1 = vpop.f32.mrb[128].mxu1 }
 0x309   : > { %v5812_v50 = vpop.f32.mrb[148].mxu0  ;;  %v3649_v62 = vpop.f32.mrb[129].mxu1  ;;  %v3731_v18 = vrot.slane %v5716_v1, 2 }
 0x30a   : > { %v4256_v48 = vpop.f32.mrb[149].mxu0  ;;  %v5717_v13 = vpop.f32.mrb[130].mxu1  ;;  %v4338_v10 = vrot.slane %v5812_v50, 2  ;;  %v3728_v25 = vrot.slane %v3649_v62, 2 }
 0x30b   : > { %v3732_v39 = vrot.slane %v5717_v13, 2  ;;  %v5813_v27 = vpop.f32.mrb[150].mxu0  ;;  %v3652_v15 = vpop.f32.mrb[131].mxu1  ;;  %v4335_v20 = vrot.slane %v4256_v48, 2 }
 0x30c   : > { %v4339_v42 = vrot.slane %v5813_v27, 2  ;;  %v3729_v0 = vrot.slane %v3652_v15, 2  ;;  %v4259_v24 = vpop.f32.mrb[151].mxu0 }
 0x30d   : > { %v3733_v53 = vsel %vm912_vm1, %v3731_v18, %v3732_v39  ;;  %v4336_v36 = vrot.slane %v4259_v24, 2 }
 0x30e   : > { %v3761_v2 = vadd.f32 %v3733_v53, %v3543_v43  ;;  %v7110_v54 = vsel %vm912_vm1, %v4338_v10, %v4339_v42  ;;  %v3730_v33 = vsel %vm912_vm1, %v3728_v25, %v3729_v0 }
 0x30f   : > { %v3760_v52 = vadd.f32 %v3730_v33, %v3542_v29  ;;  %v7114_v16 = vsel %vm912_vm1, %v4335_v20, %v4336_v36 }
 0x310   : > { %v5720_v35 = vpop.f32.mrb[132].mxu1  ;;  %v7117_v9 = vadd.f32 %v7074_v17, %v3761_v2 }
 0x311   : > { %v5816_v31 = vpop.f32.mrb[152].mxu0  ;;  %v3665_v44 = vpop.f32.mrb[133].mxu1  ;;  %v7120_v45 = vadd.f32 %v7078_v28, %v3760_v52  ;;  %v3737_v8 = vrot.slane %v5720_v35, 2 }
 0x312   : > { %v4272_v11 = vpop.f32.mrb[153].mxu0  ;;  %v5721_v43 = vpop.f32.mrb[134].mxu1  ;;  %v4344_v30 = vrot.slane %v5816_v31, 2  ;;  %v3734_v29 = vrot.slane %v3665_v44, 2 }
 0x313   : > { %v3738_v19 = vrot.slane %v5721_v43, 2  ;;  %v5817_v37 = vpop.f32.mrb[154].mxu0  ;;  %v3668_v41 = vpop.f32.mrb[135].mxu1  ;;  %v4341_v7 = vrot.slane %v4272_v11, 2 }
 0x314   : > { %v4345_v38 = vrot.slane %v5817_v37, 2  ;;  %v3735_v5 = vrot.slane %v3668_v41, 2  ;;  %v4275_v56 = vpop.f32.mrb[155].mxu0 }
 0x315   : > { %v3739_v17 = vsel %vm912_vm1, %v3737_v8, %v3738_v19  ;;  %v4342_v61 = vrot.slane %v4275_v56, 2 }
 0x316   : > { %v3763_v3 = vadd.f32 %v3739_v17, %v7087_v32  ;;  %v7125_v28 = vsel %vm912_vm1, %v4344_v30, %v4345_v38  ;;  %v3736_v12 = vsel %vm912_vm1, %v3734_v29, %v3735_v5 }
 0x317   : > { %v3762_v40 = vadd.f32 %v3736_v12, %v7090_v57  ;;  %v7130_v4 = vsel %vm912_vm1, %v4341_v7, %v4342_v61 }
 0x318   : > { %v5724_v6 = vpop.f32.mrb[136].mxu1  ;;  %v7133_v51 = vadd.f32 %v7082_v60, %v3763_v3 }
 0x319   : > { %v5820_v23 = vpop.f32.mrb[156].mxu0  ;;  %v3681_v22 = vpop.f32.mrb[137].mxu1  ;;  %v7136_v34 = vadd.f32 %v7084_v49, %v3762_v40  ;;  %v3743_v1 = vrot.slane %v5724_v6, 2 }
 0x31a   : > { %v4288_v32 = vpop.f32.mrb[157].mxu0  ;;  %v5725_v63 = vpop.f32.mrb[138].mxu1  ;;  %v4350_v13 = vrot.slane %v5820_v23, 2  ;;  %v3740_v57 = vrot.slane %v3681_v22, 2 }
 0x31b   : > { %v3744_v50 = vrot.slane %v5725_v63, 2  ;;  %v5821_v62 = vpop.f32.mrb[158].mxu0  ;;  %v3684_v48 = vpop.f32.mrb[139].mxu1  ;;  %v4347_v15 = vrot.slane %v4288_v32, 2 }
 0x31c   : > { %v4351_v18 = vrot.slane %v5821_v62, 2  ;;  %v3741_v39 = vrot.slane %v3684_v48, 2  ;;  %v4291_v27 = vpop.f32.mrb[159].mxu0 }
 0x31d   : > { %v3745_v60 = vsel %vm912_vm1, %v3743_v1, %v3744_v50  ;;  %v4348_v10 = vrot.slane %v4291_v27, 2 }
 0x31e   : > { %v3765_v25 = vadd.f32 %v3745_v60, %v7096_v26  ;;  %v7141_v49 = vsel %vm912_vm1, %v4350_v13, %v4351_v18  ;;  %v3742_v42 = vsel %vm912_vm1, %v3740_v57, %v3741_v39 }
 0x31f   : > { %v3764_v0 = vadd.f32 %v3742_v42, %v7098_v59  ;;  %v7146_v24 = vsel %vm912_vm1, %v4347_v15, %v4348_v10 }
 0x320   : > { %v5728_v20 = vpop.f32.mrb[140].mxu1  ;;  %v7149_v53 = vadd.f32 %v7092_v46, %v3765_v25 }
 0x321   : > { %v3697_v36 = vpop.f32.mrb[141].mxu1  ;;  %v7152_v2 = vadd.f32 %v7094_v47, %v3764_v0  ;;  %v5824_v33 = vpop.f32.mrb[160].mxu0  ;;  %v3749_v31 = vrot.slane %v5728_v20, 2 }
 0x322   : > { %v5729_v26 = vpop.f32.mrb[142].mxu1  ;;  %v4356_v52 = vrot.slane %v5824_v33, 2  ;;  %v4304_v35 = vpop.f32.mrb[161].mxu0  ;;  %v3746_v8 = vrot.slane %v3697_v36, 2 }
 0x323   : > { %v3750_v44 = vrot.slane %v5729_v26, 2  ;;  %v3700_v11 = vpop.f32.mrb[143].mxu1  ;;  %v4353_v43 = vrot.slane %v4304_v35, 2  ;;  %v5825_v59 = vpop.f32.mrb[162].mxu0 }
 0x324   : > { %v3747_v19 = vrot.slane %v3700_v11, 2  ;;  %v4357_v37 = vrot.slane %v5825_v59, 2  ;;  %v4307_v41 = vpop.f32.mrb[163].mxu0 }
 0x325   : > { %v3751_v46 = vsel %vm912_vm1, %v3749_v31, %v3750_v44  ;;  %v4354_v30 = vrot.slane %v4307_v41, 2 }
 0x326   : > { %v3767_v29 = vadd.f32 %v3751_v46, %v7104_v21  ;;  %v3748_v47 = vsel %vm912_vm1, %v3746_v8, %v3747_v19  ;;  %v7158_v38 = vsel %vm912_vm1, %v4356_v52, %v4357_v37 }
 0x327   : > { %v3766_v5 = vadd.f32 %v3748_v47, %v7106_v58  ;;  %v7162_v56 = vsel %vm912_vm1, %v4353_v43, %v4354_v30 }
 0x328   : > { %v7165_v7 = vadd.f32 %v7100_v55, %v3767_v29  ;;  %v7176_v55 = vld [vmem:[%s7228_s4] ss:$0 sm:$0xff] }
 0x329   : > { %v5780_v17 = vpop.f32.mrb[144].mxu1  ;;  %v7168_v61 = vadd.f32 %v7102_v14, %v3766_v5 }
 0x32a   : > { %v4038_v3 = vpop.f32.mrb[145].mxu1  ;;  %v4120_v21 = vrot.slane %v5780_v17, 1 }
 0x32b   : > { %v5781_v12 = vpop.f32.mrb[146].mxu1  ;;  %v4117_v23 = vrot.slane %v4038_v3, 1 }
 0x32c   : > { %v4121_v40 = vrot.slane %v5781_v12, 1  ;;  %v4041_v6 = vpop.f32.mrb[147].mxu1 }
 0x32d   : > { %v4118_v22 = vrot.slane %v4041_v6, 1 }
 0x32e   : > { %v4122_v32 = vsel %vm663_vm0, %v4120_v21, %v4121_v40 }
 0x32f   : > { %v4150_v58 = vadd.f32 %v4122_v32, %v7117_v9  ;;  %v4119_v63 = vsel %vm663_vm0, %v4117_v23, %v4118_v22 }
 0x330   : > { %v4149_v14 = vadd.f32 %v4119_v63, %v7120_v45 }
 0x331   : > { %v4368_v1 = vadd.f32 %v7110_v54, %v4150_v58  ;;  %v5784_v50 = vpop.f32.mrb[148].mxu1 }
 0x332   : > { %v4367_v62 = vadd.f32 %v7114_v16, %v4149_v14  ;;  %v4054_v48 = vpop.f32.mrb[149].mxu1  ;;  %v4126_v18 = vrot.slane %v5784_v50, 1 }
 0x333   : > { %v4383_v13 = vadd.f32 %v7176_v55, %v4368_v1  ;;  %v5785_v9 = vpop.f32.mrb[150].mxu1  ;;  %v4123_v60 = vrot.slane %v4054_v48, 1 }
 0x334   : > { %v4382_v57 = vadd.f32 %v7176_v55, %v4367_v62  ;;  %v4127_v39 = vrot.slane %v5785_v9, 1  ;;  %v4057_v27 = vpop.f32.mrb[151].mxu1 }
 0x335   : > { %v4391_v15 = vmax.f32 %v4383_v13, 0.0  ;;  %v4124_v10 = vrot.slane %v4057_v27, 1 }
 0x336   : > { %v4390_v45 = vmax.f32 %v4382_v57, 0.0  ;;  %v4128_v25 = vsel %vm663_vm0, %v4126_v18, %v4127_v39 }
 0x337   : > { %4399 = vst [vmem:[%s6082_s29 + $0x8] sm:$0xff] %v4391_v15  ;;  %v4152_v54 = vadd.f32 %v4128_v25, %v7133_v51  ;;  %v4125_v16 = vsel %vm663_vm0, %v4123_v60, %v4124_v10 }
 0x338   : > { %4398 = vst [vmem:[%s6082_s29] sm:$0xff] %v4390_v45  ;;  %v4151_v42 = vadd.f32 %v4125_v16, %v7136_v34 }
 0x339   : > { %v4370_v0 = vadd.f32 %v7125_v28, %v4152_v54  ;;  %v5788_v20 = vpop.f32.mrb[152].mxu1 }
 0x33a   : > { %v4369_v36 = vadd.f32 %v7130_v4, %v4151_v42  ;;  %v4070_v33 = vpop.f32.mrb[153].mxu1  ;;  %v4132_v31 = vrot.slane %v5788_v20, 1 }
 0x33b   : > { %v4385_v26 = vadd.f32 %v7176_v55, %v4370_v0  ;;  %v5789_v52 = vpop.f32.mrb[154].mxu1  ;;  %v4129_v43 = vrot.slane %v4070_v33, 1 }
 0x33c   : > { %v4384_v35 = vadd.f32 %v7176_v55, %v4369_v36  ;;  %v4133_v51 = vrot.slane %v5789_v52, 1  ;;  %v4073_v44 = vpop.f32.mrb[155].mxu1 }
 0x33d   : > { %v4393_v11 = vmax.f32 %v4385_v26, 0.0  ;;  %v4130_v59 = vrot.slane %v4073_v44, 1 }
 0x33e   : > { %v4392_v34 = vmax.f32 %v4384_v35, 0.0  ;;  %v4134_v8 = vsel %vm663_vm0, %v4132_v31, %v4133_v51 }
 0x33f   : > { %4401 = vst [vmem:[%s6082_s29 + $0x18] sm:$0xff] %v4393_v11  ;;  %v4154_v28 = vadd.f32 %v4134_v8, %v7149_v53  ;;  %v4131_v4 = vsel %vm663_vm0, %v4129_v43, %v4130_v59 }
 0x340   : > { %4400 = vst [vmem:[%s6082_s29 + $0x10] sm:$0xff] %v4392_v34  ;;  %v4153_v19 = vadd.f32 %v4131_v4, %v7152_v2 }
 0x341   : > { %v4372_v37 = vadd.f32 %v7141_v49, %v4154_v28  ;;  %v5792_v41 = vpop.f32.mrb[156].mxu1 }
 0x342   : > { %v4371_v46 = vadd.f32 %v7146_v24, %v4153_v19  ;;  %v4086_v30 = vpop.f32.mrb[157].mxu1  ;;  %v4138_v17 = vrot.slane %v5792_v41, 1 }
 0x343   : > { %v4387_v29 = vadd.f32 %v7176_v55, %v4372_v37  ;;  %v5793_v47 = vpop.f32.mrb[158].mxu1  ;;  %v4135_v21 = vrot.slane %v4086_v30, 1 }
 0x344   : > { %v4386_v5 = vadd.f32 %v7176_v55, %v4371_v46  ;;  %v4139_v53 = vrot.slane %v5793_v47, 1  ;;  %v4089_v3 = vpop.f32.mrb[159].mxu1 }
 0x345   : > { %v4395_v12 = vmax.f32 %v4387_v29, 0.0  ;;  %v4136_v2 = vrot.slane %v4089_v3, 1 }
 0x346   : > { %v4394_v40 = vmax.f32 %v4386_v5, 0.0  ;;  %v4140_v49 = vsel %vm663_vm0, %v4138_v17, %v4139_v53 }
 0x347   : > { %4403 = vst [vmem:[%s6082_s29 + $0x28] sm:$0xff] %v4395_v12  ;;  %v4156_v24 = vadd.f32 %v4140_v49, %v7165_v7  ;;  %v4137_v6 = vsel %vm663_vm0, %v4135_v21, %v4136_v2 }
 0x348   : > { %4402 = vst [vmem:[%s6082_s29 + $0x20] sm:$0xff] %v4394_v40  ;;  %v4155_v23 = vadd.f32 %v4137_v6, %v7168_v61 }
 0x349   : > { %v4374_v22 = vadd.f32 %v7158_v38, %v4156_v24 }
 0x34a   : > { %v4373_v32 = vadd.f32 %v7162_v56, %v4155_v23 }
 0x34b   : > { %v4389_v58 = vadd.f32 %v7176_v55, %v4374_v22 }
 0x34c   : > { %v4388_v63 = vadd.f32 %v7176_v55, %v4373_v32 }
 0x34d   : > { %v4397_v14 = vmax.f32 %v4389_v58, 0.0 }
 0x34e   : > { %v4396_v1 = vmax.f32 %v4388_v63, 0.0 }
 0x34f   : > { %4405 = vst [vmem:[%s6082_s29 + $0x38] sm:$0xff] %v4397_v14 }
 0x350   : > { %4404 = vst [vmem:[%s6082_s29 + $0x30] sm:$0xff] %v4396_v1 }
 0x351 PF: > { %s15_s20 = sadd.s32 1, %s6019_s20   ;;  %s7236_s18 = smov %s6015_s19 }
 0x352   : > { %p12_p5 = scmp.ge.s32.totalorder %s15_s20, 4   ;;  %s7237_s19 = smov %s7239_s21 }
 0x354   :  { %14 = sbr.rel (!%p12_p5) target bundleno = 2 (0x2), region = 131 }
 0x35b   :  { %4436 = vsyncmov [#allocation4] }
 0x35e   :  { %s4437_s27 = vpop.sfrf %4436 }
 0x35f   :  { %p4905_p6 = scmp.ne.s32.totalorder %s4437_s27, 0 }
 0x361   :  { %4441 = shalt.err (%p4905_p6)  }

</bundles_post_ra>
